<compile_context>
chip_gen: v7x
topology: tpu7x:2x2x1
jax: 0.10.0
libtpu: 0.0.40
codegen_flags: <defaults>
</compile_context>

<pallas_src>
import functools
import math

import jax
import jax.numpy as jnp
from jax import lax
from jax.experimental import pallas as pl
from jax.experimental.pallas import tpu as pltpu

_BN_EPS = 1e-5
_LANE = 128
_VMEM_LIMIT = 32 * 1024 * 1024


# ----------------------------- tiling helpers -----------------------------

def _round_up(x, m):
    return (x + m - 1) // m * m


def _pick_row_tile(m, pref=1024):
    """Largest divisor of m that is a multiple of 8 and <= pref; else full extent."""
    cap = min(pref, m)
    cap -= cap % 8
    t = cap
    while t >= 8:
        if m % t == 0:
            return t
        t -= 8
    return m


def _pick_lane_tile(n, pref=_LANE):
    """Largest divisor of n that is a multiple of 128 and <= pref; else full extent."""
    cap = min(pref, n)
    cap -= cap % _LANE
    t = cap
    while t >= _LANE:
        if n % t == 0:
            return t
        t -= _LANE
    return n


def _pad_last(x, to):
    c = x.shape[-1]
    if c == to:
        return x
    pad = [(0, 0)] * (x.ndim - 1) + [(0, to - c)]
    return jnp.pad(x, pad)


# ----------------------------- tiled matmul (1x1 downsample conv) -----------------------------

def _matmul_kernel(a_ref, b_ref, o_ref, acc_ref):
    @pl.when(pl.program_id(2) == 0)
    def _init():
        acc_ref[...] = jnp.zeros_like(acc_ref)

    acc_ref[...] += jnp.dot(a_ref[...].astype(jnp.bfloat16), b_ref[...],
                            preferred_element_type=jnp.float32)

    @pl.when(pl.program_id(2) == pl.num_programs(2) - 1)
    def _fin():
        o_ref[...] = acc_ref[...].astype(o_ref.dtype)


def pallas_matmul(a, b_bf16, *, tm_pref=256, tn_pref=128, tk_pref=512):
    """a: (M, K) f32, b_bf16: (K, N) bf16 -> (M, N) f32 (bf16 MXU, f32 accumulation)."""
    M, K = a.shape
    K2, N = b_bf16.shape
    assert K == K2
    tm = _pick_row_tile(M, tm_pref)
    tn = _pick_lane_tile(N, tn_pref)
    tk = _pick_lane_tile(K, tk_pref)
    grid = (M // tm, N // tn, K // tk)
    cost = pl.CostEstimate(flops=2 * M * N * K, transcendentals=0,
                           bytes_accessed=4 * M * K + 2 * K * N + 4 * M * N)
    return pl.pallas_call(
        _matmul_kernel,
        out_shape=jax.ShapeDtypeStruct((M, N), jnp.float32),
        grid_spec=pltpu.PrefetchScalarGridSpec(
            num_scalar_prefetch=0,
            grid=grid,
            in_specs=[pl.BlockSpec((tm, tk), lambda i, j, k: (i, k)),
                      pl.BlockSpec((tk, tn), lambda i, j, k: (k, j))],
            out_specs=pl.BlockSpec((tm, tn), lambda i, j, k: (i, j)),
            scratch_shapes=[pltpu.VMEM((tm, tn), jnp.float32)]),
        compiler_params=pltpu.CompilerParams(
            dimension_semantics=("parallel", "parallel", "arbitrary"),
            vmem_limit_bytes=_VMEM_LIMIT),
        cost_estimate=cost,
    )(a, b_bf16)


# ----------------------------- BatchNorm: tiled statistics + affine(+ReLU) -----------------------------

def _bn_stats_kernel(x_ref, o_ref, acc_ref):
    @pl.when(pl.program_id(0) == 0)
    def _init():
        acc_ref[...] = jnp.zeros_like(acc_ref)

    x = x_ref[...]
    acc_ref[...] += jnp.concatenate(
        [jnp.sum(x, axis=0, keepdims=True),
         jnp.sum(x * x, axis=0, keepdims=True)], axis=0)

    @pl.when(pl.program_id(0) == pl.num_programs(0) - 1)
    def _fin():
        o_ref[...] = acc_ref[...]


def pallas_bn_stats(x2d, *, tm_pref=1024):
    """x2d: (M, C) f32 -> (2, C): [sum, sum-of-squares] per channel (tiled reduction)."""
    M, C = x2d.shape
    tm = _pick_row_tile(M, tm_pref)
    return pl.pallas_call(
        _bn_stats_kernel,
        out_shape=jax.ShapeDtypeStruct((2, C), jnp.float32),
        grid_spec=pltpu.PrefetchScalarGridSpec(
            num_scalar_prefetch=0,
            grid=(M // tm,),
            in_specs=[pl.BlockSpec((tm, C), lambda i: (i, 0))],
            out_specs=pl.BlockSpec((2, C), lambda i: (0, 0)),
            scratch_shapes=[pltpu.VMEM((2, C), jnp.float32)]),
        compiler_params=pltpu.CompilerParams(
            dimension_semantics=("arbitrary",),
            vmem_limit_bytes=_VMEM_LIMIT),
    )(x2d)


def _affine_kernel(x_ref, s_ref, b_ref, o_ref, *, relu):
    y = x_ref[...] * s_ref[...] + b_ref[...]
    if relu:
        y = jnp.maximum(y, 0.0)
    o_ref[...] = y


def pallas_affine(x2d, scale, shift, *, relu, tm_pref=1024):
    """Per-channel affine (BN normalize folded to scale/shift) + optional ReLU, tiled."""
    M, C = x2d.shape
    tm = _pick_row_tile(M, tm_pref)
    kern = functools.partial(_affine_kernel, relu=relu)
    return pl.pallas_call(
        kern,
        out_shape=jax.ShapeDtypeStruct((M, C), jnp.float32),
        grid_spec=pltpu.PrefetchScalarGridSpec(
            num_scalar_prefetch=0,
            grid=(M // tm,),
            in_specs=[pl.BlockSpec((tm, C), lambda i: (i, 0)),
                      pl.BlockSpec((1, C), lambda i: (0, 0)),
                      pl.BlockSpec((1, C), lambda i: (0, 0))],
            out_specs=pl.BlockSpec((tm, C), lambda i: (i, 0))),
        compiler_params=pltpu.CompilerParams(
            dimension_semantics=("parallel",),
            vmem_limit_bytes=_VMEM_LIMIT),
    )(x2d, scale, shift)


def _bn_affine_from_stats(stats, count, gamma, beta):
    # TODO(synk): this O(C) sums->scale/shift conversion is left to XLA (tiny per-channel op).
    mean = stats[0] / count
    var = jnp.maximum(stats[1] / count - mean * mean, 0.0)   # biased (torch train-mode BN)
    scale = gamma * lax.rsqrt(var + _BN_EPS)
    shift = beta - mean * scale
    return scale.reshape(1, -1), shift.reshape(1, -1)


# ----------------------------- fused 3x3 convolution -----------------------------

def _conv3x3_kernel(*refs, k, s, ho, wo, cin, in_affine, has_residual, compute_stats):
    i = 0
    ph_ref = refs[i]; i += 1
    w_ref = refs[i]; i += 1
    if in_affine:
        isc_ref = refs[i]; ish_ref = refs[i + 1]; i += 2
    if has_residual:
        res_ref = refs[i]; rs_ref = refs[i + 1]; rb_ref = refs[i + 2]; i += 3
    o_ref = refs[i]; i += 1
    stats_ref = refs[i] if compute_stats else None

    tn = o_ref.shape[-1]
    acc = jnp.zeros((ho * wo, tn), jnp.float32)
    # k*k accumulated MXU dots over shifted phase views (input tile stays in VMEM;
    # no im2col slab ever touches HBM).
    for dh in range(k):
        for dw in range(k):
            phase = (dh % s) * s + (dw % s)
            patch = ph_ref[phase, pl.ds(dh // s, ho), pl.ds(dw // s, wo), :]
            patch = patch.reshape(ho * wo, cin)
            if in_affine:
                # fused prologue: BN normalize (folded to scale/shift) + ReLU on the input
                patch = jnp.maximum(patch * isc_ref[...] + ish_ref[...], 0.0)
            acc = acc + jnp.dot(patch.astype(jnp.bfloat16), w_ref[dh * k + dw],
                                preferred_element_type=jnp.float32)

    if has_residual:
        # fused epilogue: residual add (+ downsample-BN affine already folded in scale/shift)
        acc = acc + res_ref[...] * rs_ref[...] + rb_ref[...]

    o_ref[...] = acc.astype(o_ref.dtype)

    if compute_stats:
        # fused per-channel sum / sum-of-squares of the conv output (feeds the next BN)
        stats_ref[0] = jnp.concatenate(
            [jnp.sum(acc, axis=0, keepdims=True),
             jnp.sum(acc * acc, axis=0, keepdims=True)], axis=0)


def pallas_conv3x3(x, w_bf16, *, stride, in_scale=None, in_shift=None,
                   residual=None, res_scale=None, res_shift=None, compute_stats=False):
    """3x3 'same' conv (stride 1 or 2) on NHWC x (channels padded to 128-mult).

    x:        (N, H, W, C)   f32
    w_bf16:   (k*k, C, Cout) bf16  (tap-major, zero-padded channels)
    in_scale/in_shift (optional): (1, C) fused input prologue relu(x*scale+shift)
        (used to fuse a preceding BN+ReLU into the conv).
    residual (optional): (N, Ho, Wo, Cout) f32, fused as  out += residual*res_scale+res_shift
    compute_stats: also return per-channel [sum, sum_sq] of the conv output, shape (2, Cout).
    """
    N, H, W, C = x.shape
    kk, C2, Cout = w_bf16.shape
    k = int(round(math.sqrt(kk)))
    assert C2 == C and k * k == kk
    s = stride
    pad = (k - 1) // 2
    in_affine = in_scale is not None

    if in_affine:
        # Pad with the per-channel value pv such that relu(pv*scale+shift) == 0, so the
        # fused BN+ReLU prologue sees exactly a zero border (== zero-padding of the
        # activated feature map). Guard scale==0 (zero-padded channels).
        # TODO(synk): a real channel with gamma==0 would make the border relu(shift)!=0;
        # not reachable here (gamma==1) and irrelevant for padded channels (shift==0).
        nz = in_scale != 0.0
        pv = jnp.where(nz, -in_shift / jnp.where(nz, in_scale, 1.0), 0.0)
        pv4 = pv.reshape(1, 1, 1, C)
        xp = jnp.pad(x - pv4, ((0, 0), (pad, pad), (pad, pad), (0, 0))) + pv4
    else:
        pv4 = None
        xp = jnp.pad(x, ((0, 0), (pad, pad), (pad, pad), (0, 0)))

    Ho = (H + 2 * pad - k) // s + 1
    Wo = (W + 2 * pad - k) // s + 1
    need_h = Ho + (k - 1) // s
    need_w = Wo + (k - 1) // s

    # Stride-phase decomposition (XLA glue, same total bytes as the input — no k*k blowup):
    # tap (dh,dw) reads phase ((dh%s),(dw%s)) at unstrided offset (dh//s, dw//s).
    phases = []
    for ph in range(s):
        for pw in range(s):
            p = xp[:, ph::s, pw::s, :][:, :need_h, :need_w, :]
            if p.shape[1] < need_h or p.shape[2] < need_w:
                cfg = ((0, 0), (0, need_h - p.shape[1]),
                       (0, need_w - p.shape[2]), (0, 0))
                p = (jnp.pad(p - pv4, cfg) + pv4) if in_affine else jnp.pad(p, cfg)
            phases.append(p)
    P = s * s
    phases = jnp.stack(phases, axis=1).reshape(N * P, need_h, need_w, C)

    tn = _pick_lane_tile(Cout, _LANE)
    grid = (N, Cout // tn)
    has_residual = residual is not None

    in_specs = [
        pl.BlockSpec((P, need_h, need_w, C), lambda b, j: (b, 0, 0, 0)),
        pl.BlockSpec((kk, C, tn), lambda b, j: (0, 0, j)),
    ]
    inputs = [phases, w_bf16]
    if in_affine:
        in_specs += [pl.BlockSpec((1, C), lambda b, j: (0, 0)),
                     pl.BlockSpec((1, C), lambda b, j: (0, 0))]
        inputs += [in_scale, in_shift]
    if has_residual:
        assert residual.shape == (N, Ho, Wo, Cout)
        in_specs += [
            pl.BlockSpec((Ho * Wo, tn), lambda b, j: (b, j)),
            pl.BlockSpec((1, tn), lambda b, j: (0, j)),
            pl.BlockSpec((1, tn), lambda b, j: (0, j)),
        ]
        inputs += [residual.reshape(N * Ho * Wo, Cout), res_scale, res_shift]

    # lane-dense 2-D output slab (rows = N*Ho*Wo, lanes = padded channels)
    if compute_stats:
        out_shape = (jax.ShapeDtypeStruct((N * Ho * Wo, Cout), jnp.float32),
                     jax.ShapeDtypeStruct((N, 2, Cout), jnp.float32))
        out_specs = (pl.BlockSpec((Ho * Wo, tn), lambda b, j: (b, j)),
                     pl.BlockSpec((1, 2, tn), lambda b, j: (b, 0, j)))
    else:
        out_shape = jax.ShapeDtypeStruct((N * Ho * Wo, Cout), jnp.float32)
        out_specs = pl.BlockSpec((Ho * Wo, tn), lambda b, j: (b, j))

    kern = functools.partial(_conv3x3_kernel, k=k, s=s, ho=Ho, wo=Wo, cin=C,
                             in_affine=in_affine, has_residual=has_residual,
                             compute_stats=compute_stats)
    flops = 2 * N * Ho * Wo * kk * C * Cout
    bytes_acc = (phases.size * 4 + w_bf16.size * 2 + N * Ho * Wo * Cout * 4
                 + (N * Ho * Wo * Cout * 4 if has_residual else 0))

    result = pl.pallas_call(
        kern,
        out_shape=out_shape,
        grid_spec=pltpu.PrefetchScalarGridSpec(
            num_scalar_prefetch=0,
            grid=grid,
            in_specs=in_specs,
            out_specs=out_specs),
        compiler_params=pltpu.CompilerParams(
            dimension_semantics=("parallel", "parallel"),
            vmem_limit_bytes=_VMEM_LIMIT),
        cost_estimate=pl.CostEstimate(flops=flops, transcendentals=0,
                                      bytes_accessed=bytes_acc),
    )(*inputs)

    if compute_stats:
        y2d, stats = result
        return y2d.reshape(N, Ho, Wo, Cout), jnp.sum(stats, axis=0)
    return result.reshape(N, Ho, Wo, Cout)


# ----------------------------- weight preparation (glue) -----------------------------

def _prep_conv3x3_w(w_oihw, cin_p, cout_p):
    cout, cin, kh, kw = w_oihw.shape
    w = jnp.transpose(w_oihw, (2, 3, 1, 0)).reshape(kh * kw, cin, cout)
    w = jnp.pad(w, ((0, 0), (0, cin_p - cin), (0, cout_p - cout)))
    return w.astype(jnp.bfloat16)


def _prep_conv1x1_w(w_oihw, cin_p, cout_p):
    cout, cin = w_oihw.shape[:2]
    w = jnp.transpose(w_oihw.reshape(cout, cin), (1, 0))
    w = jnp.pad(w, ((0, cin_p - cin), (0, cout_p - cout)))
    return w.astype(jnp.bfloat16)


# ----------------------------- BasicBlock forward -----------------------------

def basic_block_forward(x_nchw, p, *, stride, has_downsample):
    """Pre-activation BasicBlock:
         out = conv2(relu(bn2(conv1(relu(bn1(x)))))) + identity
       identity = downsample(relu(bn1(x))) if downsample else x
       (downsample = 1x1 conv(stride) + BN, as in ResNet56's _make_layer).
    """
    x = jnp.transpose(x_nchw, (0, 2, 3, 1)).astype(jnp.float32)    # NCHW -> NHWC
    N, H, W, Cin = x.shape
    planes = p['conv1_w'].shape[0]
    cin_p = _round_up(Cin, _LANE)
    planes_p = _round_up(planes, _LANE)

    xp = _pad_last(x, cin_p)
    x2d = xp.reshape(N * H * W, cin_p)

    # ---- bn1 + relu (tiled stats kernel + tiled affine kernel; output has 2 consumers) ----
    g1 = _pad_last(p['bn1_g'], cin_p)
    b1 = _pad_last(p['bn1_b'], cin_p)
    stats1 = pallas_bn_stats(x2d)
    sc1, sh1 = _bn_affine_from_stats(stats1, N * H * W, g1, b1)
    out0 = pallas_affine(x2d, sc1, sh1, relu=True).reshape(N, H, W, cin_p)

    # ---- identity branch ----
    if has_downsample:
        xs = out0[:, ::stride, ::stride, :]                        # 1x1/stride conv input
        Hi, Wi = xs.shape[1], xs.shape[2]
        ds_w = _prep_conv1x1_w(p['ds_conv_w'], cin_p, planes_p)
        ident = pallas_matmul(xs.reshape(N * Hi * Wi, cin_p), ds_w)
        dsg = _pad_last(p['ds_bn_g'], planes_p)
        dsb = _pad_last(p['ds_bn_b'], planes_p)
        stats_ds = pallas_bn_stats(ident)
        # downsample-BN is folded into conv2's residual epilogue as an affine:
        res_scale, res_shift = _bn_affine_from_stats(stats_ds, N * Hi * Wi, dsg, dsb)
        identity = ident.reshape(N, Hi, Wi, planes_p)
    else:
        assert Cin == planes and stride == 1, "identity path needs matching shapes"
        identity = xp
        res_scale = jnp.ones((1, planes_p), jnp.float32)
        res_shift = jnp.zeros((1, planes_p), jnp.float32)

    # ---- conv1 (3x3, stride) with fused output statistics for bn2 ----
    w1 = _prep_conv3x3_w(p['conv1_w'], cin_p, planes_p)
    h1, stats2 = pallas_conv3x3(out0, w1, stride=stride, compute_stats=True)
    _, Ho, Wo, _ = h1.shape

    # ---- bn2 scale/shift (normalize + relu fused into conv2's input prologue) ----
    g2 = _pad_last(p['bn2_g'], planes_p)
    b2 = _pad_last(p['bn2_b'], planes_p)
    sc2, sh2 = _bn_affine_from_stats(stats2, N * Ho * Wo, g2, b2)

    # ---- conv2 (3x3, stride 1): fused bn2+relu prologue, fused residual (+ds-BN) epilogue ----
    w2 = _prep_conv3x3_w(p['conv2_w'], planes_p, planes_p)
    y = pallas_conv3x3(h1, w2, stride=1, in_scale=sc2, in_shift=sh2,
                       residual=identity, res_scale=res_scale, res_shift=res_shift)

    y = y[..., :planes]                                            # drop channel padding
    return jnp.transpose(y, (0, 3, 1, 2))                          # NHWC -> NCHW


# ----------------------------- deterministic params & pure-JAX reference -----------------------------

def init_basic_block_params(key, inplanes, planes, has_downsample):
    k1, k2, k3 = jax.random.split(key, 3)

    def kaiming(k, cout, cin, ks):
        std = math.sqrt(2.0 / (cout * ks * ks))
        return std * jax.random.normal(k, (cout, cin, ks, ks), jnp.float32)

    p = {
        'bn1_g': jnp.ones((inplanes,), jnp.float32),
        'bn1_b': jnp.zeros((inplanes,), jnp.float32),
        'conv1_w': kaiming(k1, planes, inplanes, 3),
        'bn2_g': jnp.ones((planes,), jnp.float32),
        'bn2_b': jnp.zeros((planes,), jnp.float32),
        'conv2_w': kaiming(k2, planes, planes, 3),
    }
    if has_downsample:
        p['ds_conv_w'] = kaiming(k3, planes, inplanes, 1)
        p['ds_bn_g'] = jnp.ones((planes,), jnp.float32)
        p['ds_bn_b'] = jnp.zeros((planes,), jnp.float32)
    return p


def _bn_ref(x, gamma, beta):
    mean = jnp.mean(x, axis=(0, 1, 2))
    var = jnp.mean((x - mean) ** 2, axis=(0, 1, 2))
    return (x - mean) * lax.rsqrt(var + _BN_EPS) * gamma + beta


def _conv_ref(x, w_oihw, stride, padding):
    return lax.conv_general_dilated(
        x, jnp.transpose(w_oihw, (2, 3, 1, 0)),
        window_strides=(stride, stride),
        padding=((padding, padding), (padding, padding)),
        dimension_numbers=('NHWC', 'HWIO', 'NHWC'))


def basic_block_ref(x_nchw, p, *, stride, has_downsample):
    x = jnp.transpose(x_nchw, (0, 2, 3, 1)).astype(jnp.float32)
    out = jnp.maximum(_bn_ref(x, p['bn1_g'], p['bn1_b']), 0.0)
    if has_downsample:
        ident = _conv_ref(out, p['ds_conv_w'], stride, 0)
        ident = _bn_ref(ident, p['ds_bn_g'], p['ds_bn_b'])
    else:
        ident = x
    out = _conv_ref(out, p['conv1_w'], stride, 1)
    out = jnp.maximum(_bn_ref(out, p['bn2_g'], p['bn2_b']), 0.0)
    out = _conv_ref(out, p['conv2_w'], 1, 1)
    out = out + ident
    return jnp.transpose(out, (0, 3, 1, 2))


# ----------------------------- main -----------------------------

if __name__ == "__main__":
    key = jax.random.PRNGKey(0)
    kp1, kp2, kx = jax.random.split(key, 3)

    # Block with downsample: inplanes=16 -> planes=32, stride=2 (ResNet56 stage boundary)
    p_ds = init_basic_block_params(kp1, 16, 32, has_downsample=True)
    # Block without downsample: 32 -> 32, stride=1
    p_id = init_basic_block_params(kp2, 32, 32, has_downsample=False)

    x = jax.random.normal(kx, (2, 16, 16, 16), dtype=jnp.float32)   # NCHW, like PyTorch

    fwd = jax.jit(basic_block_forward, static_argnames=("stride", "has_downsample"))

    y1 = fwd(x, p_ds, stride=2, has_downsample=True)
    y2 = fwd(y1, p_id, stride=1, has_downsample=False)
    jax.block_until_ready(y2)
    assert y1.shape == (2, 32, 8, 8), y1.shape
    assert y2.shape == (2, 32, 8, 8), y2.shape

    # correctness vs. pure-JAX f32 reference (loose tol: bf16 MXU inputs)
    r1 = basic_block_ref(x, p_ds, stride=2, has_downsample=True)
    r2 = basic_block_ref(y1, p_id, stride=1, has_downsample=False)
    assert bool(jnp.allclose(y1, r1, atol=5e-2, rtol=5e-2)), \
        float(jnp.max(jnp.abs(y1 - r1)))
    assert bool(jnp.allclose(y2, r2, atol=5e-2, rtol=5e-2)), \
        float(jnp.max(jnp.abs(y2 - r2)))

    print("KERNEL_OK")
</pallas_src>

<mosaic_0001>
module attributes {stable_mosaic.version = 11 : i64} {
  func.func @_bn_stats_kernel(%arg0: i32, %arg1: memref<512x128xf32, #tpu.memory_space<vmem>>, %arg2: memref<2x128xf32, #tpu.memory_space<vmem>>, %arg3: memref<2x128xf32, #tpu.memory_space<vmem>>) attributes {dimension_semantics = [#tpu.dimension_semantics<arbitrary>], iteration_bounds = array<i64: 1>, scalar_prefetch = 0 : i64, scratch_operands = 1 : i64, tpu.core_type = #tpu.core_type<tc>, window_params = [{transform_indices = @transform_0, window_bounds = array<i64: 512, 128>}, {pipeline_mode = #tpu.pipeline_mode<synchronous>, transform_indices = @transform_1, window_bounds = array<i64: 2, 128>}]} {
    %c0_i32 = arith.constant 0 : i32
    %0 = arith.cmpi eq, %arg0, %c0_i32 : i32
    %1 = arith.extui %0 : i1 to i32
    %c0_i32_0 = arith.constant 0 : i32
    %2 = arith.cmpi ne, %1, %c0_i32_0 : i32
    scf.if %2 {
      %cst_9 = arith.constant 0.000000e+00 : f32
      %16 = vector.broadcast %cst_9 : f32 to vector<2x128xf32>
      %c0_10 = arith.constant 0 : index
      %c0_11 = arith.constant 0 : index
      %17 = vector.load %arg3[%c0_10, %c0_11] : memref<2x128xf32, #tpu.memory_space<vmem>>, vector<2x128xf32>
      tpu.vector_store %arg3[%c0_10, %c0_11], %16 {strides = array<i32>} : memref<2x128xf32, #tpu.memory_space<vmem>>, vector<2x128xf32>,
    } else {
    }
    %c0 = arith.constant 0 : index
    %c0_1 = arith.constant 0 : index
    %3 = vector.load %arg1[%c0, %c0_1] : memref<512x128xf32, #tpu.memory_space<vmem>>, vector<512x128xf32>
    %c0_2 = arith.constant 0 : index
    %c0_3 = arith.constant 0 : index
    %4 = vector.load %arg3[%c0_2, %c0_3] : memref<2x128xf32, #tpu.memory_space<vmem>>, vector<2x128xf32>
    %cst = arith.constant dense<0.000000e+00> : vector<128xf32>
    %5 = vector.multi_reduction <add>, %3, %cst [0] : vector<512x128xf32> to vector<128xf32>
    %6 = vector.shape_cast %5 : vector<128xf32> to vector<1x128xf32>
    %7 = arith.mulf %3, %3 : vector<512x128xf32>
    %cst_4 = arith.constant dense<0.000000e+00> : vector<128xf32>
    %8 = vector.multi_reduction <add>, %7, %cst_4 [0] : vector<512x128xf32> to vector<128xf32>
    %9 = vector.shape_cast %8 : vector<128xf32> to vector<1x128xf32>
    %10 = tpu.concatenate %6, %9 in 0 : vector<1x128xf32>, vector<1x128xf32> -> vector<2x128xf32>
    %11 = arith.addf %4, %10 : vector<2x128xf32>
    %c0_5 = arith.constant 0 : index
    %c0_6 = arith.constant 0 : index
    %12 = vector.load %arg3[%c0_5, %c0_6] : memref<2x128xf32, #tpu.memory_space<vmem>>, vector<2x128xf32>
    tpu.vector_store %arg3[%c0_5, %c0_6], %11 {strides = array<i32>} : memref<2x128xf32, #tpu.memory_space<vmem>>, vector<2x128xf32>,
    %c0_i32_7 = arith.constant 0 : i32
    %13 = arith.cmpi eq, %arg0, %c0_i32_7 : i32
    %14 = arith.extui %13 : i1 to i32
    %c0_i32_8 = arith.constant 0 : i32
    %15 = arith.cmpi ne, %14, %c0_i32_8 : i32
    scf.if %15 {
      %c0_9 = arith.constant 0 : index
      %c0_10 = arith.constant 0 : index
      %16 = vector.load %arg3[%c0_9, %c0_10] : memref<2x128xf32, #tpu.memory_space<vmem>>, vector<2x128xf32>
      %c0_11 = arith.constant 0 : index
      %c0_12 = arith.constant 0 : index
      %17 = vector.load %arg2[%c0_11, %c0_12] : memref<2x128xf32, #tpu.memory_space<vmem>>, vector<2x128xf32>
      tpu.vector_store %arg2[%c0_11, %c0_12], %16 {strides = array<i32>} : memref<2x128xf32, #tpu.memory_space<vmem>>, vector<2x128xf32>,
    } else {
    }
    return
  }
  func.func @transform_0(%arg0: i32) -> (i32, i32) {
    %c0_i32 = arith.constant 0 : i32
    %c0_i32_0 = arith.constant 0 : i32
    return %arg0, %c0_i32 : i32, i32
  }
  func.func @transform_1(%arg0: i32) -> (i32, i32) {
    %c0_i32 = arith.constant 0 : i32
    %c0_i32_0 = arith.constant 0 : i32
    %c0_i32_1 = arith.constant 0 : i32
    return %c0_i32, %c0_i32_0 : i32, i32
  }
}

module attributes {stable_mosaic.version = 11 : i64} {
  func.func @_affine_kernel(%arg0: i32, %arg1: memref<512x128xf32, #tpu.memory_space<vmem>>, %arg2: memref<1x128xf32, #tpu.memory_space<vmem>>, %arg3: memref<1x128xf32, #tpu.memory_space<vmem>>, %arg4: memref<512x128xf32, #tpu.memory_space<vmem>>) attributes {dimension_semantics = [#tpu.dimension_semantics<parallel>], iteration_bounds = array<i64: 1>, scalar_prefetch = 0 : i64, scratch_operands = 0 : i64, tpu.core_type = #tpu.core_type<tc>, window_params = [{transform_indices = @transform_0, window_bounds = array<i64: 512, 128>}, {pipeline_mode = #tpu.pipeline_mode<synchronous>, transform_indices = @transform_1, window_bounds = array<i64: 1, 128>}, {pipeline_mode = #tpu.pipeline_mode<synchronous>, transform_indices = @transform_2, window_bounds = array<i64: 1, 128>}, {transform_indices = @transform_3, window_bounds = array<i64: 512, 128>}]} {
    %c0 = arith.constant 0 : index
    %c0_0 = arith.constant 0 : index
    %0 = vector.load %arg1[%c0, %c0_0] : memref<512x128xf32, #tpu.memory_space<vmem>>, vector<512x128xf32>
    %c0_1 = arith.constant 0 : index
    %c0_2 = arith.constant 0 : index
    %1 = vector.load %arg2[%c0_1, %c0_2] : memref<1x128xf32, #tpu.memory_space<vmem>>, vector<1x128xf32>
    %2 = vector.broadcast %1 : vector<1x128xf32> to vector<512x128xf32>
    %3 = arith.mulf %0, %2 : vector<512x128xf32>
    %c0_3 = arith.constant 0 : index
    %c0_4 = arith.constant 0 : index
    %4 = vector.load %arg3[%c0_3, %c0_4] : memref<1x128xf32, #tpu.memory_space<vmem>>, vector<1x128xf32>
    %5 = vector.broadcast %4 : vector<1x128xf32> to vector<512x128xf32>
    %6 = arith.addf %3, %5 : vector<512x128xf32>
    %cst = arith.constant 0.000000e+00 : f32
    %7 = vector.broadcast %cst : f32 to vector<512x128xf32>
    %8 = arith.maximumf %6, %7 : vector<512x128xf32>
    %c0_5 = arith.constant 0 : index
    %c0_6 = arith.constant 0 : index
    %9 = vector.load %arg4[%c0_5, %c0_6] : memref<512x128xf32, #tpu.memory_space<vmem>>, vector<512x128xf32>
    tpu.vector_store %arg4[%c0_5, %c0_6], %8 {strides = array<i32>} : memref<512x128xf32, #tpu.memory_space<vmem>>, vector<512x128xf32>,
    return
  }
  func.func @transform_0(%arg0: i32) -> (i32, i32) {
    %c0_i32 = arith.constant 0 : i32
    %c0_i32_0 = arith.constant 0 : i32
    return %arg0, %c0_i32 : i32, i32
  }
  func.func @transform_1(%arg0: i32) -> (i32, i32) {
    %c0_i32 = arith.constant 0 : i32
    %c0_i32_0 = arith.constant 0 : i32
    %c0_i32_1 = arith.constant 0 : i32
    return %c0_i32, %c0_i32_0 : i32, i32
  }
  func.func @transform_2(%arg0: i32) -> (i32, i32) {
    %c0_i32 = arith.constant 0 : i32
    %c0_i32_0 = arith.constant 0 : i32
    %c0_i32_1 = arith.constant 0 : i32
    return %c0_i32, %c0_i32_0 : i32, i32
  }
  func.func @transform_3(%arg0: i32) -> (i32, i32) {
    %c0_i32 = arith.constant 0 : i32
    %c0_i32_0 = arith.constant 0 : i32
    return %arg0, %c0_i32 : i32, i32
  }
}

module attributes {stable_mosaic.version = 11 : i64} {
  func.func @_matmul_kernel(%arg0: i32, %arg1: i32, %arg2: i32, %arg3: memref<128x128xf32, #tpu.memory_space<vmem>>, %arg4: memref<128x128xbf16, #tpu.memory_space<vmem>>, %arg5: memref<128x128xf32, #tpu.memory_space<vmem>>, %arg6: memref<128x128xf32, #tpu.memory_space<vmem>>) attributes {dimension_semantics = [#tpu.dimension_semantics<parallel>, #tpu.dimension_semantics<parallel>, #tpu.dimension_semantics<arbitrary>], iteration_bounds = array<i64: 1, 1, 1>, scalar_prefetch = 0 : i64, scratch_operands = 1 : i64, tpu.core_type = #tpu.core_type<tc>, window_params = [{transform_indices = @transform_0, window_bounds = array<i64: 128, 128>}, {transform_indices = @transform_1, window_bounds = array<i64: 128, 128>}, {transform_indices = @transform_2, window_bounds = array<i64: 128, 128>}]} {
    %c0_i32 = arith.constant 0 : i32
    %0 = arith.cmpi eq, %arg2, %c0_i32 : i32
    %1 = arith.extui %0 : i1 to i32
    %c0_i32_0 = arith.constant 0 : i32
    %2 = arith.cmpi ne, %1, %c0_i32_0 : i32
    scf.if %2 {
      %cst_10 = arith.constant 0.000000e+00 : f32
      %13 = vector.broadcast %cst_10 : f32 to vector<128x128xf32>
      %c0_11 = arith.constant 0 : index
      %c0_12 = arith.constant 0 : index
      %14 = vector.load %arg6[%c0_11, %c0_12] : memref<128x128xf32, #tpu.memory_space<vmem>>, vector<128x128xf32>
      tpu.vector_store %arg6[%c0_11, %c0_12], %13 {strides = array<i32>} : memref<128x128xf32, #tpu.memory_space<vmem>>, vector<128x128xf32>,
    } else {
    }
    %c0 = arith.constant 0 : index
    %c0_1 = arith.constant 0 : index
    %3 = vector.load %arg6[%c0, %c0_1] : memref<128x128xf32, #tpu.memory_space<vmem>>, vector<128x128xf32>
    %c0_2 = arith.constant 0 : index
    %c0_3 = arith.constant 0 : index
    %4 = vector.load %arg3[%c0_2, %c0_3] : memref<128x128xf32, #tpu.memory_space<vmem>>, vector<128x128xf32>
    %5 = arith.truncf %4 : vector<128x128xf32> to vector<128x128xbf16>
    %c0_4 = arith.constant 0 : index
    %c0_5 = arith.constant 0 : index
    %6 = vector.load %arg4[%c0_4, %c0_5] : memref<128x128xbf16, #tpu.memory_space<vmem>>, vector<128x128xbf16>
    %cst = arith.constant dense<0.000000e+00> : vector<128x128xf32>
    %7 = tpu.matmul %5, %6, %cst {dimension_numbers = #tpu.dot_dimension_numbers<[1], [0], [0], [1], [0, 0, 1, 1], [], []>} : vector<128x128xbf16>, vector<128x128xbf16>, vector<128x128xf32> -> vector<128x128xf32>
    %8 = arith.addf %3, %7 : vector<128x128xf32>
    %c0_6 = arith.constant 0 : index
    %c0_7 = arith.constant 0 : index
    %9 = vector.load %arg6[%c0_6, %c0_7] : memref<128x128xf32, #tpu.memory_space<vmem>>, vector<128x128xf32>
    tpu.vector_store %arg6[%c0_6, %c0_7], %8 {strides = array<i32>} : memref<128x128xf32, #tpu.memory_space<vmem>>, vector<128x128xf32>,
    %c0_i32_8 = arith.constant 0 : i32
    %10 = arith.cmpi eq, %arg2, %c0_i32_8 : i32
    %11 = arith.extui %10 : i1 to i32
    %c0_i32_9 = arith.constant 0 : i32
    %12 = arith.cmpi ne, %11, %c0_i32_9 : i32
    scf.if %12 {
      %c0_10 = arith.constant 0 : index
      %c0_11 = arith.constant 0 : index
      %13 = vector.load %arg6[%c0_10, %c0_11] : memref<128x128xf32, #tpu.memory_space<vmem>>, vector<128x128xf32>
      %c0_12 = arith.constant 0 : index
      %c0_13 = arith.constant 0 : index
      %14 = vector.load %arg5[%c0_12, %c0_13] : memref<128x128xf32, #tpu.memory_space<vmem>>, vector<128x128xf32>
      tpu.vector_store %arg5[%c0_12, %c0_13], %13 {strides = array<i32>} : memref<128x128xf32, #tpu.memory_space<vmem>>, vector<128x128xf32>,
    } else {
    }
    return
  }
  func.func @transform_0(%arg0: i32, %arg1: i32, %arg2: i32) -> (i32, i32) {
    %c0_i32 = arith.constant 0 : i32
    return %arg0, %arg2 : i32, i32
  }
  func.func @transform_1(%arg0: i32, %arg1: i32, %arg2: i32) -> (i32, i32) {
    %c0_i32 = arith.constant 0 : i32
    return %arg2, %arg1 : i32, i32
  }
  func.func @transform_2(%arg0: i32, %arg1: i32, %arg2: i32) -> (i32, i32) {
    %c0_i32 = arith.constant 0 : i32
    return %arg0, %arg1 : i32, i32
  }
}

module attributes {stable_mosaic.version = 11 : i64} {
  func.func @_conv3x3_kernel(%arg0: i32, %arg1: i32, %arg2: memref<4x9x9x128xf32, #tpu.memory_space<vmem>>, %arg3: memref<9x128x128xbf16, #tpu.memory_space<vmem>>, %arg4: memref<64x128xf32, #tpu.memory_space<vmem>>, %arg5: memref<1x2x128xf32, #tpu.memory_space<vmem>>) attributes {dimension_semantics = [#tpu.dimension_semantics<parallel>, #tpu.dimension_semantics<parallel>], iteration_bounds = array<i64: 2, 1>, scalar_prefetch = 0 : i64, scratch_operands = 0 : i64, tpu.core_type = #tpu.core_type<tc>, window_params = [{transform_indices = @transform_0, window_bounds = array<i64: 4, 9, 9, 128>}, {transform_indices = @transform_1, window_bounds = array<i64: 9, 128, 128>}, {transform_indices = @transform_2, window_bounds = array<i64: 64, 128>}, {transform_indices = @transform_3, window_bounds = array<i64: 1, 2, 128>}]} {
    %cst = arith.constant 0.000000e+00 : f32
    %0 = vector.broadcast %cst : f32 to vector<64x128xf32>
    %c0 = arith.constant 0 : index
    %c0_0 = arith.constant 0 : index
    %c0_1 = arith.constant 0 : index
    %c0_2 = arith.constant 0 : index
    %1 = vector.load %arg2[%c0, %c0_0, %c0_1, %c0_2] : memref<4x9x9x128xf32, #tpu.memory_space<vmem>>, vector<1x8x8x128xf32>
    %2 = vector.shape_cast %1 : vector<1x8x8x128xf32> to vector<8x8x128xf32>
    %3 = vector.shape_cast %2 : vector<8x8x128xf32> to vector<64x128xf32>
    %4 = arith.truncf %3 : vector<64x128xf32> to vector<64x128xbf16>
    %c0_3 = arith.constant 0 : index
    %c0_4 = arith.constant 0 : index
    %c0_5 = arith.constant 0 : index
    %5 = vector.load %arg3[%c0_3, %c0_4, %c0_5] : memref<9x128x128xbf16, #tpu.memory_space<vmem>>, vector<1x128x128xbf16>
    %6 = vector.shape_cast %5 : vector<1x128x128xbf16> to vector<128x128xbf16>
    %cst_6 = arith.constant dense<0.000000e+00> : vector<64x128xf32>
    %7 = tpu.matmul %4, %6, %cst_6 {dimension_numbers = #tpu.dot_dimension_numbers<[1], [0], [0], [1], [0, 0, 1, 1], [], []>} : vector<64x128xbf16>, vector<128x128xbf16>, vector<64x128xf32> -> vector<64x128xf32>
    %8 = arith.addf %0, %7 : vector<64x128xf32>
    %c1 = arith.constant 1 : index
    %c0_7 = arith.constant 0 : index
    %c0_8 = arith.constant 0 : index
    %c0_9 = arith.constant 0 : index
    %9 = vector.load %arg2[%c1, %c0_7, %c0_8, %c0_9] : memref<4x9x9x128xf32, #tpu.memory_space<vmem>>, vector<1x8x8x128xf32>
    %10 = vector.shape_cast %9 : vector<1x8x8x128xf32> to vector<8x8x128xf32>
    %11 = vector.shape_cast %10 : vector<8x8x128xf32> to vector<64x128xf32>
    %12 = arith.truncf %11 : vector<64x128xf32> to vector<64x128xbf16>
    %c1_10 = arith.constant 1 : index
    %c0_11 = arith.constant 0 : index
    %c0_12 = arith.constant 0 : index
    %13 = vector.load %arg3[%c1_10, %c0_11, %c0_12] : memref<9x128x128xbf16, #tpu.memory_space<vmem>>, vector<1x128x128xbf16>
    %14 = vector.shape_cast %13 : vector<1x128x128xbf16> to vector<128x128xbf16>
    %cst_13 = arith.constant dense<0.000000e+00> : vector<64x128xf32>
    %15 = tpu.matmul %12, %14, %cst_13 {dimension_numbers = #tpu.dot_dimension_numbers<[1], [0], [0], [1], [0, 0, 1, 1], [], []>} : vector<64x128xbf16>, vector<128x128xbf16>, vector<64x128xf32> -> vector<64x128xf32>
    %16 = arith.addf %8, %15 : vector<64x128xf32>
    %c0_14 = arith.constant 0 : index
    %c0_15 = arith.constant 0 : index
    %c1_16 = arith.constant 1 : index
    %c0_17 = arith.constant 0 : index
    %17 = vector.load %arg2[%c0_14, %c0_15, %c1_16, %c0_17] : memref<4x9x9x128xf32, #tpu.memory_space<vmem>>, vector<1x8x8x128xf32>
    %18 = vector.shape_cast %17 : vector<1x8x8x128xf32> to vector<8x8x128xf32>
    %19 = vector.shape_cast %18 : vector<8x8x128xf32> to vector<64x128xf32>
    %20 = arith.truncf %19 : vector<64x128xf32> to vector<64x128xbf16>
    %c2 = arith.constant 2 : index
    %c0_18 = arith.constant 0 : index
    %c0_19 = arith.constant 0 : index
    %21 = vector.load %arg3[%c2, %c0_18, %c0_19] : memref<9x128x128xbf16, #tpu.memory_space<vmem>>, vector<1x128x128xbf16>
    %22 = vector.shape_cast %21 : vector<1x128x128xbf16> to vector<128x128xbf16>
    %cst_20 = arith.constant dense<0.000000e+00> : vector<64x128xf32>
    %23 = tpu.matmul %20, %22, %cst_20 {dimension_numbers = #tpu.dot_dimension_numbers<[1], [0], [0], [1], [0, 0, 1, 1], [], []>} : vector<64x128xbf16>, vector<128x128xbf16>, vector<64x128xf32> -> vector<64x128xf32>
    %24 = arith.addf %16, %23 : vector<64x128xf32>
    %c2_21 = arith.constant 2 : index
    %c0_22 = arith.constant 0 : index
    %c0_23 = arith.constant 0 : index
    %c0_24 = arith.constant 0 : index
    %25 = vector.load %arg2[%c2_21, %c0_22, %c0_23, %c0_24] : memref<4x9x9x128xf32, #tpu.memory_space<vmem>>, vector<1x8x8x128xf32>
    %26 = vector.shape_cast %25 : vector<1x8x8x128xf32> to vector<8x8x128xf32>
    %27 = vector.shape_cast %26 : vector<8x8x128xf32> to vector<64x128xf32>
    %28 = arith.truncf %27 : vector<64x128xf32> to vector<64x128xbf16>
    %c3 = arith.constant 3 : index
    %c0_25 = arith.constant 0 : index
    %c0_26 = arith.constant 0 : index
    %29 = vector.load %arg3[%c3, %c0_25, %c0_26] : memref<9x128x128xbf16, #tpu.memory_space<vmem>>, vector<1x128x128xbf16>
    %30 = vector.shape_cast %29 : vector<1x128x128xbf16> to vector<128x128xbf16>
    %cst_27 = arith.constant dense<0.000000e+00> : vector<64x128xf32>
    %31 = tpu.matmul %28, %30, %cst_27 {dimension_numbers = #tpu.dot_dimension_numbers<[1], [0], [0], [1], [0, 0, 1, 1], [], []>} : vector<64x128xbf16>, vector<128x128xbf16>, vector<64x128xf32> -> vector<64x128xf32>
    %32 = arith.addf %24, %31 : vector<64x128xf32>
    %c3_28 = arith.constant 3 : index
    %c0_29 = arith.constant 0 : index
    %c0_30 = arith.constant 0 : index
    %c0_31 = arith.constant 0 : index
    %33 = vector.load %arg2[%c3_28, %c0_29, %c0_30, %c0_31] : memref<4x9x9x128xf32, #tpu.memory_space<vmem>>, vector<1x8x8x128xf32>
    %34 = vector.shape_cast %33 : vector<1x8x8x128xf32> to vector<8x8x128xf32>
    %35 = vector.shape_cast %34 : vector<8x8x128xf32> to vector<64x128xf32>
    %36 = arith.truncf %35 : vector<64x128xf32> to vector<64x128xbf16>
    %c4 = arith.constant 4 : index
    %c0_32 = arith.constant 0 : index
    %c0_33 = arith.constant 0 : index
    %37 = vector.load %arg3[%c4, %c0_32, %c0_33] : memref<9x128x128xbf16, #tpu.memory_space<vmem>>, vector<1x128x128xbf16>
    %38 = vector.shape_cast %37 : vector<1x128x128xbf16> to vector<128x128xbf16>
    %cst_34 = arith.constant dense<0.000000e+00> : vector<64x128xf32>
    %39 = tpu.matmul %36, %38, %cst_34 {dimension_numbers = #tpu.dot_dimension_numbers<[1], [0], [0], [1], [0, 0, 1, 1], [], []>} : vector<64x128xbf16>, vector<128x128xbf16>, vector<64x128xf32> -> vector<64x128xf32>
    %40 = arith.addf %32, %39 : vector<64x128xf32>
    %c2_35 = arith.constant 2 : index
    %c0_36 = arith.constant 0 : index
    %c1_37 = arith.constant 1 : index
    %c0_38 = arith.constant 0 : index
    %41 = vector.load %arg2[%c2_35, %c0_36, %c1_37, %c0_38] : memref<4x9x9x128xf32, #tpu.memory_space<vmem>>, vector<1x8x8x128xf32>
    %42 = vector.shape_cast %41 : vector<1x8x8x128xf32> to vector<8x8x128xf32>
    %43 = vector.shape_cast %42 : vector<8x8x128xf32> to vector<64x128xf32>
    %44 = arith.truncf %43 : vector<64x128xf32> to vector<64x128xbf16>
    %c5 = arith.constant 5 : index
    %c0_39 = arith.constant 0 : index
    %c0_40 = arith.constant 0 : index
    %45 = vector.load %arg3[%c5, %c0_39, %c0_40] : memref<9x128x128xbf16, #tpu.memory_space<vmem>>, vector<1x128x128xbf16>
    %46 = vector.shape_cast %45 : vector<1x128x128xbf16> to vector<128x128xbf16>
    %cst_41 = arith.constant dense<0.000000e+00> : vector<64x128xf32>
    %47 = tpu.matmul %44, %46, %cst_41 {dimension_numbers = #tpu.dot_dimension_numbers<[1], [0], [0], [1], [0, 0, 1, 1], [], []>} : vector<64x128xbf16>, vector<128x128xbf16>, vector<64x128xf32> -> vector<64x128xf32>
    %48 = arith.addf %40, %47 : vector<64x128xf32>
    %c0_42 = arith.constant 0 : index
    %c1_43 = arith.constant 1 : index
    %c0_44 = arith.constant 0 : index
    %c0_45 = arith.constant 0 : index
    %49 = vector.load %arg2[%c0_42, %c1_43, %c0_44, %c0_45] : memref<4x9x9x128xf32, #tpu.memory_space<vmem>>, vector<1x8x8x128xf32>
    %50 = vector.shape_cast %49 : vector<1x8x8x128xf32> to vector<8x8x128xf32>
    %51 = vector.shape_cast %50 : vector<8x8x128xf32> to vector<64x128xf32>
    %52 = arith.truncf %51 : vector<64x128xf32> to vector<64x128xbf16>
    %c6 = arith.constant 6 : index
    %c0_46 = arith.constant 0 : index
    %c0_47 = arith.constant 0 : index
    %53 = vector.load %arg3[%c6, %c0_46, %c0_47] : memref<9x128x128xbf16, #tpu.memory_space<vmem>>, vector<1x128x128xbf16>
    %54 = vector.shape_cast %53 : vector<1x128x128xbf16> to vector<128x128xbf16>
    %cst_48 = arith.constant dense<0.000000e+00> : vector<64x128xf32>
    %55 = tpu.matmul %52, %54, %cst_48 {dimension_numbers = #tpu.dot_dimension_numbers<[1], [0], [0], [1], [0, 0, 1, 1], [], []>} : vector<64x128xbf16>, vector<128x128xbf16>, vector<64x128xf32> -> vector<64x128xf32>
    %56 = arith.addf %48, %55 : vector<64x128xf32>
    %c1_49 = arith.constant 1 : index
    %c1_50 = arith.constant 1 : index
    %c0_51 = arith.constant 0 : index
    %c0_52 = arith.constant 0 : index
    %57 = vector.load %arg2[%c1_49, %c1_50, %c0_51, %c0_52] : memref<4x9x9x128xf32, #tpu.memory_space<vmem>>, vector<1x8x8x128xf32>
    %58 = vector.shape_cast %57 : vector<1x8x8x128xf32> to vector<8x8x128xf32>
    %59 = vector.shape_cast %58 : vector<8x8x128xf32> to vector<64x128xf32>
    %60 = arith.truncf %59 : vector<64x128xf32> to vector<64x128xbf16>
    %c7 = arith.constant 7 : index
    %c0_53 = arith.constant 0 : index
    %c0_54 = arith.constant 0 : index
    %61 = vector.load %arg3[%c7, %c0_53, %c0_54] : memref<9x128x128xbf16, #tpu.memory_space<vmem>>, vector<1x128x128xbf16>
    %62 = vector.shape_cast %61 : vector<1x128x128xbf16> to vector<128x128xbf16>
    %cst_55 = arith.constant dense<0.000000e+00> : vector<64x128xf32>
    %63 = tpu.matmul %60, %62, %cst_55 {dimension_numbers = #tpu.dot_dimension_numbers<[1], [0], [0], [1], [0, 0, 1, 1], [], []>} : vector<64x128xbf16>, vector<128x128xbf16>, vector<64x128xf32> -> vector<64x128xf32>
    %64 = arith.addf %56, %63 : vector<64x128xf32>
    %c0_56 = arith.constant 0 : index
    %c1_57 = arith.constant 1 : index
    %c1_58 = arith.constant 1 : index
    %c0_59 = arith.constant 0 : index
    %65 = vector.load %arg2[%c0_56, %c1_57, %c1_58, %c0_59] : memref<4x9x9x128xf32, #tpu.memory_space<vmem>>, vector<1x8x8x128xf32>
    %66 = vector.shape_cast %65 : vector<1x8x8x128xf32> to vector<8x8x128xf32>
    %67 = vector.shape_cast %66 : vector<8x8x128xf32> to vector<64x128xf32>
    %68 = arith.truncf %67 : vector<64x128xf32> to vector<64x128xbf16>
    %c8 = arith.constant 8 : index
    %c0_60 = arith.constant 0 : index
    %c0_61 = arith.constant 0 : index
    %69 = vector.load %arg3[%c8, %c0_60, %c0_61] : memref<9x128x128xbf16, #tpu.memory_space<vmem>>, vector<1x128x128xbf16>
    %70 = vector.shape_cast %69 : vector<1x128x128xbf16> to vector<128x128xbf16>
    %cst_62 = arith.constant dense<0.000000e+00> : vector<64x128xf32>
    %71 = tpu.matmul %68, %70, %cst_62 {dimension_numbers = #tpu.dot_dimension_numbers<[1], [0], [0], [1], [0, 0, 1, 1], [], []>} : vector<64x128xbf16>, vector<128x128xbf16>, vector<64x128xf32> -> vector<64x128xf32>
    %72 = arith.addf %64, %71 : vector<64x128xf32>
    %c0_63 = arith.constant 0 : index
    %c0_64 = arith.constant 0 : index
    %73 = vector.load %arg4[%c0_63, %c0_64] : memref<64x128xf32, #tpu.memory_space<vmem>>, vector<64x128xf32>
    tpu.vector_store %arg4[%c0_63, %c0_64], %72 {strides = array<i32>} : memref<64x128xf32, #tpu.memory_space<vmem>>, vector<64x128xf32>,
    %cst_65 = arith.constant dense<0.000000e+00> : vector<128xf32>
    %74 = vector.multi_reduction <add>, %72, %cst_65 [0] : vector<64x128xf32> to vector<128xf32>
    %75 = vector.shape_cast %74 : vector<128xf32> to vector<1x128xf32>
    %76 = arith.mulf %72, %72 : vector<64x128xf32>
    %cst_66 = arith.constant dense<0.000000e+00> : vector<128xf32>
    %77 = vector.multi_reduction <add>, %76, %cst_66 [0] : vector<64x128xf32> to vector<128xf32>
    %78 = vector.shape_cast %77 : vector<128xf32> to vector<1x128xf32>
    %79 = tpu.concatenate %75, %78 in 0 : vector<1x128xf32>, vector<1x128xf32> -> vector<2x128xf32>
    %c0_67 = arith.constant 0 : index
    %c0_68 = arith.constant 0 : index
    %c0_69 = arith.constant 0 : index
    %80 = vector.load %arg5[%c0_67, %c0_68, %c0_69] : memref<1x2x128xf32, #tpu.memory_space<vmem>>, vector<1x2x128xf32>
    %81 = vector.shape_cast %80 : vector<1x2x128xf32> to vector<2x128xf32>
    %82 = vector.shape_cast %79 : vector<2x128xf32> to vector<1x2x128xf32>
    tpu.vector_store %arg5[%c0_67, %c0_68, %c0_69], %82 {strides = array<i32>} : memref<1x2x128xf32, #tpu.memory_space<vmem>>, vector<1x2x128xf32>,
    return
  }
  func.func @transform_0(%arg0: i32, %arg1: i32) -> (i32, i32, i32, i32) {
    %c0_i32 = arith.constant 0 : i32
    %c0_i32_0 = arith.constant 0 : i32
    %c0_i32_1 = arith.constant 0 : i32
    %c0_i32_2 = arith.constant 0 : i32
    return %arg0, %c0_i32, %c0_i32_0, %c0_i32_1 : i32, i32, i32, i32
  }
  func.func @transform_1(%arg0: i32, %arg1: i32) -> (i32, i32, i32) {
    %c0_i32 = arith.constant 0 : i32
    %c0_i32_0 = arith.constant 0 : i32
    %c0_i32_1 = arith.constant 0 : i32
    return %c0_i32, %c0_i32_0, %arg1 : i32, i32, i32
  }
  func.func @transform_2(%arg0: i32, %arg1: i32) -> (i32, i32) {
    %c0_i32 = arith.constant 0 : i32
    return %arg0, %arg1 : i32, i32
  }
  func.func @transform_3(%arg0: i32, %arg1: i32) -> (i32, i32, i32) {
    %c0_i32 = arith.constant 0 : i32
    %c0_i32_0 = arith.constant 0 : i32
    return %arg0, %c0_i32, %arg1 : i32, i32, i32
  }
}

module attributes {stable_mosaic.version = 11 : i64} {
  func.func @_bn_stats_kernel(%arg0: i32, %arg1: memref<128x128xf32, #tpu.memory_space<vmem>>, %arg2: memref<2x128xf32, #tpu.memory_space<vmem>>, %arg3: memref<2x128xf32, #tpu.memory_space<vmem>>) attributes {dimension_semantics = [#tpu.dimension_semantics<arbitrary>], iteration_bounds = array<i64: 1>, scalar_prefetch = 0 : i64, scratch_operands = 1 : i64, tpu.core_type = #tpu.core_type<tc>, window_params = [{transform_indices = @transform_0, window_bounds = array<i64: 128, 128>}, {pipeline_mode = #tpu.pipeline_mode<synchronous>, transform_indices = @transform_1, window_bounds = array<i64: 2, 128>}]} {
    %c0_i32 = arith.constant 0 : i32
    %0 = arith.cmpi eq, %arg0, %c0_i32 : i32
    %1 = arith.extui %0 : i1 to i32
    %c0_i32_0 = arith.constant 0 : i32
    %2 = arith.cmpi ne, %1, %c0_i32_0 : i32
    scf.if %2 {
      %cst_9 = arith.constant 0.000000e+00 : f32
      %16 = vector.broadcast %cst_9 : f32 to vector<2x128xf32>
      %c0_10 = arith.constant 0 : index
      %c0_11 = arith.constant 0 : index
      %17 = vector.load %arg3[%c0_10, %c0_11] : memref<2x128xf32, #tpu.memory_space<vmem>>, vector<2x128xf32>
      tpu.vector_store %arg3[%c0_10, %c0_11], %16 {strides = array<i32>} : memref<2x128xf32, #tpu.memory_space<vmem>>, vector<2x128xf32>,
    } else {
    }
    %c0 = arith.constant 0 : index
    %c0_1 = arith.constant 0 : index
    %3 = vector.load %arg1[%c0, %c0_1] : memref<128x128xf32, #tpu.memory_space<vmem>>, vector<128x128xf32>
    %c0_2 = arith.constant 0 : index
    %c0_3 = arith.constant 0 : index
    %4 = vector.load %arg3[%c0_2, %c0_3] : memref<2x128xf32, #tpu.memory_space<vmem>>, vector<2x128xf32>
    %cst = arith.constant dense<0.000000e+00> : vector<128xf32>
    %5 = vector.multi_reduction <add>, %3, %cst [0] : vector<128x128xf32> to vector<128xf32>
    %6 = vector.shape_cast %5 : vector<128xf32> to vector<1x128xf32>
    %7 = arith.mulf %3, %3 : vector<128x128xf32>
    %cst_4 = arith.constant dense<0.000000e+00> : vector<128xf32>
    %8 = vector.multi_reduction <add>, %7, %cst_4 [0] : vector<128x128xf32> to vector<128xf32>
    %9 = vector.shape_cast %8 : vector<128xf32> to vector<1x128xf32>
    %10 = tpu.concatenate %6, %9 in 0 : vector<1x128xf32>, vector<1x128xf32> -> vector<2x128xf32>
    %11 = arith.addf %4, %10 : vector<2x128xf32>
    %c0_5 = arith.constant 0 : index
    %c0_6 = arith.constant 0 : index
    %12 = vector.load %arg3[%c0_5, %c0_6] : memref<2x128xf32, #tpu.memory_space<vmem>>, vector<2x128xf32>
    tpu.vector_store %arg3[%c0_5, %c0_6], %11 {strides = array<i32>} : memref<2x128xf32, #tpu.memory_space<vmem>>, vector<2x128xf32>,
    %c0_i32_7 = arith.constant 0 : i32
    %13 = arith.cmpi eq, %arg0, %c0_i32_7 : i32
    %14 = arith.extui %13 : i1 to i32
    %c0_i32_8 = arith.constant 0 : i32
    %15 = arith.cmpi ne, %14, %c0_i32_8 : i32
    scf.if %15 {
      %c0_9 = arith.constant 0 : index
      %c0_10 = arith.constant 0 : index
      %16 = vector.load %arg3[%c0_9, %c0_10] : memref<2x128xf32, #tpu.memory_space<vmem>>, vector<2x128xf32>
      %c0_11 = arith.constant 0 : index
      %c0_12 = arith.constant 0 : index
      %17 = vector.load %arg2[%c0_11, %c0_12] : memref<2x128xf32, #tpu.memory_space<vmem>>, vector<2x128xf32>
      tpu.vector_store %arg2[%c0_11, %c0_12], %16 {strides = array<i32>} : memref<2x128xf32, #tpu.memory_space<vmem>>, vector<2x128xf32>,
    } else {
    }
    return
  }
  func.func @transform_0(%arg0: i32) -> (i32, i32) {
    %c0_i32 = arith.constant 0 : i32
    %c0_i32_0 = arith.constant 0 : i32
    return %arg0, %c0_i32 : i32, i32
  }
  func.func @transform_1(%arg0: i32) -> (i32, i32) {
    %c0_i32 = arith.constant 0 : i32
    %c0_i32_0 = arith.constant 0 : i32
    %c0_i32_1 = arith.constant 0 : i32
    return %c0_i32, %c0_i32_0 : i32, i32
  }
}

module attributes {stable_mosaic.version = 11 : i64} {
  func.func @_conv3x3_kernel(%arg0: i32, %arg1: i32, %arg2: memref<1x10x10x128xf32, #tpu.memory_space<vmem>>, %arg3: memref<9x128x128xbf16, #tpu.memory_space<vmem>>, %arg4: memref<1x128xf32, #tpu.memory_space<vmem>>, %arg5: memref<1x128xf32, #tpu.memory_space<vmem>>, %arg6: memref<64x128xf32, #tpu.memory_space<vmem>>, %arg7: memref<1x128xf32, #tpu.memory_space<vmem>>, %arg8: memref<1x128xf32, #tpu.memory_space<vmem>>, %arg9: memref<64x128xf32, #tpu.memory_space<vmem>>) attributes {dimension_semantics = [#tpu.dimension_semantics<parallel>, #tpu.dimension_semantics<parallel>], iteration_bounds = array<i64: 2, 1>, scalar_prefetch = 0 : i64, scratch_operands = 0 : i64, tpu.core_type = #tpu.core_type<tc>, window_params = [{transform_indices = @transform_0, window_bounds = array<i64: 1, 10, 10, 128>}, {transform_indices = @transform_1, window_bounds = array<i64: 9, 128, 128>}, {pipeline_mode = #tpu.pipeline_mode<synchronous>, transform_indices = @transform_2, window_bounds = array<i64: 1, 128>}, {pipeline_mode = #tpu.pipeline_mode<synchronous>, transform_indices = @transform_3, window_bounds = array<i64: 1, 128>}, {transform_indices = @transform_4, window_bounds = array<i64: 64, 128>}, {transform_indices = @transform_5, window_bounds = array<i64: 1, 128>}, {transform_indices = @transform_6, window_bounds = array<i64: 1, 128>}, {transform_indices = @transform_7, window_bounds = array<i64: 64, 128>}]} {
    %cst = arith.constant 0.000000e+00 : f32
    %0 = vector.broadcast %cst : f32 to vector<64x128xf32>
    %c0 = arith.constant 0 : index
    %c0_0 = arith.constant 0 : index
    %c0_1 = arith.constant 0 : index
    %c0_2 = arith.constant 0 : index
    %1 = vector.load %arg2[%c0, %c0_0, %c0_1, %c0_2] : memref<1x10x10x128xf32, #tpu.memory_space<vmem>>, vector<1x8x8x128xf32>
    %2 = vector.shape_cast %1 : vector<1x8x8x128xf32> to vector<8x8x128xf32>
    %3 = vector.shape_cast %2 : vector<8x8x128xf32> to vector<64x128xf32>
    %c0_3 = arith.constant 0 : index
    %c0_4 = arith.constant 0 : index
    %4 = vector.load %arg4[%c0_3, %c0_4] : memref<1x128xf32, #tpu.memory_space<vmem>>, vector<1x128xf32>
    %5 = vector.broadcast %4 : vector<1x128xf32> to vector<64x128xf32>
    %6 = arith.mulf %3, %5 : vector<64x128xf32>
    %c0_5 = arith.constant 0 : index
    %c0_6 = arith.constant 0 : index
    %7 = vector.load %arg5[%c0_5, %c0_6] : memref<1x128xf32, #tpu.memory_space<vmem>>, vector<1x128xf32>
    %8 = vector.broadcast %7 : vector<1x128xf32> to vector<64x128xf32>
    %9 = arith.addf %6, %8 : vector<64x128xf32>
    %cst_7 = arith.constant 0.000000e+00 : f32
    %10 = vector.broadcast %cst_7 : f32 to vector<64x128xf32>
    %11 = arith.maximumf %9, %10 : vector<64x128xf32>
    %12 = arith.truncf %11 : vector<64x128xf32> to vector<64x128xbf16>
    %c0_8 = arith.constant 0 : index
    %c0_9 = arith.constant 0 : index
    %c0_10 = arith.constant 0 : index
    %13 = vector.load %arg3[%c0_8, %c0_9, %c0_10] : memref<9x128x128xbf16, #tpu.memory_space<vmem>>, vector<1x128x128xbf16>
    %14 = vector.shape_cast %13 : vector<1x128x128xbf16> to vector<128x128xbf16>
    %cst_11 = arith.constant dense<0.000000e+00> : vector<64x128xf32>
    %15 = tpu.matmul %12, %14, %cst_11 {dimension_numbers = #tpu.dot_dimension_numbers<[1], [0], [0], [1], [0, 0, 1, 1], [], []>} : vector<64x128xbf16>, vector<128x128xbf16>, vector<64x128xf32> -> vector<64x128xf32>
    %16 = arith.addf %0, %15 : vector<64x128xf32>
    %c0_12 = arith.constant 0 : index
    %c0_13 = arith.constant 0 : index
    %c1 = arith.constant 1 : index
    %c0_14 = arith.constant 0 : index
    %17 = vector.load %arg2[%c0_12, %c0_13, %c1, %c0_14] : memref<1x10x10x128xf32, #tpu.memory_space<vmem>>, vector<1x8x8x128xf32>
    %18 = vector.shape_cast %17 : vector<1x8x8x128xf32> to vector<8x8x128xf32>
    %19 = vector.shape_cast %18 : vector<8x8x128xf32> to vector<64x128xf32>
    %c0_15 = arith.constant 0 : index
    %c0_16 = arith.constant 0 : index
    %20 = vector.load %arg4[%c0_15, %c0_16] : memref<1x128xf32, #tpu.memory_space<vmem>>, vector<1x128xf32>
    %21 = vector.broadcast %20 : vector<1x128xf32> to vector<64x128xf32>
    %22 = arith.mulf %19, %21 : vector<64x128xf32>
    %c0_17 = arith.constant 0 : index
    %c0_18 = arith.constant 0 : index
    %23 = vector.load %arg5[%c0_17, %c0_18] : memref<1x128xf32, #tpu.memory_space<vmem>>, vector<1x128xf32>
    %24 = vector.broadcast %23 : vector<1x128xf32> to vector<64x128xf32>
    %25 = arith.addf %22, %24 : vector<64x128xf32>
    %cst_19 = arith.constant 0.000000e+00 : f32
    %26 = vector.broadcast %cst_19 : f32 to vector<64x128xf32>
    %27 = arith.maximumf %25, %26 : vector<64x128xf32>
    %28 = arith.truncf %27 : vector<64x128xf32> to vector<64x128xbf16>
    %c1_20 = arith.constant 1 : index
    %c0_21 = arith.constant 0 : index
    %c0_22 = arith.constant 0 : index
    %29 = vector.load %arg3[%c1_20, %c0_21, %c0_22] : memref<9x128x128xbf16, #tpu.memory_space<vmem>>, vector<1x128x128xbf16>
    %30 = vector.shape_cast %29 : vector<1x128x128xbf16> to vector<128x128xbf16>
    %cst_23 = arith.constant dense<0.000000e+00> : vector<64x128xf32>
    %31 = tpu.matmul %28, %30, %cst_23 {dimension_numbers = #tpu.dot_dimension_numbers<[1], [0], [0], [1], [0, 0, 1, 1], [], []>} : vector<64x128xbf16>, vector<128x128xbf16>, vector<64x128xf32> -> vector<64x128xf32>
    %32 = arith.addf %16, %31 : vector<64x128xf32>
    %c0_24 = arith.constant 0 : index
    %c0_25 = arith.constant 0 : index
    %c2 = arith.constant 2 : index
    %c0_26 = arith.constant 0 : index
    %33 = vector.load %arg2[%c0_24, %c0_25, %c2, %c0_26] : memref<1x10x10x128xf32, #tpu.memory_space<vmem>>, vector<1x8x8x128xf32>
    %34 = vector.shape_cast %33 : vector<1x8x8x128xf32> to vector<8x8x128xf32>
    %35 = vector.shape_cast %34 : vector<8x8x128xf32> to vector<64x128xf32>
    %c0_27 = arith.constant 0 : index
    %c0_28 = arith.constant 0 : index
    %36 = vector.load %arg4[%c0_27, %c0_28] : memref<1x128xf32, #tpu.memory_space<vmem>>, vector<1x128xf32>
    %37 = vector.broadcast %36 : vector<1x128xf32> to vector<64x128xf32>
    %38 = arith.mulf %35, %37 : vector<64x128xf32>
    %c0_29 = arith.constant 0 : index
    %c0_30 = arith.constant 0 : index
    %39 = vector.load %arg5[%c0_29, %c0_30] : memref<1x128xf32, #tpu.memory_space<vmem>>, vector<1x128xf32>
    %40 = vector.broadcast %39 : vector<1x128xf32> to vector<64x128xf32>
    %41 = arith.addf %38, %40 : vector<64x128xf32>
    %cst_31 = arith.constant 0.000000e+00 : f32
    %42 = vector.broadcast %cst_31 : f32 to vector<64x128xf32>
    %43 = arith.maximumf %41, %42 : vector<64x128xf32>
    %44 = arith.truncf %43 : vector<64x128xf32> to vector<64x128xbf16>
    %c2_32 = arith.constant 2 : index
    %c0_33 = arith.constant 0 : index
    %c0_34 = arith.constant 0 : index
    %45 = vector.load %arg3[%c2_32, %c0_33, %c0_34] : memref<9x128x128xbf16, #tpu.memory_space<vmem>>, vector<1x128x128xbf16>
    %46 = vector.shape_cast %45 : vector<1x128x128xbf16> to vector<128x128xbf16>
    %cst_35 = arith.constant dense<0.000000e+00> : vector<64x128xf32>
    %47 = tpu.matmul %44, %46, %cst_35 {dimension_numbers = #tpu.dot_dimension_numbers<[1], [0], [0], [1], [0, 0, 1, 1], [], []>} : vector<64x128xbf16>, vector<128x128xbf16>, vector<64x128xf32> -> vector<64x128xf32>
    %48 = arith.addf %32, %47 : vector<64x128xf32>
    %c0_36 = arith.constant 0 : index
    %c1_37 = arith.constant 1 : index
    %c0_38 = arith.constant 0 : index
    %c0_39 = arith.constant 0 : index
    %49 = vector.load %arg2[%c0_36, %c1_37, %c0_38, %c0_39] : memref<1x10x10x128xf32, #tpu.memory_space<vmem>>, vector<1x8x8x128xf32>
    %50 = vector.shape_cast %49 : vector<1x8x8x128xf32> to vector<8x8x128xf32>
    %51 = vector.shape_cast %50 : vector<8x8x128xf32> to vector<64x128xf32>
    %c0_40 = arith.constant 0 : index
    %c0_41 = arith.constant 0 : index
    %52 = vector.load %arg4[%c0_40, %c0_41] : memref<1x128xf32, #tpu.memory_space<vmem>>, vector<1x128xf32>
    %53 = vector.broadcast %52 : vector<1x128xf32> to vector<64x128xf32>
    %54 = arith.mulf %51, %53 : vector<64x128xf32>
    %c0_42 = arith.constant 0 : index
    %c0_43 = arith.constant 0 : index
    %55 = vector.load %arg5[%c0_42, %c0_43] : memref<1x128xf32, #tpu.memory_space<vmem>>, vector<1x128xf32>
    %56 = vector.broadcast %55 : vector<1x128xf32> to vector<64x128xf32>
    %57 = arith.addf %54, %56 : vector<64x128xf32>
    %cst_44 = arith.constant 0.000000e+00 : f32
    %58 = vector.broadcast %cst_44 : f32 to vector<64x128xf32>
    %59 = arith.maximumf %57, %58 : vector<64x128xf32>
    %60 = arith.truncf %59 : vector<64x128xf32> to vector<64x128xbf16>
    %c3 = arith.constant 3 : index
    %c0_45 = arith.constant 0 : index
    %c0_46 = arith.constant 0 : index
    %61 = vector.load %arg3[%c3, %c0_45, %c0_46] : memref<9x128x128xbf16, #tpu.memory_space<vmem>>, vector<1x128x128xbf16>
    %62 = vector.shape_cast %61 : vector<1x128x128xbf16> to vector<128x128xbf16>
    %cst_47 = arith.constant dense<0.000000e+00> : vector<64x128xf32>
    %63 = tpu.matmul %60, %62, %cst_47 {dimension_numbers = #tpu.dot_dimension_numbers<[1], [0], [0], [1], [0, 0, 1, 1], [], []>} : vector<64x128xbf16>, vector<128x128xbf16>, vector<64x128xf32> -> vector<64x128xf32>
    %64 = arith.addf %48, %63 : vector<64x128xf32>
    %c0_48 = arith.constant 0 : index
    %c1_49 = arith.constant 1 : index
    %c1_50 = arith.constant 1 : index
    %c0_51 = arith.constant 0 : index
    %65 = vector.load %arg2[%c0_48, %c1_49, %c1_50, %c0_51] : memref<1x10x10x128xf32, #tpu.memory_space<vmem>>, vector<1x8x8x128xf32>
    %66 = vector.shape_cast %65 : vector<1x8x8x128xf32> to vector<8x8x128xf32>
    %67 = vector.shape_cast %66 : vector<8x8x128xf32> to vector<64x128xf32>
    %c0_52 = arith.constant 0 : index
    %c0_53 = arith.constant 0 : index
    %68 = vector.load %arg4[%c0_52, %c0_53] : memref<1x128xf32, #tpu.memory_space<vmem>>, vector<1x128xf32>
    %69 = vector.broadcast %68 : vector<1x128xf32> to vector<64x128xf32>
    %70 = arith.mulf %67, %69 : vector<64x128xf32>
    %c0_54 = arith.constant 0 : index
    %c0_55 = arith.constant 0 : index
    %71 = vector.load %arg5[%c0_54, %c0_55] : memref<1x128xf32, #tpu.memory_space<vmem>>, vector<1x128xf32>
    %72 = vector.broadcast %71 : vector<1x128xf32> to vector<64x128xf32>
    %73 = arith.addf %70, %72 : vector<64x128xf32>
    %cst_56 = arith.constant 0.000000e+00 : f32
    %74 = vector.broadcast %cst_56 : f32 to vector<64x128xf32>
    %75 = arith.maximumf %73, %74 : vector<64x128xf32>
    %76 = arith.truncf %75 : vector<64x128xf32> to vector<64x128xbf16>
    %c4 = arith.constant 4 : index
    %c0_57 = arith.constant 0 : index
    %c0_58 = arith.constant 0 : index
    %77 = vector.load %arg3[%c4, %c0_57, %c0_58] : memref<9x128x128xbf16, #tpu.memory_space<vmem>>, vector<1x128x128xbf16>
    %78 = vector.shape_cast %77 : vector<1x128x128xbf16> to vector<128x128xbf16>
    %cst_59 = arith.constant dense<0.000000e+00> : vector<64x128xf32>
    %79 = tpu.matmul %76, %78, %cst_59 {dimension_numbers = #tpu.dot_dimension_numbers<[1], [0], [0], [1], [0, 0, 1, 1], [], []>} : vector<64x128xbf16>, vector<128x128xbf16>, vector<64x128xf32> -> vector<64x128xf32>
    %80 = arith.addf %64, %79 : vector<64x128xf32>
    %c0_60 = arith.constant 0 : index
    %c1_61 = arith.constant 1 : index
    %c2_62 = arith.constant 2 : index
    %c0_63 = arith.constant 0 : index
    %81 = vector.load %arg2[%c0_60, %c1_61, %c2_62, %c0_63] : memref<1x10x10x128xf32, #tpu.memory_space<vmem>>, vector<1x8x8x128xf32>
    %82 = vector.shape_cast %81 : vector<1x8x8x128xf32> to vector<8x8x128xf32>
    %83 = vector.shape_cast %82 : vector<8x8x128xf32> to vector<64x128xf32>
    %c0_64 = arith.constant 0 : index
    %c0_65 = arith.constant 0 : index
    %84 = vector.load %arg4[%c0_64, %c0_65] : memref<1x128xf32, #tpu.memory_space<vmem>>, vector<1x128xf32>
    %85 = vector.broadcast %84 : vector<1x128xf32> to vector<64x128xf32>
    %86 = arith.mulf %83, %85 : vector<64x128xf32>
    %c0_66 = arith.constant 0 : index
    %c0_67 = arith.constant 0 : index
    %87 = vector.load %arg5[%c0_66, %c0_67] : memref<1x128xf32, #tpu.memory_space<vmem>>, vector<1x128xf32>
    %88 = vector.broadcast %87 : vector<1x128xf32> to vector<64x128xf32>
    %89 = arith.addf %86, %88 : vector<64x128xf32>
    %cst_68 = arith.constant 0.000000e+00 : f32
    %90 = vector.broadcast %cst_68 : f32 to vector<64x128xf32>
    %91 = arith.maximumf %89, %90 : vector<64x128xf32>
    %92 = arith.truncf %91 : vector<64x128xf32> to vector<64x128xbf16>
    %c5 = arith.constant 5 : index
    %c0_69 = arith.constant 0 : index
    %c0_70 = arith.constant 0 : index
    %93 = vector.load %arg3[%c5, %c0_69, %c0_70] : memref<9x128x128xbf16, #tpu.memory_space<vmem>>, vector<1x128x128xbf16>
    %94 = vector.shape_cast %93 : vector<1x128x128xbf16> to vector<128x128xbf16>
    %cst_71 = arith.constant dense<0.000000e+00> : vector<64x128xf32>
    %95 = tpu.matmul %92, %94, %cst_71 {dimension_numbers = #tpu.dot_dimension_numbers<[1], [0], [0], [1], [0, 0, 1, 1], [], []>} : vector<64x128xbf16>, vector<128x128xbf16>, vector<64x128xf32> -> vector<64x128xf32>
    %96 = arith.addf %80, %95 : vector<64x128xf32>
    %c0_72 = arith.constant 0 : index
    %c2_73 = arith.constant 2 : index
    %c0_74 = arith.constant 0 : index
    %c0_75 = arith.constant 0 : index
    %97 = vector.load %arg2[%c0_72, %c2_73, %c0_74, %c0_75] : memref<1x10x10x128xf32, #tpu.memory_space<vmem>>, vector<1x8x8x128xf32>
    %98 = vector.shape_cast %97 : vector<1x8x8x128xf32> to vector<8x8x128xf32>
    %99 = vector.shape_cast %98 : vector<8x8x128xf32> to vector<64x128xf32>
    %c0_76 = arith.constant 0 : index
    %c0_77 = arith.constant 0 : index
    %100 = vector.load %arg4[%c0_76, %c0_77] : memref<1x128xf32, #tpu.memory_space<vmem>>, vector<1x128xf32>
    %101 = vector.broadcast %100 : vector<1x128xf32> to vector<64x128xf32>
    %102 = arith.mulf %99, %101 : vector<64x128xf32>
    %c0_78 = arith.constant 0 : index
    %c0_79 = arith.constant 0 : index
    %103 = vector.load %arg5[%c0_78, %c0_79] : memref<1x128xf32, #tpu.memory_space<vmem>>, vector<1x128xf32>
    %104 = vector.broadcast %103 : vector<1x128xf32> to vector<64x128xf32>
    %105 = arith.addf %102, %104 : vector<64x128xf32>
    %cst_80 = arith.constant 0.000000e+00 : f32
    %106 = vector.broadcast %cst_80 : f32 to vector<64x128xf32>
    %107 = arith.maximumf %105, %106 : vector<64x128xf32>
    %108 = arith.truncf %107 : vector<64x128xf32> to vector<64x128xbf16>
    %c6 = arith.constant 6 : index
    %c0_81 = arith.constant 0 : index
    %c0_82 = arith.constant 0 : index
    %109 = vector.load %arg3[%c6, %c0_81, %c0_82] : memref<9x128x128xbf16, #tpu.memory_space<vmem>>, vector<1x128x128xbf16>
    %110 = vector.shape_cast %109 : vector<1x128x128xbf16> to vector<128x128xbf16>
    %cst_83 = arith.constant dense<0.000000e+00> : vector<64x128xf32>
    %111 = tpu.matmul %108, %110, %cst_83 {dimension_numbers = #tpu.dot_dimension_numbers<[1], [0], [0], [1], [0, 0, 1, 1], [], []>} : vector<64x128xbf16>, vector<128x128xbf16>, vector<64x128xf32> -> vector<64x128xf32>
    %112 = arith.addf %96, %111 : vector<64x128xf32>
    %c0_84 = arith.constant 0 : index
    %c2_85 = arith.constant 2 : index
    %c1_86 = arith.constant 1 : index
    %c0_87 = arith.constant 0 : index
    %113 = vector.load %arg2[%c0_84, %c2_85, %c1_86, %c0_87] : memref<1x10x10x128xf32, #tpu.memory_space<vmem>>, vector<1x8x8x128xf32>
    %114 = vector.shape_cast %113 : vector<1x8x8x128xf32> to vector<8x8x128xf32>
    %115 = vector.shape_cast %114 : vector<8x8x128xf32> to vector<64x128xf32>
    %c0_88 = arith.constant 0 : index
    %c0_89 = arith.constant 0 : index
    %116 = vector.load %arg4[%c0_88, %c0_89] : memref<1x128xf32, #tpu.memory_space<vmem>>, vector<1x128xf32>
    %117 = vector.broadcast %116 : vector<1x128xf32> to vector<64x128xf32>
    %118 = arith.mulf %115, %117 : vector<64x128xf32>
    %c0_90 = arith.constant 0 : index
    %c0_91 = arith.constant 0 : index
    %119 = vector.load %arg5[%c0_90, %c0_91] : memref<1x128xf32, #tpu.memory_space<vmem>>, vector<1x128xf32>
    %120 = vector.broadcast %119 : vector<1x128xf32> to vector<64x128xf32>
    %121 = arith.addf %118, %120 : vector<64x128xf32>
    %cst_92 = arith.constant 0.000000e+00 : f32
    %122 = vector.broadcast %cst_92 : f32 to vector<64x128xf32>
    %123 = arith.maximumf %121, %122 : vector<64x128xf32>
    %124 = arith.truncf %123 : vector<64x128xf32> to vector<64x128xbf16>
    %c7 = arith.constant 7 : index
    %c0_93 = arith.constant 0 : index
    %c0_94 = arith.constant 0 : index
    %125 = vector.load %arg3[%c7, %c0_93, %c0_94] : memref<9x128x128xbf16, #tpu.memory_space<vmem>>, vector<1x128x128xbf16>
    %126 = vector.shape_cast %125 : vector<1x128x128xbf16> to vector<128x128xbf16>
    %cst_95 = arith.constant dense<0.000000e+00> : vector<64x128xf32>
    %127 = tpu.matmul %124, %126, %cst_95 {dimension_numbers = #tpu.dot_dimension_numbers<[1], [0], [0], [1], [0, 0, 1, 1], [], []>} : vector<64x128xbf16>, vector<128x128xbf16>, vector<64x128xf32> -> vector<64x128xf32>
    %128 = arith.addf %112, %127 : vector<64x128xf32>
    %c0_96 = arith.constant 0 : index
    %c2_97 = arith.constant 2 : index
    %c2_98 = arith.constant 2 : index
    %c0_99 = arith.constant 0 : index
    %129 = vector.load %arg2[%c0_96, %c2_97, %c2_98, %c0_99] : memref<1x10x10x128xf32, #tpu.memory_space<vmem>>, vector<1x8x8x128xf32>
    %130 = vector.shape_cast %129 : vector<1x8x8x128xf32> to vector<8x8x128xf32>
    %131 = vector.shape_cast %130 : vector<8x8x128xf32> to vector<64x128xf32>
    %c0_100 = arith.constant 0 : index
    %c0_101 = arith.constant 0 : index
    %132 = vector.load %arg4[%c0_100, %c0_101] : memref<1x128xf32, #tpu.memory_space<vmem>>, vector<1x128xf32>
    %133 = vector.broadcast %132 : vector<1x128xf32> to vector<64x128xf32>
    %134 = arith.mulf %131, %133 : vector<64x128xf32>
    %c0_102 = arith.constant 0 : index
    %c0_103 = arith.constant 0 : index
    %135 = vector.load %arg5[%c0_102, %c0_103] : memref<1x128xf32, #tpu.memory_space<vmem>>, vector<1x128xf32>
    %136 = vector.broadcast %135 : vector<1x128xf32> to vector<64x128xf32>
    %137 = arith.addf %134, %136 : vector<64x128xf32>
    %cst_104 = arith.constant 0.000000e+00 : f32
    %138 = vector.broadcast %cst_104 : f32 to vector<64x128xf32>
    %139 = arith.maximumf %137, %138 : vector<64x128xf32>
    %140 = arith.truncf %139 : vector<64x128xf32> to vector<64x128xbf16>
    %c8 = arith.constant 8 : index
    %c0_105 = arith.constant 0 : index
    %c0_106 = arith.constant 0 : index
    %141 = vector.load %arg3[%c8, %c0_105, %c0_106] : memref<9x128x128xbf16, #tpu.memory_space<vmem>>, vector<1x128x128xbf16>
    %142 = vector.shape_cast %141 : vector<1x128x128xbf16> to vector<128x128xbf16>
    %cst_107 = arith.constant dense<0.000000e+00> : vector<64x128xf32>
    %143 = tpu.matmul %140, %142, %cst_107 {dimension_numbers = #tpu.dot_dimension_numbers<[1], [0], [0], [1], [0, 0, 1, 1], [], []>} : vector<64x128xbf16>, vector<128x128xbf16>, vector<64x128xf32> -> vector<64x128xf32>
    %144 = arith.addf %128, %143 : vector<64x128xf32>
    %c0_108 = arith.constant 0 : index
    %c0_109 = arith.constant 0 : index
    %145 = vector.load %arg6[%c0_108, %c0_109] : memref<64x128xf32, #tpu.memory_space<vmem>>, vector<64x128xf32>
    %c0_110 = arith.constant 0 : index
    %c0_111 = arith.constant 0 : index
    %146 = vector.load %arg7[%c0_110, %c0_111] : memref<1x128xf32, #tpu.memory_space<vmem>>, vector<1x128xf32>
    %147 = vector.broadcast %146 : vector<1x128xf32> to vector<64x128xf32>
    %148 = arith.mulf %145, %147 : vector<64x128xf32>
    %149 = arith.addf %144, %148 : vector<64x128xf32>
    %c0_112 = arith.constant 0 : index
    %c0_113 = arith.constant 0 : index
    %150 = vector.load %arg8[%c0_112, %c0_113] : memref<1x128xf32, #tpu.memory_space<vmem>>, vector<1x128xf32>
    %151 = vector.broadcast %150 : vector<1x128xf32> to vector<64x128xf32>
    %152 = arith.addf %149, %151 : vector<64x128xf32>
    %c0_114 = arith.constant 0 : index
    %c0_115 = arith.constant 0 : index
    %153 = vector.load %arg9[%c0_114, %c0_115] : memref<64x128xf32, #tpu.memory_space<vmem>>, vector<64x128xf32>
    tpu.vector_store %arg9[%c0_114, %c0_115], %152 {strides = array<i32>} : memref<64x128xf32, #tpu.memory_space<vmem>>, vector<64x128xf32>,
    return
  }
  func.func @transform_0(%arg0: i32, %arg1: i32) -> (i32, i32, i32, i32) {
    %c0_i32 = arith.constant 0 : i32
    %c0_i32_0 = arith.constant 0 : i32
    %c0_i32_1 = arith.constant 0 : i32
    %c0_i32_2 = arith.constant 0 : i32
    return %arg0, %c0_i32, %c0_i32_0, %c0_i32_1 : i32, i32, i32, i32
  }
  func.func @transform_1(%arg0: i32, %arg1: i32) -> (i32, i32, i32) {
    %c0_i32 = arith.constant 0 : i32
    %c0_i32_0 = arith.constant 0 : i32
    %c0_i32_1 = arith.constant 0 : i32
    return %c0_i32, %c0_i32_0, %arg1 : i32, i32, i32
  }
  func.func @transform_2(%arg0: i32, %arg1: i32) -> (i32, i32) {
    %c0_i32 = arith.constant 0 : i32
    %c0_i32_0 = arith.constant 0 : i32
    %c0_i32_1 = arith.constant 0 : i32
    return %c0_i32, %c0_i32_0 : i32, i32
  }
  func.func @transform_3(%arg0: i32, %arg1: i32) -> (i32, i32) {
    %c0_i32 = arith.constant 0 : i32
    %c0_i32_0 = arith.constant 0 : i32
    %c0_i32_1 = arith.constant 0 : i32
    return %c0_i32, %c0_i32_0 : i32, i32
  }
  func.func @transform_4(%arg0: i32, %arg1: i32) -> (i32, i32) {
    %c0_i32 = arith.constant 0 : i32
    return %arg0, %arg1 : i32, i32
  }
  func.func @transform_5(%arg0: i32, %arg1: i32) -> (i32, i32) {
    %c0_i32 = arith.constant 0 : i32
    %c0_i32_0 = arith.constant 0 : i32
    return %c0_i32, %arg1 : i32, i32
  }
  func.func @transform_6(%arg0: i32, %arg1: i32) -> (i32, i32) {
    %c0_i32 = arith.constant 0 : i32
    %c0_i32_0 = arith.constant 0 : i32
    return %c0_i32, %arg1 : i32, i32
  }
  func.func @transform_7(%arg0: i32, %arg1: i32) -> (i32, i32) {
    %c0_i32 = arith.constant 0 : i32
    return %arg0, %arg1 : i32, i32
  }
}

</mosaic_0001>

<bundles_post_ra>
// kernel: basic_block_forward.6
= control target key start
LH: loop header
LB: loop body
LE: loop exit
PB: predicated region body
PF: predicated region fallthrough
CT: control target
= control target key end

     0   :  { %v294_v0 = vmov 0.0   ;;  %vm280_vm0 = vcmask 1040384   ;;  %s500_s0 = inlined_call_operand.vmem [shape: f32[512,128], index: 0, kind: input, shape index: {}]   ;;  %s501_s1 = inlined_call_operand.vmem [shape: f32[2,128], index: 1, kind: output, shape index: {}]  }
   0x1   :  { %12 = vst [vmem:[#allocation2] sm:$0x3] %v294_v0  ;;  %v13_v1 = vld [vmem:[%s500_s0] sm:$0xff]  ;;  %v14_v2 = vld [vmem:[%s500_s0 + $0x8] sm:$0xff]  ;;  %v15_v3 = vld [vmem:[%s500_s0 + $0x10] sm:$0xff] }
   0x2   :  { %v16_v4 = vld [vmem:[%s500_s0 + $0x18] sm:$0xff]  ;;  %v78_v5 = vadd.f32 %v14_v2, %v13_v1  ;;  %v147_v6 = vmul.f32 %v13_v1, %v13_v1  ;;  %v148_v7 = vmul.f32 %v14_v2, %v14_v2  ;;  %v149_v8 = vmul.f32 %v15_v3, %v15_v3  ;;  %v17_v9 = vld [vmem:[%s500_s0 + $0x20] sm:$0xff]  ;;  %v18_v13 = vld [vmem:[%s500_s0 + $0x28] sm:$0xff] }
   0x3   :  { %v150_v11 = vmul.f32 %v16_v4, %v16_v4  ;;  %v151_v15 = vmul.f32 %v17_v9, %v17_v9  ;;  %v19_v17 = vld [vmem:[%s500_s0 + $0x30] sm:$0xff]  ;;  %v152_v19 = vmul.f32 %v18_v13, %v18_v13  ;;  %v20_v21 = vld [vmem:[%s500_s0 + $0x38] sm:$0xff]  ;;  %v21_v25 = vld [vmem:[%s500_s0 + $0x40] sm:$0xff] }
   0x4   :  { %v79_v10 = vadd.f32 %v78_v5, %v15_v3  ;;  %v211_v12 = vadd.f32 %v148_v7, %v147_v6  ;;  %v153_v23 = vmul.f32 %v19_v17, %v19_v17  ;;  %v154_v27 = vmul.f32 %v20_v21, %v20_v21  ;;  %v22_v29 = vld [vmem:[%s500_s0 + $0x48] sm:$0xff]  ;;  %v23_v33 = vld [vmem:[%s500_s0 + $0x50] sm:$0xff]  ;;  %v24_v37 = vld [vmem:[%s500_s0 + $0x58] sm:$0xff] }
   0x5   :  { %v155_v31 = vmul.f32 %v21_v25, %v21_v25  ;;  %v156_v35 = vmul.f32 %v22_v29, %v22_v29  ;;  %v157_v39 = vmul.f32 %v23_v33, %v23_v33  ;;  %v25_v41 = vld [vmem:[%s500_s0 + $0x60] sm:$0xff]  ;;  %v158_v43 = vmul.f32 %v24_v37, %v24_v37  ;;  %v26_v45 = vld [vmem:[%s500_s0 + $0x68] sm:$0xff]  ;;  %v27_v49 = vld [vmem:[%s500_s0 + $0x70] sm:$0xff] }
   0x6   :  { %v80_v14 = vadd.f32 %v79_v10, %v16_v4  ;;  %v212_v16 = vadd.f32 %v211_v12, %v149_v8  ;;  %v159_v47 = vmul.f32 %v25_v41, %v25_v41  ;;  %v160_v51 = vmul.f32 %v26_v45, %v26_v45  ;;  %v28_v53 = vld [vmem:[%s500_s0 + $0x78] sm:$0xff]  ;;  %v29_v57 = vld [vmem:[%s500_s0 + $0x80] sm:$0xff]  ;;  %v30_v61 = vld [vmem:[%s500_s0 + $0x88] sm:$0xff] }
   0x7   :  { %v161_v55 = vmul.f32 %v27_v49, %v27_v49  ;;  %v162_v59 = vmul.f32 %v28_v53, %v28_v53  ;;  %v163_v63 = vmul.f32 %v29_v57, %v29_v57  ;;  %v31_v1 = vld [vmem:[%s500_s0 + $0x90] sm:$0xff]  ;;  %v164_v3 = vmul.f32 %v30_v61, %v30_v61  ;;  %v32_v5 = vld [vmem:[%s500_s0 + $0x98] sm:$0xff] }
   0x8   :  { %v81_v18 = vadd.f32 %v80_v14, %v17_v9  ;;  %v213_v20 = vadd.f32 %v212_v16, %v150_v11  ;;  %v165_v7 = vmul.f32 %v31_v1, %v31_v1  ;;  %v33_v9 = vld [vmem:[%s500_s0 + $0xa0] sm:$0xff]  ;;  %v166_v11 = vmul.f32 %v32_v5, %v32_v5 }
   0xa   :  { %v82_v22 = vadd.f32 %v81_v18, %v18_v13  ;;  %v214_v24 = vadd.f32 %v213_v20, %v151_v15  ;;  %v34_v13 = vld [vmem:[%s500_s0 + $0xa8] sm:$0xff]  ;;  %v167_v15 = vmul.f32 %v33_v9, %v33_v9 }
   0xc   :  { %v83_v26 = vadd.f32 %v82_v22, %v19_v17  ;;  %v215_v28 = vadd.f32 %v214_v24, %v152_v19  ;;  %v35_v17 = vld [vmem:[%s500_s0 + $0xb0] sm:$0xff]  ;;  %v168_v19 = vmul.f32 %v34_v13, %v34_v13 }
   0xe   :  { %v84_v30 = vadd.f32 %v83_v26, %v20_v21  ;;  %v216_v32 = vadd.f32 %v215_v28, %v153_v23  ;;  %v36_v21 = vld [vmem:[%s500_s0 + $0xb8] sm:$0xff]  ;;  %v169_v23 = vmul.f32 %v35_v17, %v35_v17 }
  0x10   :  { %v85_v34 = vadd.f32 %v84_v30, %v21_v25  ;;  %v217_v36 = vadd.f32 %v216_v32, %v154_v27  ;;  %v37_v25 = vld [vmem:[%s500_s0 + $0xc0] sm:$0xff]  ;;  %v170_v27 = vmul.f32 %v36_v21, %v36_v21 }
  0x12   :  { %v86_v38 = vadd.f32 %v85_v34, %v22_v29  ;;  %v218_v40 = vadd.f32 %v217_v36, %v155_v31  ;;  %v38_v29 = vld [vmem:[%s500_s0 + $0xc8] sm:$0xff]  ;;  %v171_v31 = vmul.f32 %v37_v25, %v37_v25 }
  0x14   :  { %v87_v42 = vadd.f32 %v86_v38, %v23_v33  ;;  %v219_v44 = vadd.f32 %v218_v40, %v156_v35  ;;  %v39_v33 = vld [vmem:[%s500_s0 + $0xd0] sm:$0xff]  ;;  %v172_v35 = vmul.f32 %v38_v29, %v38_v29 }
  0x16   :  { %v88_v46 = vadd.f32 %v87_v42, %v24_v37  ;;  %v220_v48 = vadd.f32 %v219_v44, %v157_v39  ;;  %v40_v37 = vld [vmem:[%s500_s0 + $0xd8] sm:$0xff]  ;;  %v173_v39 = vmul.f32 %v39_v33, %v39_v33 }
  0x18   :  { %v89_v50 = vadd.f32 %v88_v46, %v25_v41  ;;  %v221_v52 = vadd.f32 %v220_v48, %v158_v43  ;;  %v41_v41 = vld [vmem:[%s500_s0 + $0xe0] sm:$0xff]  ;;  %v174_v43 = vmul.f32 %v40_v37, %v40_v37 }
  0x1a   :  { %v90_v54 = vadd.f32 %v89_v50, %v26_v45  ;;  %v222_v56 = vadd.f32 %v221_v52, %v159_v47  ;;  %v42_v45 = vld [vmem:[%s500_s0 + $0xe8] sm:$0xff]  ;;  %v175_v47 = vmul.f32 %v41_v41, %v41_v41 }
  0x1c   :  { %v91_v58 = vadd.f32 %v90_v54, %v27_v49  ;;  %v223_v60 = vadd.f32 %v222_v56, %v160_v51  ;;  %v43_v49 = vld [vmem:[%s500_s0 + $0xf0] sm:$0xff]  ;;  %v176_v51 = vmul.f32 %v42_v45, %v42_v45 }
  0x1e   :  { %v92_v62 = vadd.f32 %v91_v58, %v28_v53  ;;  %v224_v0 = vadd.f32 %v223_v60, %v161_v55  ;;  %v44_v53 = vld [vmem:[%s500_s0 + $0xf8] sm:$0xff]  ;;  %v177_v55 = vmul.f32 %v43_v49, %v43_v49 }
  0x20   :  { %v93_v2 = vadd.f32 %v92_v62, %v29_v57  ;;  %v225_v4 = vadd.f32 %v224_v0, %v162_v59  ;;  %v45_v57 = vld [vmem:[%s500_s0 + $0x100] sm:$0xff]  ;;  %v178_v59 = vmul.f32 %v44_v53, %v44_v53 }
  0x22   :  { %v94_v6 = vadd.f32 %v93_v2, %v30_v61  ;;  %v226_v8 = vadd.f32 %v225_v4, %v163_v63  ;;  %v46_v61 = vld [vmem:[%s500_s0 + $0x108] sm:$0xff]  ;;  %v179_v63 = vmul.f32 %v45_v57, %v45_v57 }
  0x24   :  { %v95_v10 = vadd.f32 %v94_v6, %v31_v1  ;;  %v227_v12 = vadd.f32 %v226_v8, %v164_v3  ;;  %v47_v1 = vld [vmem:[%s500_s0 + $0x110] sm:$0xff]  ;;  %v180_v3 = vmul.f32 %v46_v61, %v46_v61 }
  0x26   :  { %v96_v14 = vadd.f32 %v95_v10, %v32_v5  ;;  %v228_v16 = vadd.f32 %v227_v12, %v165_v7  ;;  %v48_v5 = vld [vmem:[%s500_s0 + $0x118] sm:$0xff]  ;;  %v181_v7 = vmul.f32 %v47_v1, %v47_v1 }
  0x28   :  { %v97_v18 = vadd.f32 %v96_v14, %v33_v9  ;;  %v229_v20 = vadd.f32 %v228_v16, %v166_v11  ;;  %v49_v9 = vld [vmem:[%s500_s0 + $0x120] sm:$0xff]  ;;  %v182_v11 = vmul.f32 %v48_v5, %v48_v5 }
  0x2a   :  { %v98_v22 = vadd.f32 %v97_v18, %v34_v13  ;;  %v230_v24 = vadd.f32 %v229_v20, %v167_v15  ;;  %v50_v13 = vld [vmem:[%s500_s0 + $0x128] sm:$0xff]  ;;  %v183_v15 = vmul.f32 %v49_v9, %v49_v9 }
  0x2c   :  { %v99_v26 = vadd.f32 %v98_v22, %v35_v17  ;;  %v231_v28 = vadd.f32 %v230_v24, %v168_v19  ;;  %v51_v17 = vld [vmem:[%s500_s0 + $0x130] sm:$0xff]  ;;  %v184_v19 = vmul.f32 %v50_v13, %v50_v13 }
  0x2e   :  { %v100_v30 = vadd.f32 %v99_v26, %v36_v21  ;;  %v232_v32 = vadd.f32 %v231_v28, %v169_v23  ;;  %v52_v21 = vld [vmem:[%s500_s0 + $0x138] sm:$0xff]  ;;  %v185_v23 = vmul.f32 %v51_v17, %v51_v17 }
  0x30   :  { %v101_v34 = vadd.f32 %v100_v30, %v37_v25  ;;  %v233_v36 = vadd.f32 %v232_v32, %v170_v27  ;;  %v53_v25 = vld [vmem:[%s500_s0 + $0x140] sm:$0xff]  ;;  %v186_v27 = vmul.f32 %v52_v21, %v52_v21 }
  0x32   :  { %v102_v38 = vadd.f32 %v101_v34, %v38_v29  ;;  %v234_v40 = vadd.f32 %v233_v36, %v171_v31  ;;  %v54_v29 = vld [vmem:[%s500_s0 + $0x148] sm:$0xff]  ;;  %v187_v31 = vmul.f32 %v53_v25, %v53_v25 }
  0x34   :  { %v103_v42 = vadd.f32 %v102_v38, %v39_v33  ;;  %v235_v44 = vadd.f32 %v234_v40, %v172_v35  ;;  %v55_v33 = vld [vmem:[%s500_s0 + $0x150] sm:$0xff]  ;;  %v188_v35 = vmul.f32 %v54_v29, %v54_v29 }
  0x36   :  { %v104_v46 = vadd.f32 %v103_v42, %v40_v37  ;;  %v236_v48 = vadd.f32 %v235_v44, %v173_v39  ;;  %v56_v37 = vld [vmem:[%s500_s0 + $0x158] sm:$0xff]  ;;  %v189_v39 = vmul.f32 %v55_v33, %v55_v33 }
  0x38   :  { %v105_v50 = vadd.f32 %v104_v46, %v41_v41  ;;  %v237_v52 = vadd.f32 %v236_v48, %v174_v43  ;;  %v57_v41 = vld [vmem:[%s500_s0 + $0x160] sm:$0xff]  ;;  %v190_v43 = vmul.f32 %v56_v37, %v56_v37 }
  0x3a   :  { %v106_v54 = vadd.f32 %v105_v50, %v42_v45  ;;  %v238_v56 = vadd.f32 %v237_v52, %v175_v47  ;;  %v58_v45 = vld [vmem:[%s500_s0 + $0x168] sm:$0xff]  ;;  %v191_v47 = vmul.f32 %v57_v41, %v57_v41 }
  0x3c   :  { %v107_v58 = vadd.f32 %v106_v54, %v43_v49  ;;  %v239_v60 = vadd.f32 %v238_v56, %v176_v51  ;;  %v59_v49 = vld [vmem:[%s500_s0 + $0x170] sm:$0xff]  ;;  %v192_v51 = vmul.f32 %v58_v45, %v58_v45 }
  0x3e   :  { %v108_v62 = vadd.f32 %v107_v58, %v44_v53  ;;  %v240_v0 = vadd.f32 %v239_v60, %v177_v55  ;;  %v60_v53 = vld [vmem:[%s500_s0 + $0x178] sm:$0xff]  ;;  %v193_v55 = vmul.f32 %v59_v49, %v59_v49 }
  0x40   :  { %v109_v2 = vadd.f32 %v108_v62, %v45_v57  ;;  %v241_v4 = vadd.f32 %v240_v0, %v178_v59  ;;  %v61_v57 = vld [vmem:[%s500_s0 + $0x180] sm:$0xff]  ;;  %v194_v59 = vmul.f32 %v60_v53, %v60_v53 }
  0x42   :  { %v110_v6 = vadd.f32 %v109_v2, %v46_v61  ;;  %v242_v8 = vadd.f32 %v241_v4, %v179_v63  ;;  %v62_v61 = vld [vmem:[%s500_s0 + $0x188] sm:$0xff]  ;;  %v195_v63 = vmul.f32 %v61_v57, %v61_v57 }
  0x44   :  { %v111_v10 = vadd.f32 %v110_v6, %v47_v1  ;;  %v243_v12 = vadd.f32 %v242_v8, %v180_v3  ;;  %v63_v1 = vld [vmem:[%s500_s0 + $0x190] sm:$0xff]  ;;  %v196_v3 = vmul.f32 %v62_v61, %v62_v61 }
  0x46   :  { %v112_v14 = vadd.f32 %v111_v10, %v48_v5  ;;  %v244_v16 = vadd.f32 %v243_v12, %v181_v7  ;;  %v64_v5 = vld [vmem:[%s500_s0 + $0x198] sm:$0xff]  ;;  %v197_v7 = vmul.f32 %v63_v1, %v63_v1 }
  0x48   :  { %v113_v18 = vadd.f32 %v112_v14, %v49_v9  ;;  %v245_v20 = vadd.f32 %v244_v16, %v182_v11  ;;  %v65_v9 = vld [vmem:[%s500_s0 + $0x1a0] sm:$0xff]  ;;  %v198_v11 = vmul.f32 %v64_v5, %v64_v5 }
  0x4a   :  { %v114_v22 = vadd.f32 %v113_v18, %v50_v13  ;;  %v246_v24 = vadd.f32 %v245_v20, %v183_v15  ;;  %v66_v13 = vld [vmem:[%s500_s0 + $0x1a8] sm:$0xff]  ;;  %v199_v15 = vmul.f32 %v65_v9, %v65_v9 }
  0x4c   :  { %v115_v26 = vadd.f32 %v114_v22, %v51_v17  ;;  %v247_v28 = vadd.f32 %v246_v24, %v184_v19  ;;  %v67_v17 = vld [vmem:[%s500_s0 + $0x1b0] sm:$0xff]  ;;  %v200_v19 = vmul.f32 %v66_v13, %v66_v13 }
  0x4e   :  { %v116_v30 = vadd.f32 %v115_v26, %v52_v21  ;;  %v248_v32 = vadd.f32 %v247_v28, %v185_v23  ;;  %v68_v21 = vld [vmem:[%s500_s0 + $0x1b8] sm:$0xff]  ;;  %v201_v23 = vmul.f32 %v67_v17, %v67_v17 }
  0x50   :  { %v117_v34 = vadd.f32 %v116_v30, %v53_v25  ;;  %v249_v36 = vadd.f32 %v248_v32, %v186_v27  ;;  %v69_v25 = vld [vmem:[%s500_s0 + $0x1c0] sm:$0xff]  ;;  %v202_v27 = vmul.f32 %v68_v21, %v68_v21 }
  0x52   :  { %v118_v38 = vadd.f32 %v117_v34, %v54_v29  ;;  %v250_v40 = vadd.f32 %v249_v36, %v187_v31  ;;  %v70_v29 = vld [vmem:[%s500_s0 + $0x1c8] sm:$0xff]  ;;  %v203_v31 = vmul.f32 %v69_v25, %v69_v25 }
  0x54   :  { %v119_v42 = vadd.f32 %v118_v38, %v55_v33  ;;  %v251_v44 = vadd.f32 %v250_v40, %v188_v35  ;;  %v71_v33 = vld [vmem:[%s500_s0 + $0x1d0] sm:$0xff]  ;;  %v204_v35 = vmul.f32 %v70_v29, %v70_v29 }
  0x56   :  { %v120_v46 = vadd.f32 %v119_v42, %v56_v37  ;;  %v252_v48 = vadd.f32 %v251_v44, %v189_v39  ;;  %v72_v37 = vld [vmem:[%s500_s0 + $0x1d8] sm:$0xff]  ;;  %v205_v39 = vmul.f32 %v71_v33, %v71_v33 }
  0x58   :  { %v121_v50 = vadd.f32 %v120_v46, %v57_v41  ;;  %v253_v52 = vadd.f32 %v252_v48, %v190_v43  ;;  %v73_v41 = vld [vmem:[%s500_s0 + $0x1e0] sm:$0xff]  ;;  %v206_v43 = vmul.f32 %v72_v37, %v72_v37 }
  0x5a   :  { %v122_v54 = vadd.f32 %v121_v50, %v58_v45  ;;  %v254_v56 = vadd.f32 %v253_v52, %v191_v47  ;;  %v74_v45 = vld [vmem:[%s500_s0 + $0x1e8] sm:$0xff]  ;;  %v207_v47 = vmul.f32 %v73_v41, %v73_v41 }
  0x5c   :  { %v123_v58 = vadd.f32 %v122_v54, %v59_v49  ;;  %v255_v60 = vadd.f32 %v254_v56, %v192_v51  ;;  %v75_v49 = vld [vmem:[%s500_s0 + $0x1f0] sm:$0xff]  ;;  %v208_v51 = vmul.f32 %v74_v45, %v74_v45 }
  0x5e   :  { %v124_v62 = vadd.f32 %v123_v58, %v60_v53  ;;  %v256_v0 = vadd.f32 %v255_v60, %v193_v55  ;;  %v76_v53 = vld [vmem:[%s500_s0 + $0x1f8] sm:$0xff]  ;;  %v209_v55 = vmul.f32 %v75_v49, %v75_v49 }
  0x5f   :  { %v210_v58 = vmul.f32 %v76_v53, %v76_v53 }
  0x60   :  { %v125_v2 = vadd.f32 %v124_v62, %v61_v57  ;;  %v257_v4 = vadd.f32 %v256_v0, %v194_v59 }
  0x62   :  { %v126_v6 = vadd.f32 %v125_v2, %v62_v61  ;;  %v258_v8 = vadd.f32 %v257_v4, %v195_v63 }
  0x64   :  { %v127_v10 = vadd.f32 %v126_v6, %v63_v1  ;;  %v259_v12 = vadd.f32 %v258_v8, %v196_v3 }
  0x66   :  { %v128_v14 = vadd.f32 %v127_v10, %v64_v5  ;;  %v260_v16 = vadd.f32 %v259_v12, %v197_v7  ;;  %v77_v10 = vld [vmem:[#allocation2] sm:$0x3] }
  0x68   :  { %v129_v18 = vadd.f32 %v128_v14, %v65_v9  ;;  %v261_v20 = vadd.f32 %v260_v16, %v198_v11 }
  0x6a   :  { %v130_v22 = vadd.f32 %v129_v18, %v66_v13  ;;  %v262_v24 = vadd.f32 %v261_v20, %v199_v15 }
  0x6c   :  { %v131_v26 = vadd.f32 %v130_v22, %v67_v17  ;;  %v263_v28 = vadd.f32 %v262_v24, %v200_v19 }
  0x6e   :  { %v132_v30 = vadd.f32 %v131_v26, %v68_v21  ;;  %v264_v32 = vadd.f32 %v263_v28, %v201_v23 }
  0x70   :  { %v133_v34 = vadd.f32 %v132_v30, %v69_v25  ;;  %v265_v36 = vadd.f32 %v264_v32, %v202_v27 }
  0x72   :  { %v134_v38 = vadd.f32 %v133_v34, %v70_v29  ;;  %v266_v40 = vadd.f32 %v265_v36, %v203_v31 }
  0x74   :  { %v135_v42 = vadd.f32 %v134_v38, %v71_v33  ;;  %v267_v44 = vadd.f32 %v266_v40, %v204_v35 }
  0x76   :  { %v136_v46 = vadd.f32 %v135_v42, %v72_v37  ;;  %v268_v48 = vadd.f32 %v267_v44, %v205_v39 }
  0x78   :  { %v137_v50 = vadd.f32 %v136_v46, %v73_v41  ;;  %v269_v52 = vadd.f32 %v268_v48, %v206_v43 }
  0x7a   :  { %v138_v54 = vadd.f32 %v137_v50, %v74_v45  ;;  %v270_v56 = vadd.f32 %v269_v52, %v207_v47 }
  0x7c   :  { %v139_v57 = vadd.f32 %v138_v54, %v75_v49  ;;  %v271_v59 = vadd.f32 %v270_v56, %v208_v51 }
  0x7e   :  { %v140_v60 = vadd.f32 %v139_v57, %v76_v53  ;;  %v272_v61 = vadd.f32 %v271_v59, %v209_v55 }
  0x80   :  { %v141_v62 = vrot.slane %v140_v60, 4  ;;  %v273_v63 = vadd.f32 %v272_v61, %v210_v58 }
  0x82   :  { %v142_v0 = vadd.f32 %v141_v62, %v140_v60  ;;  %v274_v1 = vrot.slane %v273_v63, 4 }
  0x84   :  { %v143_v2 = vrot.slane %v142_v0, 2  ;;  %v275_v3 = vadd.f32 %v274_v1, %v273_v63 }
  0x86   :  { %v144_v4 = vadd.f32 %v143_v2, %v142_v0  ;;  %v276_v5 = vrot.slane %v275_v3, 2 }
  0x88   :  { %v145_v6 = vrot.slane %v144_v4, 1  ;;  %v277_v7 = vadd.f32 %v276_v5, %v275_v3 }
  0x8a   :  { %v146_v8 = vadd.f32 %v145_v6, %v144_v4  ;;  %v278_v9 = vrot.slane %v277_v7, 1 }
  0x8c   :  { %v279_v11 = vadd.f32 %v278_v9, %v277_v7 }
  0x8e   :  { %v281_v12 = vsel %vm280_vm0, %v146_v8, %v279_v11 }
  0x8f   :  { %v282_v13 = vadd.f32 %v281_v12, %v77_v10 }
  0x91   :  { %283 = vst [vmem:[#allocation2] sm:$0x3] %v282_v13 }
  0x98   :  { %v287_v14 = vld [vmem:[#allocation2] sm:$0x3] }
  0x99   :  { %288 = vst [vmem:[%s501_s1] sm:$0x3] %v287_v14 }

// kernel: basic_block_forward.7
= control target key start
LH: loop header
LB: loop body
LE: loop exit
PB: predicated region body
PF: predicated region fallthrough
CT: control target
= control target key end

     0   :  { %s896_s0 = inlined_call_operand.vmem [shape: f32[512,128], index: 0, kind: input, shape index: {}]   ;;  %s897_s1 = inlined_call_operand.vmem [shape: f32[1,128], index: 1, kind: input, shape index: {}]   ;;  %s898_s2 = inlined_call_operand.vmem [shape: f32[1,128], index: 2, kind: input, shape index: {}]   ;;  %s899_s3 = inlined_call_operand.vmem [shape: f32[512,128], index: 3, kind: output, shape index: {}]  }
   0x1   :  { %v14_v0 = vld [vmem:[%s896_s0] sm:$0xff]  ;;  %v15_v4 = vld [vmem:[%s896_s0 + $0x8] sm:$0xff]  ;;  %v16_v5 = vld [vmem:[%s896_s0 + $0x10] sm:$0xff] }
   0x2   :  { %v380_v1 = vld [vmem:[%s897_s1] ss:$0 sm:$0xff]  ;;  %v17_v6 = vld [vmem:[%s896_s0 + $0x18] sm:$0xff]  ;;  %v19_v11 = vld [vmem:[%s896_s0 + $0x28] sm:$0xff] }
   0x3   :  { %v385_v2 = vld [vmem:[%s898_s2] ss:$0 sm:$0xff]  ;;  %v85_v3 = vmul.f32 %v380_v1, %v14_v0  ;;  %v86_v7 = vmul.f32 %v380_v1, %v15_v4  ;;  %v87_v8 = vmul.f32 %v380_v1, %v16_v5  ;;  %v88_v9 = vmul.f32 %v380_v1, %v17_v6  ;;  %v20_v12 = vld [vmem:[%s896_s0 + $0x30] sm:$0xff]  ;;  %v21_v17 = vld [vmem:[%s896_s0 + $0x38] sm:$0xff] }
   0x4   :  { %v18_v10 = vld [vmem:[%s896_s0 + $0x20] sm:$0xff]  ;;  %v90_v15 = vmul.f32 %v380_v1, %v19_v11  ;;  %v91_v16 = vmul.f32 %v380_v1, %v20_v12  ;;  %v92_v21 = vmul.f32 %v380_v1, %v21_v17  ;;  %v23_v27 = vld [vmem:[%s896_s0 + $0x48] sm:$0xff]  ;;  %v24_v28 = vld [vmem:[%s896_s0 + $0x50] sm:$0xff] }
   0x5   :  { %v156_v13 = vadd.f32 %v385_v2, %v85_v3  ;;  %v89_v14 = vmul.f32 %v380_v1, %v18_v10  ;;  %v157_v18 = vadd.f32 %v385_v2, %v86_v7  ;;  %v158_v19 = vadd.f32 %v385_v2, %v87_v8  ;;  %v22_v22 = vld [vmem:[%s896_s0 + $0x40] sm:$0xff]  ;;  %v25_v29 = vld [vmem:[%s896_s0 + $0x58] sm:$0xff]  ;;  %v27_v35 = vld [vmem:[%s896_s0 + $0x68] sm:$0xff] }
   0x6   :  { %v159_v20 = vadd.f32 %v385_v2, %v88_v9  ;;  %v161_v25 = vadd.f32 %v385_v2, %v90_v15  ;;  %v162_v26 = vadd.f32 %v385_v2, %v91_v16  ;;  %v163_v33 = vadd.f32 %v385_v2, %v92_v21  ;;  %v26_v34 = vld [vmem:[%s896_s0 + $0x60] sm:$0xff]  ;;  %v28_v36 = vld [vmem:[%s896_s0 + $0x70] sm:$0xff]  ;;  %v29_v41 = vld [vmem:[%s896_s0 + $0x78] sm:$0xff] }
   0x7   :  { %v220_v23 = vmax.f32 %v156_v13, 0.0  ;;  %v160_v24 = vadd.f32 %v385_v2, %v89_v14  ;;  %v221_v30 = vmax.f32 %v157_v18, 0.0  ;;  %v222_v31 = vmax.f32 %v158_v19, 0.0  ;;  %v30_v54 = vld [vmem:[%s896_s0 + $0x80] sm:$0xff]  ;;  %v31_v59 = vld [vmem:[%s896_s0 + $0x88] sm:$0xff]  ;;  %v32_v60 = vld [vmem:[%s896_s0 + $0x90] sm:$0xff] }
   0x8   :  { %v223_v32 = vmax.f32 %v159_v20, 0.0  ;;  %v225_v38 = vmax.f32 %v161_v25, 0.0  ;;  %v226_v39 = vmax.f32 %v162_v26, 0.0  ;;  %v93_v40 = vmul.f32 %v380_v1, %v22_v22  ;;  %v33_v61 = vld [vmem:[%s896_s0 + $0x98] sm:$0xff]  ;;  %v34_v4 = vld [vmem:[%s896_s0 + $0xa0] sm:$0xff]  ;;  %v35_v5 = vld [vmem:[%s896_s0 + $0xa8] sm:$0xff] }
   0x9   :  { %284 = vst [vmem:[%s899_s3] sm:$0xff] %v220_v23  ;;  %v224_v37 = vmax.f32 %v160_v24, 0.0  ;;  %285 = vst [vmem:[%s899_s3 + $0x8] sm:$0xff] %v221_v30  ;;  %v227_v42 = vmax.f32 %v163_v33, 0.0  ;;  %v94_v43 = vmul.f32 %v380_v1, %v23_v27  ;;  %v95_v44 = vmul.f32 %v380_v1, %v24_v28  ;;  %v36_v6 = vld [vmem:[%s896_s0 + $0xb0] sm:$0xff]  ;;  %v37_v11 = vld [vmem:[%s896_s0 + $0xb8] sm:$0xff] }
   0xa   :  { %286 = vst [vmem:[%s899_s3 + $0x10] sm:$0xff] %v222_v31  ;;  %287 = vst [vmem:[%s899_s3 + $0x18] sm:$0xff] %v223_v32  ;;  %v96_v45 = vmul.f32 %v380_v1, %v25_v29  ;;  %v164_v46 = vadd.f32 %v385_v2, %v93_v40  ;;  %v97_v47 = vmul.f32 %v380_v1, %v26_v34  ;;  %v38_v24 = vld [vmem:[%s896_s0 + $0xc0] sm:$0xff]  ;;  %v39_v29 = vld [vmem:[%s896_s0 + $0xc8] sm:$0xff] }
   0xb   :  { %288 = vst [vmem:[%s899_s3 + $0x20] sm:$0xff] %v224_v37  ;;  %289 = vst [vmem:[%s899_s3 + $0x28] sm:$0xff] %v225_v38  ;;  %v98_v48 = vmul.f32 %v380_v1, %v27_v35  ;;  %v99_v49 = vmul.f32 %v380_v1, %v28_v36  ;;  %v165_v50 = vadd.f32 %v385_v2, %v94_v43  ;;  %v40_v30 = vld [vmem:[%s896_s0 + $0xd0] sm:$0xff]  ;;  %v41_v31 = vld [vmem:[%s896_s0 + $0xd8] sm:$0xff] }
   0xc   :  { %290 = vst [vmem:[%s899_s3 + $0x30] sm:$0xff] %v226_v39  ;;  %291 = vst [vmem:[%s899_s3 + $0x38] sm:$0xff] %v227_v42  ;;  %v166_v51 = vadd.f32 %v385_v2, %v95_v44  ;;  %v167_v52 = vadd.f32 %v385_v2, %v96_v45  ;;  %v100_v53 = vmul.f32 %v380_v1, %v29_v41  ;;  %v228_v55 = vmax.f32 %v164_v46, 0.0  ;;  %v42_v36 = vld [vmem:[%s896_s0 + $0xe0] sm:$0xff]  ;;  %v43_v37 = vld [vmem:[%s896_s0 + $0xe8] sm:$0xff] }
   0xd   :  { %v168_v56 = vadd.f32 %v385_v2, %v97_v47  ;;  %v169_v57 = vadd.f32 %v385_v2, %v98_v48  ;;  %v170_v58 = vadd.f32 %v385_v2, %v99_v49  ;;  %v229_v62 = vmax.f32 %v165_v50, 0.0  ;;  %v44_v38 = vld [vmem:[%s896_s0 + $0xf0] sm:$0xff]  ;;  %v45_v43 = vld [vmem:[%s896_s0 + $0xf8] sm:$0xff] }
   0xe   :  { %v230_v63 = vmax.f32 %v166_v51, 0.0  ;;  %v231_v0 = vmax.f32 %v167_v52, 0.0  ;;  %v171_v3 = vadd.f32 %v385_v2, %v100_v53  ;;  %292 = vst [vmem:[%s899_s3 + $0x40] sm:$0xff] %v228_v55  ;;  %v101_v10 = vmul.f32 %v380_v1, %v30_v54 }
   0xf   :  { %v232_v7 = vmax.f32 %v168_v56, 0.0  ;;  %v233_v8 = vmax.f32 %v169_v57, 0.0  ;;  %v234_v9 = vmax.f32 %v170_v58, 0.0  ;;  %293 = vst [vmem:[%s899_s3 + $0x48] sm:$0xff] %v229_v62  ;;  %v102_v13 = vmul.f32 %v380_v1, %v31_v59  ;;  %v46_v56 = vld [vmem:[%s896_s0 + $0x100] sm:$0xff]  ;;  %v48_v62 = vld [vmem:[%s896_s0 + $0x110] sm:$0xff] }
  0x10   :  { %294 = vst [vmem:[%s899_s3 + $0x50] sm:$0xff] %v230_v63  ;;  %295 = vst [vmem:[%s899_s3 + $0x58] sm:$0xff] %v231_v0  ;;  %v235_v12 = vmax.f32 %v171_v3, 0.0  ;;  %v103_v14 = vmul.f32 %v380_v1, %v32_v60  ;;  %v104_v15 = vmul.f32 %v380_v1, %v33_v61  ;;  %v172_v16 = vadd.f32 %v385_v2, %v101_v10  ;;  %v47_v61 = vld [vmem:[%s896_s0 + $0x108] sm:$0xff]  ;;  %v49_v63 = vld [vmem:[%s896_s0 + $0x118] sm:$0xff] }
  0x11   :  { %296 = vst [vmem:[%s899_s3 + $0x60] sm:$0xff] %v232_v7  ;;  %297 = vst [vmem:[%s899_s3 + $0x68] sm:$0xff] %v233_v8  ;;  %v105_v17 = vmul.f32 %v380_v1, %v34_v4  ;;  %v106_v18 = vmul.f32 %v380_v1, %v35_v5  ;;  %v107_v19 = vmul.f32 %v380_v1, %v36_v6  ;;  %v50_v6 = vld [vmem:[%s896_s0 + $0x120] sm:$0xff]  ;;  %v51_v7 = vld [vmem:[%s896_s0 + $0x128] sm:$0xff] }
  0x12   :  { %298 = vst [vmem:[%s899_s3 + $0x70] sm:$0xff] %v234_v9  ;;  %299 = vst [vmem:[%s899_s3 + $0x78] sm:$0xff] %v235_v12  ;;  %v173_v20 = vadd.f32 %v385_v2, %v102_v13  ;;  %v174_v21 = vadd.f32 %v385_v2, %v103_v14  ;;  %v175_v22 = vadd.f32 %v385_v2, %v104_v15  ;;  %v236_v25 = vmax.f32 %v172_v16, 0.0  ;;  %v52_v8 = vld [vmem:[%s896_s0 + $0x130] sm:$0xff]  ;;  %v53_v13 = vld [vmem:[%s896_s0 + $0x138] sm:$0xff] }
  0x13   :  { %v108_v23 = vmul.f32 %v380_v1, %v37_v11  ;;  %v176_v26 = vadd.f32 %v385_v2, %v105_v17  ;;  %v177_v27 = vadd.f32 %v385_v2, %v106_v18  ;;  %v178_v28 = vadd.f32 %v385_v2, %v107_v19 }
  0x14   :  { %v237_v32 = vmax.f32 %v173_v20, 0.0  ;;  %v238_v33 = vmax.f32 %v174_v21, 0.0  ;;  %v239_v34 = vmax.f32 %v175_v22, 0.0  ;;  %300 = vst [vmem:[%s899_s3 + $0x80] sm:$0xff] %v236_v25  ;;  %v109_v42 = vmul.f32 %v380_v1, %v38_v24 }
  0x15   :  { %v179_v35 = vadd.f32 %v385_v2, %v108_v23  ;;  %v240_v39 = vmax.f32 %v176_v26, 0.0  ;;  %v241_v40 = vmax.f32 %v177_v27, 0.0  ;;  %v242_v41 = vmax.f32 %v178_v28, 0.0  ;;  %v54_v26 = vld [vmem:[%s896_s0 + $0x140] sm:$0xff] }
  0x16   :  { %301 = vst [vmem:[%s899_s3 + $0x88] sm:$0xff] %v237_v32  ;;  %302 = vst [vmem:[%s899_s3 + $0x90] sm:$0xff] %v238_v33  ;;  %v110_v45 = vmul.f32 %v380_v1, %v39_v29  ;;  %v111_v46 = vmul.f32 %v380_v1, %v40_v30  ;;  %v112_v47 = vmul.f32 %v380_v1, %v41_v31  ;;  %v55_v31 = vld [vmem:[%s896_s0 + $0x148] sm:$0xff]  ;;  %v56_v32 = vld [vmem:[%s896_s0 + $0x150] sm:$0xff] }
  0x17   :  { %303 = vst [vmem:[%s899_s3 + $0x98] sm:$0xff] %v239_v34  ;;  %v243_v44 = vmax.f32 %v179_v35, 0.0  ;;  %304 = vst [vmem:[%s899_s3 + $0xa0] sm:$0xff] %v240_v39  ;;  %v180_v48 = vadd.f32 %v385_v2, %v109_v42  ;;  %v113_v49 = vmul.f32 %v380_v1, %v42_v36  ;;  %v114_v50 = vmul.f32 %v380_v1, %v43_v37  ;;  %v57_v33 = vld [vmem:[%s896_s0 + $0x158] sm:$0xff]  ;;  %v59_v39 = vld [vmem:[%s896_s0 + $0x168] sm:$0xff] }
  0x18   :  { %305 = vst [vmem:[%s899_s3 + $0xa8] sm:$0xff] %v241_v40  ;;  %306 = vst [vmem:[%s899_s3 + $0xb0] sm:$0xff] %v242_v41  ;;  %v115_v51 = vmul.f32 %v380_v1, %v44_v38  ;;  %v181_v52 = vadd.f32 %v385_v2, %v110_v45  ;;  %v182_v53 = vadd.f32 %v385_v2, %v111_v46  ;;  %v58_v38 = vld [vmem:[%s896_s0 + $0x160] sm:$0xff]  ;;  %v60_v40 = vld [vmem:[%s896_s0 + $0x170] sm:$0xff] }
  0x19   :  { %307 = vst [vmem:[%s899_s3 + $0xb8] sm:$0xff] %v243_v44  ;;  %v183_v54 = vadd.f32 %v385_v2, %v112_v47  ;;  %v116_v55 = vmul.f32 %v380_v1, %v45_v43  ;;  %v244_v57 = vmax.f32 %v180_v48, 0.0  ;;  %v184_v58 = vadd.f32 %v385_v2, %v113_v49  ;;  %v61_v45 = vld [vmem:[%s896_s0 + $0x178] sm:$0xff] }
  0x1a   :  { %v185_v59 = vadd.f32 %v385_v2, %v114_v50  ;;  %v186_v60 = vadd.f32 %v385_v2, %v115_v51  ;;  %v245_v0 = vmax.f32 %v181_v52, 0.0  ;;  %v246_v3 = vmax.f32 %v182_v53, 0.0 }
  0x1b   :  { %v247_v4 = vmax.f32 %v183_v54, 0.0  ;;  %v187_v5 = vadd.f32 %v385_v2, %v116_v55  ;;  %308 = vst [vmem:[%s899_s3 + $0xc0] sm:$0xff] %v244_v57  ;;  %v248_v9 = vmax.f32 %v184_v58, 0.0  ;;  %v117_v12 = vmul.f32 %v380_v1, %v46_v56  ;;  %v62_v58 = vld [vmem:[%s896_s0 + $0x180] sm:$0xff] }
  0x1c   :  { %v249_v10 = vmax.f32 %v185_v59, 0.0  ;;  %v250_v11 = vmax.f32 %v186_v60, 0.0  ;;  %309 = vst [vmem:[%s899_s3 + $0xc8] sm:$0xff] %v245_v0  ;;  %310 = vst [vmem:[%s899_s3 + $0xd0] sm:$0xff] %v246_v3  ;;  %v118_v15 = vmul.f32 %v380_v1, %v47_v61  ;;  %v119_v16 = vmul.f32 %v380_v1, %v48_v62  ;;  %v64_v0 = vld [vmem:[%s896_s0 + $0x190] sm:$0xff]  ;;  %v65_v3 = vld [vmem:[%s896_s0 + $0x198] sm:$0xff] }
  0x1d   :  { %311 = vst [vmem:[%s899_s3 + $0xd8] sm:$0xff] %v247_v4  ;;  %v251_v14 = vmax.f32 %v187_v5, 0.0  ;;  %v120_v17 = vmul.f32 %v380_v1, %v49_v63  ;;  %312 = vst [vmem:[%s899_s3 + $0xe0] sm:$0xff] %v248_v9  ;;  %v188_v18 = vadd.f32 %v385_v2, %v117_v12  ;;  %v121_v19 = vmul.f32 %v380_v1, %v50_v6  ;;  %v63_v63 = vld [vmem:[%s896_s0 + $0x188] sm:$0xff] }
  0x1e   :  { %313 = vst [vmem:[%s899_s3 + $0xe8] sm:$0xff] %v249_v10  ;;  %314 = vst [vmem:[%s899_s3 + $0xf0] sm:$0xff] %v250_v11  ;;  %v122_v20 = vmul.f32 %v380_v1, %v51_v7  ;;  %v123_v21 = vmul.f32 %v380_v1, %v52_v8  ;;  %v189_v22 = vadd.f32 %v385_v2, %v118_v15  ;;  %v66_v8 = vld [vmem:[%s896_s0 + $0x1a0] sm:$0xff]  ;;  %v67_v9 = vld [vmem:[%s896_s0 + $0x1a8] sm:$0xff] }
  0x1f   :  { %315 = vst [vmem:[%s899_s3 + $0xf8] sm:$0xff] %v251_v14  ;;  %v190_v23 = vadd.f32 %v385_v2, %v119_v16  ;;  %v191_v24 = vadd.f32 %v385_v2, %v120_v17  ;;  %v124_v25 = vmul.f32 %v380_v1, %v53_v13  ;;  %v252_v27 = vmax.f32 %v188_v18, 0.0  ;;  %v68_v10 = vld [vmem:[%s896_s0 + $0x1b0] sm:$0xff]  ;;  %v69_v15 = vld [vmem:[%s896_s0 + $0x1b8] sm:$0xff] }
  0x20   :  { %v192_v28 = vadd.f32 %v385_v2, %v121_v19  ;;  %v193_v29 = vadd.f32 %v385_v2, %v122_v20  ;;  %v194_v30 = vadd.f32 %v385_v2, %v123_v21  ;;  %v253_v34 = vmax.f32 %v189_v22, 0.0 }
  0x21   :  { %v254_v35 = vmax.f32 %v190_v23, 0.0  ;;  %v255_v36 = vmax.f32 %v191_v24, 0.0  ;;  %v195_v37 = vadd.f32 %v385_v2, %v124_v25  ;;  %316 = vst [vmem:[%s899_s3 + $0x100] sm:$0xff] %v252_v27  ;;  %v125_v44 = vmul.f32 %v380_v1, %v54_v26 }
  0x22   :  { %v256_v41 = vmax.f32 %v192_v28, 0.0  ;;  %v257_v42 = vmax.f32 %v193_v29, 0.0  ;;  %v258_v43 = vmax.f32 %v194_v30, 0.0  ;;  %317 = vst [vmem:[%s899_s3 + $0x108] sm:$0xff] %v253_v34  ;;  %v126_v47 = vmul.f32 %v380_v1, %v55_v31  ;;  %v70_v28 = vld [vmem:[%s896_s0 + $0x1c0] sm:$0xff]  ;;  %v72_v34 = vld [vmem:[%s896_s0 + $0x1d0] sm:$0xff] }
  0x23   :  { %318 = vst [vmem:[%s899_s3 + $0x110] sm:$0xff] %v254_v35  ;;  %319 = vst [vmem:[%s899_s3 + $0x118] sm:$0xff] %v255_v36  ;;  %v259_v46 = vmax.f32 %v195_v37, 0.0  ;;  %v127_v48 = vmul.f32 %v380_v1, %v56_v32  ;;  %v128_v49 = vmul.f32 %v380_v1, %v57_v33  ;;  %v196_v50 = vadd.f32 %v385_v2, %v125_v44  ;;  %v71_v33 = vld [vmem:[%s896_s0 + $0x1c8] sm:$0xff]  ;;  %v73_v35 = vld [vmem:[%s896_s0 + $0x1d8] sm:$0xff] }
  0x24   :  { %320 = vst [vmem:[%s899_s3 + $0x120] sm:$0xff] %v256_v41  ;;  %321 = vst [vmem:[%s899_s3 + $0x128] sm:$0xff] %v257_v42  ;;  %v129_v51 = vmul.f32 %v380_v1, %v58_v38  ;;  %v130_v52 = vmul.f32 %v380_v1, %v59_v39  ;;  %v131_v53 = vmul.f32 %v380_v1, %v60_v40  ;;  %v74_v40 = vld [vmem:[%s896_s0 + $0x1e0] sm:$0xff]  ;;  %v75_v41 = vld [vmem:[%s896_s0 + $0x1e8] sm:$0xff] }
  0x25   :  { %322 = vst [vmem:[%s899_s3 + $0x130] sm:$0xff] %v258_v43  ;;  %323 = vst [vmem:[%s899_s3 + $0x138] sm:$0xff] %v259_v46  ;;  %v197_v54 = vadd.f32 %v385_v2, %v126_v47  ;;  %v198_v55 = vadd.f32 %v385_v2, %v127_v48  ;;  %v199_v56 = vadd.f32 %v385_v2, %v128_v49  ;;  %v260_v59 = vmax.f32 %v196_v50, 0.0  ;;  %v76_v42 = vld [vmem:[%s896_s0 + $0x1f0] sm:$0xff]  ;;  %v77_v47 = vld [vmem:[%s896_s0 + $0x1f8] sm:$0xff] }
  0x26   :  { %v132_v57 = vmul.f32 %v380_v1, %v61_v45  ;;  %v200_v60 = vadd.f32 %v385_v2, %v129_v51  ;;  %v201_v61 = vadd.f32 %v385_v2, %v130_v52  ;;  %v202_v62 = vadd.f32 %v385_v2, %v131_v53 }
  0x27   :  { %v261_v4 = vmax.f32 %v197_v54, 0.0  ;;  %v262_v5 = vmax.f32 %v198_v55, 0.0  ;;  %v263_v6 = vmax.f32 %v199_v56, 0.0  ;;  %324 = vst [vmem:[%s899_s3 + $0x140] sm:$0xff] %v260_v59  ;;  %v133_v14 = vmul.f32 %v380_v1, %v62_v58 }
  0x28   :  { %v203_v7 = vadd.f32 %v385_v2, %v132_v57  ;;  %v264_v11 = vmax.f32 %v200_v60, 0.0  ;;  %v265_v12 = vmax.f32 %v201_v61, 0.0  ;;  %v266_v13 = vmax.f32 %v202_v62, 0.0 }
  0x29   :  { %325 = vst [vmem:[%s899_s3 + $0x148] sm:$0xff] %v261_v4  ;;  %326 = vst [vmem:[%s899_s3 + $0x150] sm:$0xff] %v262_v5  ;;  %v134_v17 = vmul.f32 %v380_v1, %v63_v63  ;;  %v135_v18 = vmul.f32 %v380_v1, %v64_v0  ;;  %v136_v19 = vmul.f32 %v380_v1, %v65_v3 }
  0x2a   :  { %327 = vst [vmem:[%s899_s3 + $0x158] sm:$0xff] %v263_v6  ;;  %v267_v16 = vmax.f32 %v203_v7, 0.0  ;;  %328 = vst [vmem:[%s899_s3 + $0x160] sm:$0xff] %v264_v11  ;;  %v204_v20 = vadd.f32 %v385_v2, %v133_v14  ;;  %v137_v21 = vmul.f32 %v380_v1, %v66_v8  ;;  %v138_v22 = vmul.f32 %v380_v1, %v67_v9 }
  0x2b   :  { %329 = vst [vmem:[%s899_s3 + $0x168] sm:$0xff] %v265_v12  ;;  %330 = vst [vmem:[%s899_s3 + $0x170] sm:$0xff] %v266_v13  ;;  %v139_v23 = vmul.f32 %v380_v1, %v68_v10  ;;  %v205_v24 = vadd.f32 %v385_v2, %v134_v17  ;;  %v206_v25 = vadd.f32 %v385_v2, %v135_v18 }
  0x2c   :  { %331 = vst [vmem:[%s899_s3 + $0x178] sm:$0xff] %v267_v16  ;;  %v207_v26 = vadd.f32 %v385_v2, %v136_v19  ;;  %v140_v27 = vmul.f32 %v380_v1, %v69_v15  ;;  %v268_v29 = vmax.f32 %v204_v20, 0.0  ;;  %v208_v30 = vadd.f32 %v385_v2, %v137_v21 }
  0x2d   :  { %v209_v31 = vadd.f32 %v385_v2, %v138_v22  ;;  %v210_v32 = vadd.f32 %v385_v2, %v139_v23  ;;  %v269_v36 = vmax.f32 %v205_v24, 0.0  ;;  %v270_v37 = vmax.f32 %v206_v25, 0.0 }
  0x2e   :  { %v271_v38 = vmax.f32 %v207_v26, 0.0  ;;  %v211_v39 = vadd.f32 %v385_v2, %v140_v27  ;;  %332 = vst [vmem:[%s899_s3 + $0x180] sm:$0xff] %v268_v29  ;;  %v272_v43 = vmax.f32 %v208_v30, 0.0  ;;  %v141_v46 = vmul.f32 %v380_v1, %v70_v28 }
  0x2f   :  { %v273_v44 = vmax.f32 %v209_v31, 0.0  ;;  %v274_v45 = vmax.f32 %v210_v32, 0.0  ;;  %333 = vst [vmem:[%s899_s3 + $0x188] sm:$0xff] %v269_v36  ;;  %334 = vst [vmem:[%s899_s3 + $0x190] sm:$0xff] %v270_v37  ;;  %v142_v49 = vmul.f32 %v380_v1, %v71_v33  ;;  %v143_v50 = vmul.f32 %v380_v1, %v72_v34 }
  0x30   :  { %335 = vst [vmem:[%s899_s3 + $0x198] sm:$0xff] %v271_v38  ;;  %v275_v48 = vmax.f32 %v211_v39, 0.0  ;;  %v144_v51 = vmul.f32 %v380_v1, %v73_v35  ;;  %336 = vst [vmem:[%s899_s3 + $0x1a0] sm:$0xff] %v272_v43  ;;  %v212_v52 = vadd.f32 %v385_v2, %v141_v46  ;;  %v145_v53 = vmul.f32 %v380_v1, %v74_v40 }
  0x31   :  { %337 = vst [vmem:[%s899_s3 + $0x1a8] sm:$0xff] %v273_v44  ;;  %338 = vst [vmem:[%s899_s3 + $0x1b0] sm:$0xff] %v274_v45  ;;  %v146_v54 = vmul.f32 %v380_v1, %v75_v41  ;;  %v147_v55 = vmul.f32 %v380_v1, %v76_v42  ;;  %v213_v56 = vadd.f32 %v385_v2, %v142_v49 }
  0x32   :  { %339 = vst [vmem:[%s899_s3 + $0x1b8] sm:$0xff] %v275_v48  ;;  %v214_v57 = vadd.f32 %v385_v2, %v143_v50  ;;  %v215_v58 = vadd.f32 %v385_v2, %v144_v51  ;;  %v148_v59 = vmul.f32 %v380_v1, %v77_v47  ;;  %v276_v60 = vmax.f32 %v212_v52, 0.0 }
  0x33   :  { %v216_v61 = vadd.f32 %v385_v2, %v145_v53  ;;  %v217_v62 = vadd.f32 %v385_v2, %v146_v54  ;;  %v218_v63 = vadd.f32 %v385_v2, %v147_v55  ;;  %v277_v0 = vmax.f32 %v213_v56, 0.0 }
  0x34   :  { %v278_v3 = vmax.f32 %v214_v57, 0.0  ;;  %v279_v4 = vmax.f32 %v215_v58, 0.0  ;;  %v219_v5 = vadd.f32 %v385_v2, %v148_v59  ;;  %340 = vst [vmem:[%s899_s3 + $0x1c0] sm:$0xff] %v276_v60 }
  0x35   :  { %v280_v6 = vmax.f32 %v216_v61, 0.0  ;;  %v281_v7 = vmax.f32 %v217_v62, 0.0  ;;  %v282_v8 = vmax.f32 %v218_v63, 0.0  ;;  %341 = vst [vmem:[%s899_s3 + $0x1c8] sm:$0xff] %v277_v0 }
  0x36   :  { %342 = vst [vmem:[%s899_s3 + $0x1d0] sm:$0xff] %v278_v3  ;;  %343 = vst [vmem:[%s899_s3 + $0x1d8] sm:$0xff] %v279_v4  ;;  %v283_v1 = vmax.f32 %v219_v5, 0.0 }
  0x37   :  { %344 = vst [vmem:[%s899_s3 + $0x1e0] sm:$0xff] %v280_v6  ;;  %345 = vst [vmem:[%s899_s3 + $0x1e8] sm:$0xff] %v281_v7 }
  0x38   :  { %346 = vst [vmem:[%s899_s3 + $0x1f0] sm:$0xff] %v282_v8  ;;  %347 = vst [vmem:[%s899_s3 + $0x1f8] sm:$0xff] %v283_v1 }

// kernel: basic_block_forward.8
= control target key start
LH: loop header
LB: loop body
LE: loop exit
PB: predicated region body
PF: predicated region fallthrough
CT: control target
= control target key end

     0   :  { %s519_s1 = inlined_call_operand.vmem [shape: bf16[128,128], index: 1, kind: input, shape index: {}]   ;;  %s520_s0 = inlined_call_operand.vmem [shape: f32[128,128], index: 0, kind: input, shape index: {}]   ;;  %s521_s2 = inlined_call_operand.vmem [shape: f32[128,128], index: 2, kind: output, shape index: {}]  }
   0x1   :  { %v376_v0 = vld [vmem:[%s519_s1] sm:$0xff]   ;;  %v377_v1 = vld [vmem:[%s519_s1 + $0x8] sm:$0xff]   ;;  %v378_v2 = vld [vmem:[%s519_s1 + $0x10] sm:$0xff]  }
   0x2   :  { %328 = vmatprep.subr.bf16.mxu0 %v376_v0  ;;  %360 = vmatprep.subr.bf16.mxu1 %v376_v0  ;;  %v379_v3 = vld [vmem:[%s519_s1 + $0x18] sm:$0xff]   ;;  %v48_v4 = vld [vmem:[%s520_s0] sm:$0xff]  ;;  %v49_v5 = vld [vmem:[%s520_s0 + $0x8] sm:$0xff] }
   0x3   :  { %329 = vmatpush3.bf16.msra.mxu0 %v376_v0  ;;  %368 = vmatpush3.bf16.msra.mxu1 %v376_v0  ;;  %v56_v6 = vld [vmem:[%s520_s0 + $0x40] sm:$0xff]  ;;  %v64_v7 = vpack.c.bf16 %v49_v5, %v48_v4  ;;  %v57_v8 = vld [vmem:[%s520_s0 + $0x48] sm:$0xff]  ;;  %v382_v12 = vld [vmem:[%s519_s1 + $0x30] sm:$0xff]  }
   0x4   :  { %330 = vmatprep.subr.bf16.mxu0 %v377_v1  ;;  %361 = vmatprep.subr.bf16.mxu1 %v377_v1  ;;  %v68_v9 = vpack.c.bf16 %v57_v8, %v56_v6  ;;  %v380_v10 = vld [vmem:[%s519_s1 + $0x20] sm:$0xff]   ;;  %v381_v11 = vld [vmem:[%s519_s1 + $0x28] sm:$0xff]   ;;  %v383_v13 = vld [vmem:[%s519_s1 + $0x38] sm:$0xff]  }
   0x5   :  { %344 = vmatprep.mubr.bf16.mxu0 %v64_v7  ;;  %v50_v14 = vld [vmem:[%s520_s0 + $0x10] sm:$0xff]  ;;  %v51_v15 = vld [vmem:[%s520_s0 + $0x18] sm:$0xff]  ;;  %v52_v18 = vld [vmem:[%s520_s0 + $0x20] sm:$0xff] }
   0x6   :  { %352 = vmatprep.mubr.bf16.mxu1 %v68_v9  ;;  %v58_v16 = vld [vmem:[%s520_s0 + $0x50] sm:$0xff]  ;;  %v59_v17 = vld [vmem:[%s520_s0 + $0x58] sm:$0xff]  ;;  %v53_v19 = vld [vmem:[%s520_s0 + $0x28] sm:$0xff]  ;;  %v65_v22 = vpack.c.bf16 %v51_v15, %v50_v14 }
   0x7   :  { %331 = vmatpush3.bf16.msra.mxu0 %v377_v1  ;;  %369 = vmatpush3.bf16.msra.mxu1 %v377_v1  ;;  %v60_v20 = vld [vmem:[%s520_s0 + $0x60] sm:$0xff]  ;;  %v61_v21 = vld [vmem:[%s520_s0 + $0x68] sm:$0xff]  ;;  %v69_v23 = vpack.c.bf16 %v59_v17, %v58_v16  ;;  %v66_v24 = vpack.c.bf16 %v53_v19, %v52_v18  ;;  %v54_v26 = vld [vmem:[%s520_s0 + $0x30] sm:$0xff] }
   0x8   :  { %332 = vmatprep.subr.bf16.mxu0 %v378_v2  ;;  %362 = vmatprep.subr.bf16.mxu1 %v378_v2  ;;  %v70_v25 = vpack.c.bf16 %v61_v21, %v60_v20  ;;  %v55_v27 = vld [vmem:[%s520_s0 + $0x38] sm:$0xff]  ;;  %v62_v28 = vld [vmem:[%s520_s0 + $0x70] sm:$0xff] }
   0x9   :  { %v63_v29 = vld [vmem:[%s520_s0 + $0x78] sm:$0xff]  ;;  %v67_v30 = vpack.c.bf16 %v55_v27, %v54_v26 }
   0xa   :  { %v71_v31 = vpack.c.bf16 %v63_v29, %v62_v28 }
   0xb   :  { %333 = vmatpush3.bf16.msra.mxu0 %v378_v2  ;;  %370 = vmatpush3.bf16.msra.mxu1 %v378_v2 }
   0xc   :  { %334 = vmatprep.subr.bf16.mxu0 %v379_v3  ;;  %363 = vmatprep.subr.bf16.mxu1 %v379_v3 }
   0xf   :  { %335 = vmatpush3.bf16.msra.mxu0 %v379_v3  ;;  %371 = vmatpush3.bf16.msra.mxu1 %v379_v3 }
  0x10   :  { %336 = vmatprep.subr.bf16.mxu0 %v380_v10  ;;  %364 = vmatprep.subr.bf16.mxu1 %v380_v10 }
  0x13   :  { %337 = vmatpush3.bf16.msra.mxu0 %v380_v10  ;;  %372 = vmatpush3.bf16.msra.mxu1 %v380_v10 }
  0x14   :  { %338 = vmatprep.subr.bf16.mxu0 %v381_v11  ;;  %365 = vmatprep.subr.bf16.mxu1 %v381_v11 }
  0x17   :  { %339 = vmatpush3.bf16.msra.mxu0 %v381_v11  ;;  %373 = vmatpush3.bf16.msra.mxu1 %v381_v11 }
  0x18   :  { %340 = vmatprep.subr.bf16.mxu0 %v382_v12  ;;  %366 = vmatprep.subr.bf16.mxu1 %v382_v12 }
  0x1b   :  { %341 = vmatpush3.bf16.msra.mxu0 %v382_v12  ;;  %374 = vmatpush3.bf16.msra.mxu1 %v382_v12 }
  0x1c   :  { %342 = vmatprep.subr.bf16.mxu0 %v383_v13  ;;  %367 = vmatprep.subr.bf16.mxu1 %v383_v13 }
  0x1f   :  { %343 = vmatpush3.bf16.msra.mxu0 %v383_v13  ;;  %375 = vmatpush3.bf16.msra.mxu1 %v383_v13 }
  0x22   :  { %345 = vmatmul.mubr.bf16.vlgmr.msra.gmra.mrb[0].mxu0 %v65_v22  ;;  %353 = vmatmul.mubr.bf16.vlgmr.msra.gmra.mrb[0].mxu1 %v69_v23 }
  0x23   :  { %348 = vmatprep.mubr.bf16.mxu0 %v66_v24  ;;  %356 = vmatprep.mubr.bf16.mxu1 %v70_v25 }
  0x2a   :  { %349 = vmatmul.mubr.bf16.gmra.mrb[4].mxu0 %v67_v30  ;;  %357 = vmatmul.mubr.bf16.gmra.mrb[4].mxu1 %v71_v31 }
  0xf5   :  { %v346_v32 = vpop.f32.mrb[0].mxu0  ;;  %v354_v33 = vpop.f32.mrb[0].mxu1 }
  0xf6   :  { %286 = vst [vmem:[%s521_s2 + $0x10] sm:$0xff] %v346_v32  ;;  %294 = vst [vmem:[%s521_s2 + $0x50] sm:$0xff] %v354_v33  ;;  %v170_v34 = vpop.f32.mrb[1].mxu0  ;;  %v202_v35 = vpop.f32.mrb[1].mxu1 }
  0xf7   :  { %284 = vst [vmem:[%s521_s2] sm:$0xff] %v170_v34  ;;  %292 = vst [vmem:[%s521_s2 + $0x40] sm:$0xff] %v202_v35  ;;  %v347_v36 = vpop.f32.mrb[2].mxu0  ;;  %v355_v37 = vpop.f32.mrb[2].mxu1 }
  0xf8   :  { %287 = vst [vmem:[%s521_s2 + $0x18] sm:$0xff] %v347_v36  ;;  %295 = vst [vmem:[%s521_s2 + $0x58] sm:$0xff] %v355_v37  ;;  %v173_v38 = vpop.f32.mrb[3].mxu0  ;;  %v205_v39 = vpop.f32.mrb[3].mxu1 }
  0xf9   :  { %285 = vst [vmem:[%s521_s2 + $0x8] sm:$0xff] %v173_v38  ;;  %293 = vst [vmem:[%s521_s2 + $0x48] sm:$0xff] %v205_v39 }
  0xfd   :  { %v350_v40 = vpop.f32.mrb[4].mxu0  ;;  %v358_v41 = vpop.f32.mrb[4].mxu1 }
  0xfe   :  { %290 = vst [vmem:[%s521_s2 + $0x30] sm:$0xff] %v350_v40  ;;  %298 = vst [vmem:[%s521_s2 + $0x70] sm:$0xff] %v358_v41  ;;  %v186_v42 = vpop.f32.mrb[5].mxu0  ;;  %v218_v43 = vpop.f32.mrb[5].mxu1 }
  0xff   :  { %288 = vst [vmem:[%s521_s2 + $0x20] sm:$0xff] %v186_v42  ;;  %296 = vst [vmem:[%s521_s2 + $0x60] sm:$0xff] %v218_v43  ;;  %v351_v44 = vpop.f32.mrb[6].mxu0  ;;  %v359_v45 = vpop.f32.mrb[6].mxu1 }
 0x100   :  { %291 = vst [vmem:[%s521_s2 + $0x38] sm:$0xff] %v351_v44  ;;  %299 = vst [vmem:[%s521_s2 + $0x78] sm:$0xff] %v359_v45  ;;  %v189_v46 = vpop.f32.mrb[7].mxu0  ;;  %v221_v47 = vpop.f32.mrb[7].mxu1 }
 0x101   :  { %289 = vst [vmem:[%s521_s2 + $0x28] sm:$0xff] %v189_v46  ;;  %297 = vst [vmem:[%s521_s2 + $0x68] sm:$0xff] %v221_v47 }

// kernel: basic_block_forward.9
= control target key start
LH: loop header
LB: loop body
LE: loop exit
PB: predicated region body
PF: predicated region fallthrough
CT: control target
= control target key end

     0   :  { %v102_v0 = vmov 0.0   ;;  %vm88_vm0 = vcmask 1040384   ;;  %s164_s0 = inlined_call_operand.vmem [shape: f32[128,128], index: 0, kind: input, shape index: {}]   ;;  %s165_s1 = inlined_call_operand.vmem [shape: f32[2,128], index: 1, kind: output, shape index: {}]  }
   0x1   :  { %12 = vst [vmem:[#allocation2] sm:$0x3] %v102_v0  ;;  %v13_v1 = vld [vmem:[%s164_s0] sm:$0xff]  ;;  %v14_v2 = vld [vmem:[%s164_s0 + $0x8] sm:$0xff]  ;;  %v15_v3 = vld [vmem:[%s164_s0 + $0x10] sm:$0xff] }
   0x2   :  { %v16_v4 = vld [vmem:[%s164_s0 + $0x18] sm:$0xff]  ;;  %v30_v5 = vadd.f32 %v14_v2, %v13_v1  ;;  %v51_v6 = vmul.f32 %v13_v1, %v13_v1  ;;  %v52_v7 = vmul.f32 %v14_v2, %v14_v2  ;;  %v53_v8 = vmul.f32 %v15_v3, %v15_v3  ;;  %v17_v9 = vld [vmem:[%s164_s0 + $0x20] sm:$0xff]  ;;  %v18_v13 = vld [vmem:[%s164_s0 + $0x28] sm:$0xff] }
   0x3   :  { %v54_v11 = vmul.f32 %v16_v4, %v16_v4  ;;  %v55_v15 = vmul.f32 %v17_v9, %v17_v9  ;;  %v19_v17 = vld [vmem:[%s164_s0 + $0x30] sm:$0xff]  ;;  %v56_v19 = vmul.f32 %v18_v13, %v18_v13  ;;  %v20_v21 = vld [vmem:[%s164_s0 + $0x38] sm:$0xff]  ;;  %v21_v25 = vld [vmem:[%s164_s0 + $0x40] sm:$0xff] }
   0x4   :  { %v31_v10 = vadd.f32 %v30_v5, %v15_v3  ;;  %v67_v12 = vadd.f32 %v52_v7, %v51_v6  ;;  %v57_v23 = vmul.f32 %v19_v17, %v19_v17  ;;  %v58_v27 = vmul.f32 %v20_v21, %v20_v21  ;;  %v22_v29 = vld [vmem:[%s164_s0 + $0x48] sm:$0xff]  ;;  %v23_v33 = vld [vmem:[%s164_s0 + $0x50] sm:$0xff]  ;;  %v24_v37 = vld [vmem:[%s164_s0 + $0x58] sm:$0xff] }
   0x5   :  { %v59_v31 = vmul.f32 %v21_v25, %v21_v25  ;;  %v60_v35 = vmul.f32 %v22_v29, %v22_v29  ;;  %v61_v39 = vmul.f32 %v23_v33, %v23_v33  ;;  %v25_v41 = vld [vmem:[%s164_s0 + $0x60] sm:$0xff]  ;;  %v62_v43 = vmul.f32 %v24_v37, %v24_v37  ;;  %v26_v45 = vld [vmem:[%s164_s0 + $0x68] sm:$0xff]  ;;  %v27_v49 = vld [vmem:[%s164_s0 + $0x70] sm:$0xff] }
   0x6   :  { %v32_v14 = vadd.f32 %v31_v10, %v16_v4  ;;  %v68_v16 = vadd.f32 %v67_v12, %v53_v8  ;;  %v63_v47 = vmul.f32 %v25_v41, %v25_v41  ;;  %v64_v51 = vmul.f32 %v26_v45, %v26_v45  ;;  %v28_v53 = vld [vmem:[%s164_s0 + $0x78] sm:$0xff] }
   0x7   :  { %v65_v55 = vmul.f32 %v27_v49, %v27_v49  ;;  %v66_v58 = vmul.f32 %v28_v53, %v28_v53 }
   0x8   :  { %v33_v18 = vadd.f32 %v32_v14, %v17_v9  ;;  %v69_v20 = vadd.f32 %v68_v16, %v54_v11  ;;  %v29_v10 = vld [vmem:[#allocation2] sm:$0x3] }
   0xa   :  { %v34_v22 = vadd.f32 %v33_v18, %v18_v13  ;;  %v70_v24 = vadd.f32 %v69_v20, %v55_v15 }
   0xc   :  { %v35_v26 = vadd.f32 %v34_v22, %v19_v17  ;;  %v71_v28 = vadd.f32 %v70_v24, %v56_v19 }
   0xe   :  { %v36_v30 = vadd.f32 %v35_v26, %v20_v21  ;;  %v72_v32 = vadd.f32 %v71_v28, %v57_v23 }
  0x10   :  { %v37_v34 = vadd.f32 %v36_v30, %v21_v25  ;;  %v73_v36 = vadd.f32 %v72_v32, %v58_v27 }
  0x12   :  { %v38_v38 = vadd.f32 %v37_v34, %v22_v29  ;;  %v74_v40 = vadd.f32 %v73_v36, %v59_v31 }
  0x14   :  { %v39_v42 = vadd.f32 %v38_v38, %v23_v33  ;;  %v75_v44 = vadd.f32 %v74_v40, %v60_v35 }
  0x16   :  { %v40_v46 = vadd.f32 %v39_v42, %v24_v37  ;;  %v76_v48 = vadd.f32 %v75_v44, %v61_v39 }
  0x18   :  { %v41_v50 = vadd.f32 %v40_v46, %v25_v41  ;;  %v77_v52 = vadd.f32 %v76_v48, %v62_v43 }
  0x1a   :  { %v42_v54 = vadd.f32 %v41_v50, %v26_v45  ;;  %v78_v56 = vadd.f32 %v77_v52, %v63_v47 }
  0x1c   :  { %v43_v57 = vadd.f32 %v42_v54, %v27_v49  ;;  %v79_v59 = vadd.f32 %v78_v56, %v64_v51 }
  0x1e   :  { %v44_v60 = vadd.f32 %v43_v57, %v28_v53  ;;  %v80_v61 = vadd.f32 %v79_v59, %v65_v55 }
  0x20   :  { %v45_v62 = vrot.slane %v44_v60, 4  ;;  %v81_v63 = vadd.f32 %v80_v61, %v66_v58 }
  0x22   :  { %v46_v0 = vadd.f32 %v45_v62, %v44_v60  ;;  %v82_v1 = vrot.slane %v81_v63, 4 }
  0x24   :  { %v47_v2 = vrot.slane %v46_v0, 2  ;;  %v83_v3 = vadd.f32 %v82_v1, %v81_v63 }
  0x26   :  { %v48_v4 = vadd.f32 %v47_v2, %v46_v0  ;;  %v84_v5 = vrot.slane %v83_v3, 2 }
  0x28   :  { %v49_v6 = vrot.slane %v48_v4, 1  ;;  %v85_v7 = vadd.f32 %v84_v5, %v83_v3 }
  0x2a   :  { %v50_v8 = vadd.f32 %v49_v6, %v48_v4  ;;  %v86_v9 = vrot.slane %v85_v7, 1 }
  0x2c   :  { %v87_v11 = vadd.f32 %v86_v9, %v85_v7 }
  0x2e   :  { %v89_v12 = vsel %vm88_vm0, %v50_v8, %v87_v11 }
  0x2f   :  { %v90_v13 = vadd.f32 %v89_v12, %v29_v10 }
  0x31   :  { %91 = vst [vmem:[#allocation2] sm:$0x3] %v90_v13 }
  0x38   :  { %v95_v14 = vld [vmem:[#allocation2] sm:$0x3] }
  0x39   :  { %96 = vst [vmem:[%s165_s1] sm:$0x3] %v95_v14 }

// kernel: basic_block_forward.10
= control target key start
LH: loop header
LB: loop body
LE: loop exit
PB: predicated region body
PF: predicated region fallthrough
CT: control target
= control target key end

     0   :  { %s2562_s12 = smov 0   ;;  %s2564_s13 = smov 0   ;;  %s2962_s0 = inlined_call_operand.vmem [shape: f32[8,9,9,128], index: 0, kind: input, shape index: {}]   ;;  %s2963_s1 = inlined_call_operand.vmem [shape: bf16[9,128,128], index: 1, kind: input, shape index: {}]   ;;  %s2964_s2 = inlined_call_operand.vmem [shape: f32[128,128], index: 2, kind: output, shape index: {0}]   ;;  %s2965_s3 = inlined_call_operand.vmem [shape: f32[2,2,128], index: 3, kind: output, shape index: {1}]  }
   0x1   :  { %s2566_s14 = smov 0  }
   0x2 LB: > { %s26_s15 = sadd.s32 1, %s2536_s13  ;;  %p1753_p0 = scmp.ge.s32.totalorder %s2540_s14, 1  ;;  %s2540_s14 = sphi %s2566_s14, %s14_s14   ;;  %s2536_s13 = sphi %s2564_s13, %s2967_s13   ;;  %s2532_s12 = sphi %s2562_s12, %s2966_s12  }
   0x3   : > { %p28_p1 = scmp.ge.s32.totalorder %s26_s15, 2  ;;  %p167_p2 = scmp.lt.s32.totalorder %s2540_s14, 3 }
   0x5   : > { %s2969_s15 = smov (%p28_p1, %s26_s15), 0  ;;  %p168_p3 = pnand %p1753_p0, %p167_p2 }
   0x6   : > { %v2446_v0 = vld [vmem:[%s2963_s1 + $0x40] sm:$0xff] (!%p168_p3)   ;;  %s1754_s18 = sshll.u32 (!%p168_p3), %s2532_s12, 2  ;;  %v2448_v2 = vld [vmem:[%s2963_s1 + $0x48] sm:$0xff] (!%p168_p3)   ;;  %v2450_v4 = vld [vmem:[%s2963_s1 + $0x50] sm:$0xff] (!%p168_p3)   ;;  %p226_p6 = scmp.lt.s32.totalorder (!%p168_p3), %s2532_s12, 1  ;;  %vm1614_vm0 = vcmask (!%p168_p3), 1040384  }
   0x7   : > { %171 = sbr.rel (%p168_p3) target bundleno = 415 (0x19f), region = 28  ;;  %v2447_v1 = vld [vmem:[%s2963_s1 + $0x100] sm:$0xff] (!%p168_p3)   ;;  %p207_p4 = scmp.lt.s32.totalorder (!%p168_p3), %s1754_s18, 7  ;;  %2125 = vmatprep.subr.bf16.mxu1 (!%p168_p3), %v2446_v0  ;;  %v2449_v3 = vld [vmem:[%s2963_s1 + $0x108] sm:$0xff] (!%p168_p3)   ;;  %v2451_v5 = vld [vmem:[%s2963_s1 + $0x110] sm:$0xff] (!%p168_p3)  }
   0x8   : > { %2221 = vmatprep.subr.bf16.mxu0 (!%p168_p3), %v2447_v1  ;;  %2126 = vmatpush3.bf16.msra.mxu1 (!%p168_p3), %v2446_v0  ;;  %v2452_v6 = vld [vmem:[%s2963_s1 + $0x58] sm:$0xff] (!%p168_p3)   ;;  %v2454_v8 = vld [vmem:[%s2963_s1 + $0x60] sm:$0xff] (!%p168_p3)   ;;  %v2456_v10 = vld [vmem:[%s2963_s1 + $0x68] sm:$0xff] (!%p168_p3)  }
   0x9   : > { %2222 = vmatpush3.bf16.msra.mxu0 (!%p168_p3), %v2447_v1  ;;  %2127 = vmatprep.subr.bf16.mxu1 (!%p168_p3), %v2448_v2  ;;  %v2453_v7 = vld [vmem:[%s2963_s1 + $0x118] sm:$0xff] (!%p168_p3)   ;;  %v2455_v9 = vld [vmem:[%s2963_s1 + $0x120] sm:$0xff] (!%p168_p3)   ;;  %v2457_v13 = vld [vmem:[%s2963_s1 + $0x128] sm:$0xff] (!%p168_p3)  }
   0xa   : > { %2223 = vmatprep.subr.bf16.mxu0 (!%p168_p3), %v2449_v3  ;;  %v2458_v19 = vld [vmem:[%s2963_s1 + $0x70] sm:$0xff] (!%p168_p3)   ;;  %v2460_v22 = vld [vmem:[%s2963_s1 + $0x78] sm:$0xff] (!%p168_p3)   ;;  %v2462_v24 = vld [vmem:[%s2963_s1] sm:$0xff] (!%p168_p3)  }
   0xb   : > { %v2459_v21 = vld [vmem:[%s2963_s1 + $0x130] sm:$0xff] (!%p168_p3)   ;;  %v2461_v23 = vld [vmem:[%s2963_s1 + $0x138] sm:$0xff] (!%p168_p3)   ;;  %v2463_v28 = vld [vmem:[%s2963_s1 + $0x140] sm:$0xff] (!%p168_p3)  }
   0xc   : > { %2128 = vmatpush3.bf16.msra.mxu1 (!%p168_p3), %v2448_v2  ;;  %v2464_v34 = vld [vmem:[%s2963_s1 + $0x8] sm:$0xff] (!%p168_p3)   ;;  %v2466_v39 = vld [vmem:[%s2963_s1 + $0x10] sm:$0xff] (!%p168_p3)   ;;  %v2468_v53 = vld [vmem:[%s2963_s1 + $0x18] sm:$0xff] (!%p168_p3)  }
   0xd   : > { %2224 = vmatpush3.bf16.msra.mxu0 (!%p168_p3), %v2449_v3  ;;  %2129 = vmatprep.subr.bf16.mxu1 (!%p168_p3), %v2450_v4  ;;  %v2465_v37 = vld [vmem:[%s2963_s1 + $0x148] sm:$0xff] (!%p168_p3)   ;;  %v2467_v46 = vld [vmem:[%s2963_s1 + $0x150] sm:$0xff] (!%p168_p3)   ;;  %v2469_v54 = vld [vmem:[%s2963_s1 + $0x158] sm:$0xff] (!%p168_p3)  }
   0xe   : > { %s2971_s18 = smov (!%p207_p4, %s1754_s18), 7  ;;  %2225 = vmatprep.subr.bf16.mxu0 %v2451_v5  ;;  %v2470_v57 = vld [vmem:[%s2963_s1 + $0x20] sm:$0xff]   ;;  %v2472_v59 = vld [vmem:[%s2963_s1 + $0x28] sm:$0xff]   ;;  %v2474_v61 = vld [vmem:[%s2963_s1 + $0x30] sm:$0xff]  }
   0xf   : > { %s2421_s6 = smul.u32 144, %s2971_s18  ;;  %v2471_v58 = vld [vmem:[%s2963_s1 + $0x160] sm:$0xff]   ;;  %v2473_v60 = vld [vmem:[%s2963_s1 + $0x168] sm:$0xff]   ;;  %v2475_v62 = vld [vmem:[%s2963_s1 + $0x170] sm:$0xff]  }
  0x10   : > { %2130 = vmatpush3.bf16.msra.mxu1 %v2450_v4  ;;  %v2476_v63 = vld [vmem:[%s2963_s1 + $0x38] sm:$0xff]   ;;  %v2478_v1 = vld [vmem:[%s2963_s1 + $0x80] sm:$0xff]  }
  0x11   : > { %2226 = vmatpush3.bf16.msra.mxu0 %v2451_v5  ;;  %2131 = vmatprep.subr.bf16.mxu1 %v2452_v6  ;;  %s2616_s17 = scalar_lea.vmem %s2962_s0, %s2421_s6  ;;  %v2477_v0 = vld [vmem:[%s2963_s1 + $0x178] sm:$0xff]  }
  0x12   : > { %2227 = vmatprep.subr.bf16.mxu0 %v2453_v7  ;;  %v1759_v11 = vld [vmem:[%s2616_s17 + $0x90] sm:$0xff]  ;;  %v2623_v12 = vld [vmem:[%s2616_s17 + $0xa0] sm:$0xff] }
  0x13   : > { %v271_v14 = vpack.c.bf16 %v2623_v12, %v1759_v11  ;;  %v1855_v15 = vld [vmem:[%s2616_s17 + $0x1b0] sm:$0xff]  ;;  %v1856_v16 = vld [vmem:[%s2616_s17 + $0x1c0] sm:$0xff] }
  0x14   : > { %2132 = vmatpush3.bf16.msra.mxu1 %v2452_v6  ;;  %v828_v17 = vpack.c.bf16 %v1856_v16, %v1855_v15  ;;  %v2632_v18 = vld [vmem:[%s2616_s17 + $0xb0] sm:$0xff]  ;;  %v2652_v25 = vld [vmem:[%s2616_s17 + $0xc0] sm:$0xff]  ;;  %v2481_v15 = vld [vmem:[%s2963_s1 + $0x188] sm:$0xff]  }
  0x15   : > { %2228 = vmatpush3.bf16.msra.mxu0 %v2453_v7  ;;  %2133 = vmatprep.subr.bf16.mxu1 %v2454_v8  ;;  %v1280_v20 = vpack.c.bf16 %v2632_v18, %v2623_v12  ;;  %v1857_v26 = vld [vmem:[%s2616_s17 + $0x1d0] sm:$0xff]  ;;  %v1858_v27 = vld [vmem:[%s2616_s17 + $0x1e0] sm:$0xff]  ;;  %v272_v29 = vpack.c.bf16 %v2652_v25, %v2632_v18 }
  0x16   : > { %2229 = vmatprep.subr.bf16.mxu0 %v2455_v9  ;;  %2141 = vmatprep.mubr.bf16.mxu1 %v271_v14  ;;  %v2662_v30 = vld [vmem:[%s2616_s17 + $0xd0] sm:$0xff]  ;;  %v829_v31 = vpack.c.bf16 %v1858_v27, %v1857_v26  ;;  %v2665_v32 = vld [vmem:[%s2616_s17 + $0xe0] sm:$0xff] }
  0x17   : > { %2237 = vmatprep.mubr.bf16.mxu0 %v828_v17  ;;  %v1281_v33 = vpack.c.bf16 %v2662_v30, %v2652_v25  ;;  %v1859_v35 = vld [vmem:[%s2616_s17 + $0x1f0] sm:$0xff]  ;;  %v1860_v36 = vld [vmem:[%s2616_s17 + $0x200] sm:$0xff]  ;;  %v273_v38 = vpack.c.bf16 %v2665_v32, %v2662_v30  ;;  %v2513_v30 = vld [vmem:[%s2963_s1 + $0x218] sm:$0xff]  }
  0x18   : > { %2134 = vmatpush3.bf16.msra.mxu1 %v2454_v8  ;;  %v830_v40 = vpack.c.bf16 %v1860_v36, %v1859_v35  ;;  %v2683_v41 = vld [vmem:[%s2616_s17 + $0xf0] sm:$0xff]  ;;  %v2686_v42 = vld [vmem:[%s2616_s17 + $0x100] sm:$0xff]  ;;  %v2485_v35 = vld [vmem:[%s2963_s1 + $0x198] sm:$0xff]  }
  0x19   : > { %2230 = vmatpush3.bf16.msra.mxu0 %v2455_v9  ;;  %2135 = vmatprep.subr.bf16.mxu1 %v2456_v10  ;;  %v1861_v43 = vld [vmem:[%s2616_s17 + $0x210] sm:$0xff]  ;;  %v1282_v44 = vpack.c.bf16 %v2683_v41, %v2665_v32  ;;  %v1862_v45 = vld [vmem:[%s2616_s17 + $0x220] sm:$0xff]  ;;  %v274_v48 = vpack.c.bf16 %v2686_v42, %v2683_v41  ;;  %v2515_v41 = vld [vmem:[%s2963_s1 + $0x228] sm:$0xff]  }
  0x1a   : > { %2231 = vmatprep.subr.bf16.mxu0 %v2457_v13  ;;  %v234_v47 = vld [vmem:[%s2616_s17] sm:$0xff]  ;;  %v2699_v49 = vld [vmem:[%s2616_s17 + $0x10] sm:$0xff]  ;;  %v831_v50 = vpack.c.bf16 %v1862_v45, %v1861_v43  ;;  %v2489_v43 = vld [vmem:[%s2963_s1 + $0x1a8] sm:$0xff]  }
  0x1b   : > { %v1887_v51 = vld [vmem:[%s2616_s17 + $0x121] sm:$0xff]  ;;  %v1888_v52 = vld [vmem:[%s2616_s17 + $0x131] sm:$0xff]  ;;  %v242_v55 = vpack.c.bf16 %v2699_v49, %v234_v47 }
  0x1c   : > { %2136 = vmatpush3.bf16.msra.mxu1 %v2456_v10  ;;  %v978_v56 = vpack.c.bf16 %v1888_v52, %v1887_v51  ;;  %v236_v2 = vld [vmem:[%s2616_s17 + $0x20] sm:$0xff]  ;;  %v2739_v3 = vld [vmem:[%s2616_s17 + $0x30] sm:$0xff]  ;;  %v2480_v10 = vld [vmem:[%s2963_s1 + $0x88] sm:$0xff]  }
  0x1d   : > { %2232 = vmatpush3.bf16.msra.mxu0 %v2457_v13  ;;  %2137 = vmatprep.subr.bf16.mxu1 %v2458_v19  ;;  %v1889_v4 = vld [vmem:[%s2616_s17 + $0x141] sm:$0xff]  ;;  %v1890_v5 = vld [vmem:[%s2616_s17 + $0x151] sm:$0xff]  ;;  %v243_v9 = vpack.c.bf16 %v2739_v3, %v236_v2 }
  0x1e   : > { %2233 = vmatprep.subr.bf16.mxu0 %v2459_v21  ;;  %v2479_v6 = vld [vmem:[%s2963_s1 + $0x180] sm:$0xff]   ;;  %v2750_v8 = vld [vmem:[%s2616_s17 + $0x50] sm:$0xff]  ;;  %v979_v13 = vpack.c.bf16 %v1890_v5, %v1889_v4  ;;  %v2492_v47 = vld [vmem:[%s2963_s1 + $0xb8] sm:$0xff]  }
  0x1f   : > { %v2747_v7 = vld [vmem:[%s2616_s17 + $0x40] sm:$0xff]  ;;  %v1892_v14 = vld [vmem:[%s2616_s17 + $0x171] sm:$0xff] }
  0x20   : > { %2138 = vmatpush3.bf16.msra.mxu1 %v2458_v19  ;;  %v1891_v11 = vld [vmem:[%s2616_s17 + $0x161] sm:$0xff]  ;;  %v244_v16 = vpack.c.bf16 %v2750_v8, %v2747_v7  ;;  %v2482_v19 = vld [vmem:[%s2963_s1 + $0x90] sm:$0xff]  }
  0x21   : > { %2234 = vmatpush3.bf16.msra.mxu0 %v2459_v21  ;;  %2139 = vmatprep.subr.bf16.mxu1 %v2460_v22  ;;  %v2764_v17 = vld [vmem:[%s2616_s17 + $0x60] sm:$0xff]  ;;  %v980_v21 = vpack.c.bf16 %v1892_v14, %v1891_v11  ;;  %v1894_v26 = vld [vmem:[%s2616_s17 + $0x191] sm:$0xff]  ;;  %v2504_v11 = vld [vmem:[%s2963_s1 + $0xe8] sm:$0xff]  }
  0x22   : > { %2235 = vmatprep.subr.bf16.mxu0 %v2461_v23  ;;  %v518_v27 = vld [vmem:[%s2616_s17 + $0x1] sm:$0xff]  ;;  %v2490_v45 = vld [vmem:[%s2963_s1 + $0xb0] sm:$0xff]   ;;  %v2509_v14 = vld [vmem:[%s2963_s1 + $0x1f8] sm:$0xff]  }
  0x23   : > { %v2494_v51 = vld [vmem:[%s2963_s1 + $0xc0] sm:$0xff]   ;;  %v1824_v4 = vld [vmem:[%s2616_s17 + $0x130] sm:$0xff] }
  0x24   : > { %2140 = vmatpush3.bf16.msra.mxu1 %v2460_v22  ;;  %v2770_v22 = vld [vmem:[%s2616_s17 + $0x70] sm:$0xff]  ;;  %v2495_v52 = vld [vmem:[%s2963_s1 + $0x1c0] sm:$0xff]  }
  0x25   : > { %2236 = vmatpush3.bf16.msra.mxu0 %v2461_v23  ;;  %2149 = vmatprep.subr.bf16.mxu1 %v2462_v24  ;;  %v2483_v23 = vld [vmem:[%s2963_s1 + $0x190] sm:$0xff]   ;;  %v2514_v32 = vld [vmem:[%s2963_s1 + $0x220] sm:$0xff]  }
  0x26   : > { %2245 = vmatprep.subr.bf16.mxu0 %v2463_v28  ;;  %v2506_v12 = vld [vmem:[%s2963_s1 + $0xf0] sm:$0xff]  }
  0x27   : > { %2142 = vmatmul.mubr.bf16.vlgmr.msra.gmra.mrb[0].mxu1 %v272_v29  ;;  %v2781_v29 = vld [vmem:[%s2616_s17 + $0x11] sm:$0xff] }
  0x28   : > { %2150 = vmatpush3.bf16.msra.mxu1 %v2462_v24  ;;  %2238 = vmatmul.mubr.bf16.vlgmr.msra.gmra.mrb[0].mxu0 %v829_v31  ;;  %v1893_v24 = vld [vmem:[%s2616_s17 + $0x181] sm:$0xff]  ;;  %v526_v36 = vpack.c.bf16 %v2781_v29, %v518_v27  ;;  %v2507_v18 = vld [vmem:[%s2963_s1 + $0x1f0] sm:$0xff]  }
  0x29   : > { %2246 = vmatpush3.bf16.msra.mxu0 %v2463_v28  ;;  %2151 = vmatprep.subr.bf16.mxu1 %v2464_v34  ;;  %v245_v28 = vpack.c.bf16 %v2770_v22, %v2764_v17  ;;  %v981_v31 = vpack.c.bf16 %v1894_v26, %v1893_v24  ;;  %v1829_v26 = vld [vmem:[%s2616_s17 + $0x180] sm:$0xff]  ;;  %v1830_v27 = vld [vmem:[%s2616_s17 + $0x190] sm:$0xff] }
  0x2a   : > { %2247 = vmatprep.subr.bf16.mxu0 %v2465_v37  ;;  %2145 = vmatprep.mubr.bf16.mxu1 %v273_v38  ;;  %v2486_v38 = vld [vmem:[%s2963_s1 + $0xa0] sm:$0xff]  }
  0x2b   : > { %2241 = vmatprep.mubr.bf16.mxu0 %v830_v40  ;;  %v2488_v40 = vld [vmem:[%s2963_s1 + $0xa8] sm:$0xff]  }
  0x2c   : > { %2152 = vmatpush3.bf16.msra.mxu1 %v2464_v34  ;;  %v2484_v34 = vld [vmem:[%s2963_s1 + $0x98] sm:$0xff]  }
  0x2d   : > { %2248 = vmatpush3.bf16.msra.mxu0 %v2465_v37  ;;  %2153 = vmatprep.subr.bf16.mxu1 %v2466_v39  ;;  %v1129_v37 = vpack.c.bf16 %v236_v2, %v2699_v49  ;;  %v2816_v49 = vld [vmem:[%s2616_s17 + $0x21] sm:$0xff] }
  0x2e   : > { %2249 = vmatprep.subr.bf16.mxu0 %v2467_v46 }
  0x2f   : > { %2146 = vmatmul.mubr.bf16.gmra.mrb[4].mxu1 %v274_v48  ;;  %v2493_v48 = vld [vmem:[%s2963_s1 + $0x1b8] sm:$0xff]  }
  0x30   : > { %2154 = vmatpush3.bf16.msra.mxu1 %v2466_v39  ;;  %2242 = vmatmul.mubr.bf16.gmra.mrb[4].mxu0 %v831_v50  ;;  %v2487_v39 = vld [vmem:[%s2963_s1 + $0x1a0] sm:$0xff]   ;;  %v2819_v50 = vld [vmem:[%s2616_s17 + $0x31] sm:$0xff] }
  0x31   : > { %2250 = vmatpush3.bf16.msra.mxu0 %v2467_v46  ;;  %2155 = vmatprep.subr.bf16.mxu1 %v2468_v53  ;;  %v2491_v46 = vld [vmem:[%s2963_s1 + $0x1b0] sm:$0xff]  }
  0x32   : > { %2251 = vmatprep.subr.bf16.mxu0 %v2469_v54  ;;  %2165 = vmatprep.mubr.bf16.mxu1 %v242_v55  ;;  %v2833_v55 = vld [vmem:[%s2616_s17 + $0x51] sm:$0xff] }
  0x33   : > { %2261 = vmatprep.mubr.bf16.mxu0 %v978_v56  ;;  %v1130_v56 = vpack.c.bf16 %v2747_v7, %v2739_v3  ;;  %v1823_v3 = vld [vmem:[%s2616_s17 + $0x120] sm:$0xff]  ;;  %v2501_v7 = vld [vmem:[%s2963_s1 + $0x1d8] sm:$0xff]  }
  0x34   : > { %2156 = vmatpush3.bf16.msra.mxu1 %v2468_v53  ;;  %v527_v53 = vpack.c.bf16 %v2819_v50, %v2816_v49 }
  0x35   : > { %2252 = vmatpush3.bf16.msra.mxu0 %v2469_v54  ;;  %2157 = vmatprep.subr.bf16.mxu1 %v2470_v57  ;;  %v2830_v54 = vld [vmem:[%s2616_s17 + $0x41] sm:$0xff] }
  0x36   : > { %2253 = vmatprep.subr.bf16.mxu0 %v2471_v58 }
  0x38   : > { %2158 = vmatpush3.bf16.msra.mxu1 %v2470_v57  ;;  %v2496_v57 = vld [vmem:[%s2963_s1 + $0xc8] sm:$0xff]  }
  0x39   : > { %2254 = vmatpush3.bf16.msra.mxu0 %v2471_v58  ;;  %2159 = vmatprep.subr.bf16.mxu1 %v2472_v59  ;;  %v2497_v58 = vld [vmem:[%s2963_s1 + $0x1c8] sm:$0xff]  }
  0x3a   : > { %2255 = vmatprep.subr.bf16.mxu0 %v2473_v60 }
  0x3c   : > { %2160 = vmatpush3.bf16.msra.mxu1 %v2472_v59  ;;  %v528_v59 = vpack.c.bf16 %v2833_v55, %v2830_v54 }
  0x3d   : > { %2256 = vmatpush3.bf16.msra.mxu0 %v2473_v60  ;;  %2161 = vmatprep.subr.bf16.mxu1 %v2474_v61  ;;  %v1131_v60 = vpack.c.bf16 %v2764_v17, %v2750_v8  ;;  %v677_v8 = vpack.c.bf16 %v1824_v4, %v1823_v3  ;;  %v2510_v17 = vld [vmem:[%s2963_s1 + $0x200] sm:$0xff]  }
  0x3e   : > { %2257 = vmatprep.subr.bf16.mxu0 %v2475_v62 }
  0x40   : > { %2162 = vmatpush3.bf16.msra.mxu1 %v2474_v61  ;;  %v2848_v61 = vld [vmem:[%s2616_s17 + $0x61] sm:$0xff] }
  0x41   : > { %2258 = vmatpush3.bf16.msra.mxu0 %v2475_v62  ;;  %2163 = vmatprep.subr.bf16.mxu1 %v2476_v63  ;;  %v2851_v62 = vld [vmem:[%s2616_s17 + $0x71] sm:$0xff] }
  0x42   : > { %2259 = vmatprep.subr.bf16.mxu0 %v2477_v0  ;;  %v529_v2 = vpack.c.bf16 %v2851_v62, %v2848_v61 }
  0x44   : > { %2164 = vmatpush3.bf16.msra.mxu1 %v2476_v63  ;;  %v2498_v63 = vld [vmem:[%s2963_s1 + $0xd0] sm:$0xff]  }
  0x45   : > { %2260 = vmatpush3.bf16.msra.mxu0 %v2477_v0  ;;  %2173 = vmatprep.subr.bf16.mxu1 %v2478_v1  ;;  %v1926_v0 = vld [vmem:[%s2616_s17 + $0x80] sm:$0xff] }
  0x46   : > { %2269 = vmatprep.subr.bf16.mxu0 %v2479_v6  ;;  %v1132_v5 = vpack.c.bf16 %v1926_v0, %v2770_v22  ;;  %v1828_v22 = vld [vmem:[%s2616_s17 + $0x170] sm:$0xff] }
  0x47   : > { %2166 = vmatmul.mubr.bf16.vlgmr.msra.gmra.mrb[0].mxu1 %v243_v9  ;;  %v2502_v9 = vld [vmem:[%s2963_s1 + $0xe0] sm:$0xff]  }
  0x48   : > { %2174 = vmatpush3.bf16.msra.mxu1 %v2478_v1  ;;  %2262 = vmatmul.mubr.bf16.vlgmr.msra.gmra.mrb[0].mxu0 %v979_v13  ;;  %v2499_v1 = vld [vmem:[%s2963_s1 + $0x1d0] sm:$0xff]   ;;  %v2505_v13 = vld [vmem:[%s2963_s1 + $0x1e8] sm:$0xff]  }
  0x49   : > { %2270 = vmatpush3.bf16.msra.mxu0 %v2479_v6  ;;  %2175 = vmatprep.subr.bf16.mxu1 %v2480_v10  ;;  %v2500_v6 = vld [vmem:[%s2963_s1 + $0xd8] sm:$0xff]  }
  0x4a   : > { %2271 = vmatprep.subr.bf16.mxu0 %v2481_v15  ;;  %2169 = vmatprep.mubr.bf16.mxu1 %v244_v16  ;;  %v1826_v16 = vld [vmem:[%s2616_s17 + $0x150] sm:$0xff] }
  0x4b   : > { %2265 = vmatprep.mubr.bf16.mxu0 %v980_v21  ;;  %v1827_v21 = vld [vmem:[%s2616_s17 + $0x160] sm:$0xff] }
  0x4c   : > { %2176 = vmatpush3.bf16.msra.mxu1 %v2480_v10  ;;  %v2503_v10 = vld [vmem:[%s2963_s1 + $0x1e0] sm:$0xff]   ;;  %v679_v24 = vpack.c.bf16 %v1828_v22, %v1827_v21 }
  0x4d   : > { %2272 = vmatpush3.bf16.msra.mxu0 %v2481_v15  ;;  %2177 = vmatprep.subr.bf16.mxu1 %v2482_v19  ;;  %v1825_v15 = vld [vmem:[%s2616_s17 + $0x140] sm:$0xff] }
  0x4e   : > { %2273 = vmatprep.subr.bf16.mxu0 %v2483_v23 }
  0x4f   : > { %2170 = vmatmul.mubr.bf16.gmra.mrb[4].mxu1 %v245_v28  ;;  %v1958_v28 = vld [vmem:[%s2616_s17 + $0x110] sm:$0xff] }
  0x50   : > { %2178 = vmatpush3.bf16.msra.mxu1 %v2482_v19  ;;  %2266 = vmatmul.mubr.bf16.gmra.mrb[4].mxu0 %v981_v31  ;;  %v678_v19 = vpack.c.bf16 %v1826_v16, %v1825_v15  ;;  %v2512_v31 = vld [vmem:[%s2963_s1 + $0x210] sm:$0xff]   ;;  %v1283_v25 = vpack.c.bf16 %v1958_v28, %v2686_v42 }
  0x51   : > { %2274 = vmatpush3.bf16.msra.mxu0 %v2483_v23  ;;  %2179 = vmatprep.subr.bf16.mxu1 %v2484_v34  ;;  %v2511_v23 = vld [vmem:[%s2963_s1 + $0x208] sm:$0xff]   ;;  %v2516_v42 = vld [vmem:[%s2963_s1 + $0x230] sm:$0xff]  }
  0x52   : > { %2275 = vmatprep.subr.bf16.mxu0 %v2485_v35  ;;  %2189 = vmatprep.mubr.bf16.mxu1 %v526_v36 }
  0x53   : > { %2285 = vmatprep.mubr.bf16.mxu0 %v1129_v37  ;;  %v1431_v37 = vpack.c.bf16 %v2830_v54, %v2819_v50 }
  0x54   : > { %2180 = vmatpush3.bf16.msra.mxu1 %v2484_v34  ;;  %v680_v34 = vpack.c.bf16 %v1830_v27, %v1829_v26 }
  0x55   : > { %2276 = vmatpush3.bf16.msra.mxu0 %v2485_v35  ;;  %2181 = vmatprep.subr.bf16.mxu1 %v2486_v38  ;;  %v1432_v35 = vpack.c.bf16 %v2848_v61, %v2833_v55 }
  0x56   : > { %2277 = vmatprep.subr.bf16.mxu0 %v2487_v39 }
  0x58   : > { %2182 = vmatpush3.bf16.msra.mxu1 %v2486_v38 }
  0x59   : > { %2278 = vmatpush3.bf16.msra.mxu0 %v2487_v39  ;;  %2183 = vmatprep.subr.bf16.mxu1 %v2488_v40 }
  0x5a   : > { %2279 = vmatprep.subr.bf16.mxu0 %v2489_v43 }
  0x5c   : > { %2184 = vmatpush3.bf16.msra.mxu1 %v2488_v40 }
  0x5d   : > { %2280 = vmatpush3.bf16.msra.mxu0 %v2489_v43  ;;  %2185 = vmatprep.subr.bf16.mxu1 %v2490_v45 }
  0x5e   : > { %2281 = vmatprep.subr.bf16.mxu0 %v2491_v46 }
  0x60   : > { %2186 = vmatpush3.bf16.msra.mxu1 %v2490_v45 }
  0x61   : > { %2282 = vmatpush3.bf16.msra.mxu0 %v2491_v46  ;;  %2187 = vmatprep.subr.bf16.mxu1 %v2492_v47 }
  0x62   : > { %2283 = vmatprep.subr.bf16.mxu0 %v2493_v48 }
  0x64   : > { %2188 = vmatpush3.bf16.msra.mxu1 %v2492_v47 }
  0x65   : > { %2284 = vmatpush3.bf16.msra.mxu0 %v2493_v48  ;;  %2197 = vmatprep.subr.bf16.mxu1 %v2494_v51 }
  0x66   : > { %2293 = vmatprep.subr.bf16.mxu0 %v2495_v52 }
  0x67   : > { %2190 = vmatmul.mubr.bf16.vlgmr.msra.gmra.mrb[0].mxu1 %v527_v53 }
  0x68   : > { %2198 = vmatpush3.bf16.msra.mxu1 %v2494_v51  ;;  %2286 = vmatmul.mubr.bf16.vlgmr.msra.gmra.mrb[0].mxu0 %v1130_v56 }
  0x69   : > { %2294 = vmatpush3.bf16.msra.mxu0 %v2495_v52  ;;  %2199 = vmatprep.subr.bf16.mxu1 %v2496_v57 }
  0x6a   : > { %2295 = vmatprep.subr.bf16.mxu0 %v2497_v58  ;;  %2193 = vmatprep.mubr.bf16.mxu1 %v528_v59 }
  0x6b   : > { %2289 = vmatprep.mubr.bf16.mxu0 %v1131_v60 }
  0x6c   : > { %2200 = vmatpush3.bf16.msra.mxu1 %v2496_v57 }
  0x6d   : > { %2296 = vmatpush3.bf16.msra.mxu0 %v2497_v58  ;;  %2201 = vmatprep.subr.bf16.mxu1 %v2498_v63 }
  0x6e   : > { %2297 = vmatprep.subr.bf16.mxu0 %v2499_v1 }
  0x6f   : > { %2194 = vmatmul.mubr.bf16.gmra.mrb[4].mxu1 %v529_v2 }
  0x70   : > { %2202 = vmatpush3.bf16.msra.mxu1 %v2498_v63  ;;  %2290 = vmatmul.mubr.bf16.gmra.mrb[4].mxu0 %v1132_v5 }
  0x71   : > { %2298 = vmatpush3.bf16.msra.mxu0 %v2499_v1  ;;  %2203 = vmatprep.subr.bf16.mxu1 %v2500_v6 }
  0x72   : > { %2299 = vmatprep.subr.bf16.mxu0 %v2501_v7  ;;  %2213 = vmatprep.mubr.bf16.mxu1 %v677_v8 }
  0x73   : > { %2309 = vmatprep.mubr.bf16.mxu0 %v1280_v20  ;;  %v2508_v20 = vld [vmem:[%s2963_s1 + $0xf8] sm:$0xff]  }
  0x74   : > { %2204 = vmatpush3.bf16.msra.mxu1 %v2500_v6 }
  0x75   : > { %2300 = vmatpush3.bf16.msra.mxu0 %v2501_v7  ;;  %2205 = vmatprep.subr.bf16.mxu1 %v2502_v9 }
  0x76   : > { %2301 = vmatprep.subr.bf16.mxu0 %v2503_v10 }
  0x78   : > { %2206 = vmatpush3.bf16.msra.mxu1 %v2502_v9 }
  0x79   : > { %2302 = vmatpush3.bf16.msra.mxu0 %v2503_v10  ;;  %2207 = vmatprep.subr.bf16.mxu1 %v2504_v11 }
  0x7a   : > { %2303 = vmatprep.subr.bf16.mxu0 %v2505_v13 }
  0x7c   : > { %2208 = vmatpush3.bf16.msra.mxu1 %v2504_v11 }
  0x7d   : > { %2304 = vmatpush3.bf16.msra.mxu0 %v2505_v13  ;;  %2209 = vmatprep.subr.bf16.mxu1 %v2506_v12 }
  0x7e   : > { %2305 = vmatprep.subr.bf16.mxu0 %v2507_v18 }
  0x80   : > { %2210 = vmatpush3.bf16.msra.mxu1 %v2506_v12 }
  0x81   : > { %2306 = vmatpush3.bf16.msra.mxu0 %v2507_v18  ;;  %2211 = vmatprep.subr.bf16.mxu1 %v2508_v20 }
  0x82   : > { %2307 = vmatprep.subr.bf16.mxu0 %v2509_v14 }
  0x84   : > { %2212 = vmatpush3.bf16.msra.mxu1 %v2508_v20 }
  0x85   : > { %2308 = vmatpush3.bf16.msra.mxu0 %v2509_v14  ;;  %2341 = vmatprep.subr.bf16.mxu1 %v2510_v17 }
  0x86   : > { %2317 = vmatprep.subr.bf16.mxu0 %v2510_v17 }
  0x87   : > { %2214 = vmatmul.mubr.bf16.vlgmr.msra.gmra.mrb[0].mxu1 %v678_v19 }
  0x88   : > { %2310 = vmatmul.mubr.bf16.vlgmr.msra.gmra.mrb[0].mxu0 %v1281_v33  ;;  %2349 = vmatpush3.bf16.msra.mxu1 %v2510_v17  ;;  %v1430_v33 = vpack.c.bf16 %v2816_v49, %v2781_v29  ;;  %v1990_v29 = vld [vmem:[%s2616_s17 + $0x81] sm:$0xff]  ;;  %s1756_s17 = sshll.u32 %s2532_s12, 3  ;;  %s2975_s12 = smov (!%p226_p6, %s2532_s12), 1 }
  0x89   : > { %2318 = vmatpush3.bf16.msra.mxu0 %v2510_v17  ;;  %2342 = vmatprep.subr.bf16.mxu1 %v2511_v23  ;;  %v1433_v36 = vpack.c.bf16 %v1990_v29, %v2851_v62  ;;  %p218_p5 = scmp.lt.s32.totalorder %s1756_s17, 15  ;;  %s1758_s9 = sshll.u32 %s2975_s12, 1 }
  0x8a   : > { %2319 = vmatprep.subr.bf16.mxu0 %v2511_v23  ;;  %2217 = vmatprep.mubr.bf16.mxu1 %v679_v24  ;;  %s232_s16 = scalar_lea.vmem %s2965_s3, %s1758_s9 }
  0x8b   : > { %2313 = vmatprep.mubr.bf16.mxu0 %v1282_v44  ;;  %v2517_v44 = vld [vmem:[%s2963_s1 + $0x238] sm:$0xff]   ;;  %s2973_s17 = smov (!%p218_p5, %s1756_s17), 15 }
  0x8c   : > { %2350 = vmatpush3.bf16.msra.mxu1 %v2511_v23  ;;  %s1757_s5 = sshll.u32 %s2973_s17, 3 }
  0x8d   : > { %2320 = vmatpush3.bf16.msra.mxu0 %v2511_v23  ;;  %2343 = vmatprep.subr.bf16.mxu1 %v2512_v31  ;;  %s224_s8 = scalar_lea.vmem %s2964_s2, %s1757_s5 }
  0x8e   : > { %2321 = vmatprep.subr.bf16.mxu0 %v2512_v31 }
  0x8f   : > { %2218 = vmatmul.mubr.bf16.gmra.mrb[4].mxu1 %v680_v34 }
  0x90   : > { %2314 = vmatmul.mubr.bf16.gmra.mrb[4].mxu0 %v1283_v25  ;;  %2351 = vmatpush3.bf16.msra.mxu1 %v2512_v31 }
  0x91   : > { %2322 = vmatpush3.bf16.msra.mxu0 %v2512_v31  ;;  %2344 = vmatprep.subr.bf16.mxu1 %v2513_v30 }
  0x92   : > { %2323 = vmatprep.subr.bf16.mxu0 %v2513_v30  ;;  %2333 = vmatprep.mubr.bf16.mxu0 %v1430_v33 }
  0x93   : > { %2337 = vmatprep.mubr.bf16.mxu1 %v1432_v35 }
  0x94   : > { %2352 = vmatpush3.bf16.msra.mxu1 %v2513_v30 }
  0x95   : > { %2324 = vmatpush3.bf16.msra.mxu0 %v2513_v30  ;;  %2345 = vmatprep.subr.bf16.mxu1 %v2514_v32 }
  0x96   : > { %2325 = vmatprep.subr.bf16.mxu0 %v2514_v32 }
  0x98   : > { %2353 = vmatpush3.bf16.msra.mxu1 %v2514_v32 }
  0x99   : > { %2326 = vmatpush3.bf16.msra.mxu0 %v2514_v32  ;;  %2346 = vmatprep.subr.bf16.mxu1 %v2515_v41 }
  0x9a   : > { %2327 = vmatprep.subr.bf16.mxu0 %v2515_v41 }
  0x9c   : > { %2354 = vmatpush3.bf16.msra.mxu1 %v2515_v41 }
  0x9d   : > { %2328 = vmatpush3.bf16.msra.mxu0 %v2515_v41  ;;  %2347 = vmatprep.subr.bf16.mxu1 %v2516_v42 }
  0x9e   : > { %2329 = vmatprep.subr.bf16.mxu0 %v2516_v42 }
  0xa0   : > { %2355 = vmatpush3.bf16.msra.mxu1 %v2516_v42 }
  0xa1   : > { %2330 = vmatpush3.bf16.msra.mxu0 %v2516_v42  ;;  %2348 = vmatprep.subr.bf16.mxu1 %v2517_v44 }
  0xa2   : > { %2331 = vmatprep.subr.bf16.mxu0 %v2517_v44 }
  0xa4   : > { %2356 = vmatpush3.bf16.msra.mxu1 %v2517_v44 }
  0xa5   : > { %2332 = vmatpush3.bf16.msra.mxu0 %v2517_v44 }
  0xa7   : > { %2338 = vmatmul.mubr.bf16.vlgmr.msra.gmra.mrb[8].mxu1 %v1433_v36 }
  0xa8   : > { %2334 = vmatmul.mubr.bf16.vlgmr.msra.gmra.mrb[0].mxu0 %v1431_v37 }
 0x15a   : > { %v2215_v38 = vpop.f32.mrb[0].mxu1 }
 0x15b   : > { %v780_v39 = vpop.f32.mrb[1].mxu1 }
 0x15c   : > { %v2216_v40 = vpop.f32.mrb[2].mxu1 }
 0x15d   : > { %v783_v43 = vpop.f32.mrb[3].mxu1 }
 0x162   : > { %v2219_v45 = vpop.f32.mrb[4].mxu1 }
 0x163   : > { %v2315_v46 = vpop.f32.mrb[4].mxu0  ;;  %v796_v47 = vpop.f32.mrb[5].mxu1 }
 0x164   : > { %v2361_v48 = vadd.f32 %v2315_v46, %v2219_v45  ;;  %v1399_v49 = vpop.f32.mrb[5].mxu0  ;;  %v2220_v51 = vpop.f32.mrb[6].mxu1 }
 0x165   : > { %v2363_v52 = vadd.f32 %v1399_v49, %v796_v47  ;;  %v2316_v53 = vpop.f32.mrb[6].mxu0  ;;  %v799_v55 = vpop.f32.mrb[7].mxu1 }
 0x166   : > { %v2365_v56 = vadd.f32 %v2316_v53, %v2220_v51  ;;  %v1402_v57 = vpop.f32.mrb[7].mxu0 }
 0x167   : > { %v2367_v50 = vadd.f32 %v1402_v57, %v799_v55 }
 0x17a   : > { %v2339_v54 = vpop.f32.mrb[8].mxu1 }
 0x17b   : > { %v2335_v58 = vpop.f32.mrb[0].mxu0  ;;  %v2362_v59 = vadd.f32 %v2361_v48, %v2339_v54  ;;  %v1549_v60 = vpop.f32.mrb[9].mxu1 }
 0x17c   : > { %v2357_v61 = vadd.f32 %v2335_v58, %v2215_v38  ;;  %v1533_v62 = vpop.f32.mrb[1].mxu0  ;;  %v2364_v63 = vadd.f32 %v2363_v52, %v1549_v60  ;;  %v2340_v0 = vpop.f32.mrb[10].mxu1 }
 0x17d   : > { %1578 = vst [vmem:[%s224_s8 + $0x30] sm:$0xff] %v2362_v59  ;;  %v2358_v1 = vadd.f32 %v1533_v62, %v780_v39  ;;  %v2336_v2 = vpop.f32.mrb[2].mxu0  ;;  %v2366_v3 = vadd.f32 %v2365_v56, %v2340_v0  ;;  %v1552_v4 = vpop.f32.mrb[11].mxu1  ;;  %v1599_v24 = vmul.f32 %v2362_v59, %v2362_v59 }
 0x17e   : > { %1574 = vst [vmem:[%s224_s8 + $0x10] sm:$0xff] %v2357_v61  ;;  %1576 = vst [vmem:[%s224_s8 + $0x20] sm:$0xff] %v2364_v63  ;;  %v2359_v5 = vadd.f32 %v2336_v2, %v2216_v40  ;;  %v1536_v6 = vpop.f32.mrb[3].mxu0  ;;  %v2368_v7 = vadd.f32 %v2367_v50, %v1552_v4  ;;  %v1595_v13 = vmul.f32 %v2357_v61, %v2357_v61 }
 0x17f   : > { %1572 = vst [vmem:[%s224_s8] sm:$0xff] %v2358_v1  ;;  %1579 = vst [vmem:[%s224_s8 + $0x38] sm:$0xff] %v2366_v3  ;;  %v2360_v8 = vadd.f32 %v1536_v6, %v783_v43  ;;  %v1593_v9 = vmul.f32 %v2358_v1, %v2358_v1  ;;  %v1597_v16 = vmul.f32 %v2364_v63, %v2364_v63 }
 0x180   : > { %1575 = vst [vmem:[%s224_s8 + $0x18] sm:$0xff] %v2359_v5  ;;  %1577 = vst [vmem:[%s224_s8 + $0x28] sm:$0xff] %v2368_v7  ;;  %v1596_v20 = vmul.f32 %v2359_v5, %v2359_v5  ;;  %v1598_v22 = vmul.f32 %v2368_v7, %v2368_v7  ;;  %v1600_v28 = vmul.f32 %v2366_v3, %v2366_v3 }
 0x181   : > { %1573 = vst [vmem:[%s224_s8 + $0x8] sm:$0xff] %v2360_v8  ;;  %v1580_v10 = vadd.f32 %v2360_v8, %v2358_v1  ;;  %v1594_v11 = vmul.f32 %v2360_v8, %v2360_v8 }
 0x183   : > { %v1581_v12 = vadd.f32 %v2357_v61, %v1580_v10  ;;  %v1601_v18 = vadd.f32 %v1594_v11, %v1593_v9 }
 0x185   : > { %v1602_v14 = vadd.f32 %v1601_v18, %v1595_v13  ;;  %v1582_v15 = vadd.f32 %v2359_v5, %v1581_v12 }
 0x187   : > { %v1583_v17 = vadd.f32 %v2364_v63, %v1582_v15  ;;  %v1603_v19 = vadd.f32 %v1602_v14, %v1596_v20 }
 0x189   : > { %v1584_v21 = vadd.f32 %v2368_v7, %v1583_v17  ;;  %v1604_v23 = vadd.f32 %v1603_v19, %v1597_v16 }
 0x18b   : > { %v1585_v26 = vadd.f32 %v2362_v59, %v1584_v21  ;;  %v1605_v27 = vadd.f32 %v1604_v23, %v1598_v22 }
 0x18d   : > { %v1586_v31 = vadd.f32 %v2366_v3, %v1585_v26  ;;  %v1606_v34 = vadd.f32 %v1605_v27, %v1599_v24 }
 0x18f   : > { %v1587_v25 = vrot.slane %v1586_v31, 4  ;;  %v1607_v30 = vadd.f32 %v1606_v34, %v1600_v28 }
 0x191   : > { %v1588_v33 = vadd.f32 %v1587_v25, %v1586_v31  ;;  %v1608_v35 = vrot.slane %v1607_v30, 4 }
 0x193   : > { %v1589_v32 = vrot.slane %v1588_v33, 2  ;;  %v1609_v41 = vadd.f32 %v1608_v35, %v1607_v30 }
 0x195   : > { %v1590_v42 = vadd.f32 %v1589_v32, %v1588_v33  ;;  %v1610_v44 = vrot.slane %v1609_v41, 2 }
 0x197   : > { %v1591_v29 = vrot.slane %v1590_v42, 1  ;;  %v1611_v36 = vadd.f32 %v1610_v44, %v1609_v41 }
 0x199   : > { %v1612_v37 = vrot.slane %v1611_v36, 1  ;;  %v1592_v38 = vadd.f32 %v1591_v29, %v1590_v42 }
 0x19b   : > { %v1613_v39 = vadd.f32 %v1612_v37, %v1611_v36 }
 0x19d   : > { %v1615_v40 = vsel %vm1614_vm0, %v1592_v38, %v1613_v39 }
 0x19e   : > { %1616 = vst [vmem:[%s232_s16] sm:$0x3] %v1615_v40 }
 0x19f PF: > { %s14_s14 = sadd.s32 1, %s2540_s14   ;;  %s2966_s12 = smov %s2536_s13 }
 0x1a0   : > { %p11_p7 = scmp.ge.s32.totalorder %s14_s14, 4   ;;  %s2967_s13 = smov %s2969_s15 }
 0x1a2   :  { %13 = sbr.rel (!%p11_p7) target bundleno = 2 (0x2), region = 86 }

// kernel: basic_block_forward.11
= control target key start
LH: loop header
LB: loop body
LE: loop exit
PB: predicated region body
PF: predicated region fallthrough
CT: control target
= control target key end

     0   :  { %s2961_s24 = smov 0   ;;  %s2963_s25 = smov 0   ;;  %s3449_s0 = inlined_call_operand.vmem [shape: f32[2,10,10,128], index: 0, kind: input, shape index: {}]   ;;  %s3450_s1 = inlined_call_operand.vmem [shape: bf16[9,128,128], index: 1, kind: input, shape index: {}]   ;;  %s3451_s2 = inlined_call_operand.vmem [shape: f32[1,128], index: 2, kind: input, shape index: {}]   ;;  %s3452_s3 = inlined_call_operand.vmem [shape: f32[1,128], index: 3, kind: input, shape index: {}]   ;;  %s3453_s4 = inlined_call_operand.vmem [shape: f32[128,128], index: 4, kind: input, shape index: {}]   ;;  %s3454_s5 = inlined_call_operand.vmem [shape: f32[1,128], index: 5, kind: input, shape index: {}]   ;;  %s3455_s6 = inlined_call_operand.vmem [shape: f32[1,128], index: 6, kind: input, shape index: {}]   ;;  %s3456_s7 = inlined_call_operand.vmem [shape: f32[128,128], index: 7, kind: output, shape index: {}]  }
   0x1   :  { %s2965_s26 = smov 0  }
   0x2 LB: > { %s29_s27 = sadd.s32 1, %s2915_s25  ;;  %p2134_p0 = scmp.ge.s32.totalorder %s2919_s26, 1  ;;  %s2919_s26 = sphi %s2965_s26, %s17_s26   ;;  %s2915_s25 = sphi %s2963_s25, %s3458_s25   ;;  %s2911_s24 = sphi %s2961_s24, %s3457_s24  }
   0x3   : > { %p31_p1 = scmp.ge.s32.totalorder %s29_s27, 2  ;;  %p292_p2 = scmp.lt.s32.totalorder %s2919_s26, 3 }
   0x5   : > { %s3460_s27 = smov (%p31_p1, %s29_s27), 0  ;;  %p293_p3 = pnand %p2134_p0, %p292_p2 }
   0x6   : > { %v2823_v0 = vld [vmem:[%s3450_s1 + $0x40] sm:$0xff] (!%p293_p3)   ;;  %p345_p4 = scmp.lt.s32.totalorder (!%p293_p3), %s2911_s24, 1  ;;  %v2825_v2 = vld [vmem:[%s3450_s1 + $0x48] sm:$0xff] (!%p293_p3)   ;;  %v2827_v4 = vld [vmem:[%s3450_s1 + $0x50] sm:$0xff] (!%p293_p3)   ;;  %s2136_s16 = sshll.u32 (!%p293_p3), %s2911_s24, 3 }
   0x7   : > { %296 = sbr.rel (%p293_p3) target bundleno = 390 (0x186), region = 48  ;;  %v2824_v1 = vld [vmem:[%s3450_s1 + $0x100] sm:$0xff] (!%p293_p3)   ;;  %2502 = vmatprep.subr.bf16.mxu1 (!%p293_p3), %v2823_v0  ;;  %v2826_v3 = vld [vmem:[%s3450_s1 + $0x108] sm:$0xff] (!%p293_p3)   ;;  %v2828_v5 = vld [vmem:[%s3450_s1 + $0x110] sm:$0xff] (!%p293_p3)   ;;  %p355_p5 = scmp.lt.s32.totalorder (!%p293_p3), %s2136_s16, 15 }
   0x8   : > { %2598 = vmatprep.subr.bf16.mxu0 (!%p293_p3), %v2824_v1  ;;  %2503 = vmatpush3.bf16.msra.mxu1 (!%p293_p3), %v2823_v0  ;;  %v2829_v6 = vld [vmem:[%s3450_s1 + $0x58] sm:$0xff] (!%p293_p3)   ;;  %v2831_v8 = vld [vmem:[%s3450_s1 + $0x60] sm:$0xff] (!%p293_p3)   ;;  %v2833_v10 = vld [vmem:[%s3450_s1 + $0x68] sm:$0xff] (!%p293_p3)  }
   0x9   : > { %2599 = vmatpush3.bf16.msra.mxu0 (!%p293_p3), %v2824_v1  ;;  %2504 = vmatprep.subr.bf16.mxu1 (!%p293_p3), %v2825_v2  ;;  %v2830_v7 = vld [vmem:[%s3450_s1 + $0x118] sm:$0xff] (!%p293_p3)   ;;  %v2832_v9 = vld [vmem:[%s3450_s1 + $0x120] sm:$0xff] (!%p293_p3)   ;;  %v2834_v11 = vld [vmem:[%s3450_s1 + $0x128] sm:$0xff] (!%p293_p3)  }
   0xa   : > { %2600 = vmatprep.subr.bf16.mxu0 (!%p293_p3), %v2826_v3  ;;  %v3027_v12 = vld [vmem:[%s3451_s2] ss:$0 sm:$0xff] (!%p293_p3)  ;;  %v2835_v19 = vld [vmem:[%s3450_s1 + $0x70] sm:$0xff] (!%p293_p3)   ;;  %v2837_v33 = vld [vmem:[%s3450_s1 + $0x78] sm:$0xff] (!%p293_p3)  }
   0xb   : > { %v3032_v13 = vld [vmem:[%s3452_s3] ss:$0 sm:$0xff] (!%p293_p3)  ;;  %v2836_v26 = vld [vmem:[%s3450_s1 + $0x130] sm:$0xff] (!%p293_p3)   ;;  %v2838_v36 = vld [vmem:[%s3450_s1 + $0x138] sm:$0xff] (!%p293_p3)  }
   0xc   : > { %2505 = vmatpush3.bf16.msra.mxu1 (!%p293_p3), %v2825_v2  ;;  %v2839_v41 = vld [vmem:[%s3450_s1] sm:$0xff] (!%p293_p3)   ;;  %v2841_v45 = vld [vmem:[%s3450_s1 + $0x8] sm:$0xff] (!%p293_p3)   ;;  %v2843_v53 = vld [vmem:[%s3450_s1 + $0x10] sm:$0xff] (!%p293_p3)  }
   0xd   : > { %2601 = vmatpush3.bf16.msra.mxu0 (!%p293_p3), %v2826_v3  ;;  %2506 = vmatprep.subr.bf16.mxu1 (!%p293_p3), %v2827_v4  ;;  %v2840_v42 = vld [vmem:[%s3450_s1 + $0x140] sm:$0xff] (!%p293_p3)   ;;  %v2842_v48 = vld [vmem:[%s3450_s1 + $0x148] sm:$0xff] (!%p293_p3)   ;;  %v2844_v58 = vld [vmem:[%s3450_s1 + $0x150] sm:$0xff] (!%p293_p3)  }
   0xe   : > { %s346_s17 = scalar_select %p345_p4, %s2911_s24, 1  ;;  %2602 = vmatprep.subr.bf16.mxu0 %v2828_v5 }
   0xf   : > { %s3462_s16 = smov (!%p355_p5, %s2136_s16), 15 }
  0x10   : > { %s2798_s22 = smul.u32 160, %s346_s17  ;;  %2507 = vmatpush3.bf16.msra.mxu1 %v2827_v4  ;;  %s2137_s17 = sshll.u32 %s3462_s16, 3 }
  0x11   : > { %2603 = vmatpush3.bf16.msra.mxu0 %v2828_v5  ;;  %2508 = vmatprep.subr.bf16.mxu1 %v2829_v6  ;;  %s361_s20 = scalar_lea.vmem %s3453_s4, %s2137_s17  ;;  %s376_s30 = scalar_lea.vmem %s3456_s7, %s2137_s17 }
  0x12   : > { %2604 = vmatprep.subr.bf16.mxu0 %v2830_v7  ;;  %s3016_s10 = scalar_lea.vmem %s3449_s0, %s2798_s22 }
  0x13   : > { %v445_v14 = vld [vmem:[%s3016_s10 + $0x1] sm:$0xff]  ;;  %v446_v15 = vld [vmem:[%s3016_s10 + $0x11] sm:$0xff] }
  0x14   : > { %2509 = vmatpush3.bf16.msra.mxu1 %v2829_v6  ;;  %v453_v16 = vmul.f32 %v3027_v12, %v445_v14  ;;  %v454_v17 = vmul.f32 %v3027_v12, %v446_v15  ;;  %v2231_v18 = vld [vmem:[%s3016_s10 + $0x21] sm:$0xff]  ;;  %v448_v22 = vld [vmem:[%s3016_s10 + $0x31] sm:$0xff] }
  0x15   : > { %2605 = vmatpush3.bf16.msra.mxu0 %v2830_v7  ;;  %2510 = vmatprep.subr.bf16.mxu1 %v2831_v8  ;;  %v1082_v21 = vmul.f32 %v2231_v18, %v3027_v12  ;;  %v456_v24 = vmul.f32 %v3027_v12, %v448_v22  ;;  %v2233_v25 = vld [vmem:[%s3016_s10 + $0x41] sm:$0xff]  ;;  %v450_v43 = vld [vmem:[%s3016_s10 + $0x51] sm:$0xff] }
  0x16   : > { %2606 = vmatprep.subr.bf16.mxu0 %v2832_v9  ;;  %v461_v20 = vadd.f32 %v3032_v13, %v453_v16  ;;  %v462_v23 = vadd.f32 %v3032_v13, %v454_v17  ;;  %v1084_v31 = vmul.f32 %v2233_v25, %v3027_v12  ;;  %v458_v46 = vmul.f32 %v3027_v12, %v450_v43  ;;  %v2235_v47 = vld [vmem:[%s3016_s10 + $0x61] sm:$0xff]  ;;  %v452_v51 = vld [vmem:[%s3016_s10 + $0x71] sm:$0xff] }
  0x17   : > { %v1090_v28 = vadd.f32 %v3032_v13, %v1082_v21  ;;  %v464_v30 = vadd.f32 %v3032_v13, %v456_v24  ;;  %v1086_v50 = vmul.f32 %v2235_v47, %v3027_v12  ;;  %v2237_v52 = vld [vmem:[%s3016_s10 + $0x81] sm:$0xff]  ;;  %v460_v54 = vmul.f32 %v3027_v12, %v452_v51  ;;  %v380_v62 = vld [vmem:[%s3016_s10 + $0x10] sm:$0xff]  ;;  %v2846_v17 = vld [vmem:[%s3450_s1 + $0x158] sm:$0xff]  }
  0x18   : > { %2511 = vmatpush3.bf16.msra.mxu1 %v2831_v8  ;;  %v469_v27 = vmax.f32 %v461_v20, 0.0  ;;  %v470_v29 = vmax.f32 %v462_v23, 0.0  ;;  %v1092_v35 = vadd.f32 %v3032_v13, %v1084_v31  ;;  %v466_v49 = vadd.f32 %v3032_v13, %v458_v46  ;;  %v379_v61 = vld [vmem:[%s3016_s10] sm:$0xff]  ;;  %v2262_v5 = vld [vmem:[%s3016_s10 + $0x12] sm:$0xff] }
  0x19   : > { %2607 = vmatpush3.bf16.msra.mxu0 %v2832_v9  ;;  %2512 = vmatprep.subr.bf16.mxu1 %v2833_v10  ;;  %v1098_v32 = vmax.f32 %v1090_v28, 0.0  ;;  %v1099_v38 = vmax.f32 %v464_v30, 0.0  ;;  %v1088_v55 = vmul.f32 %v2237_v52, %v3027_v12  ;;  %v1094_v57 = vadd.f32 %v3032_v13, %v1086_v50  ;;  %v2263_v6 = vld [vmem:[%s3016_s10 + $0x22] sm:$0xff]  ;;  %v2264_v16 = vld [vmem:[%s3016_s10 + $0x32] sm:$0xff] }
  0x1a   : > { %2608 = vmatprep.subr.bf16.mxu0 %v2834_v11  ;;  %v477_v34 = vpack.c.bf16 %v470_v29, %v469_v27  ;;  %v1100_v39 = vmax.f32 %v1092_v35, 0.0  ;;  %v474_v56 = vmax.f32 %v466_v49, 0.0  ;;  %v468_v59 = vadd.f32 %v3032_v13, %v460_v54  ;;  %v2847_v25 = vld [vmem:[%s3450_s1 + $0x20] sm:$0xff]   ;;  %v2849_v30 = vld [vmem:[%s3450_s1 + $0x28] sm:$0xff]   ;;  %v2852_v46 = vld [vmem:[%s3450_s1 + $0x170] sm:$0xff]  }
  0x1b   : > { %v1105_v37 = vpack.c.bf16 %v1098_v32, %v470_v29  ;;  %v3061_v40 = vpack.c.bf16 %v1099_v38, %v1098_v32  ;;  %v3094_v60 = vadd.f32 %v3032_v13, %v1088_v55  ;;  %v1102_v0 = vmax.f32 %v1094_v57, 0.0  ;;  %v2848_v27 = vld [vmem:[%s3450_s1 + $0x160] sm:$0xff]   ;;  %v2850_v35 = vld [vmem:[%s3450_s1 + $0x168] sm:$0xff]   ;;  %v2853_v50 = vld [vmem:[%s3450_s1 + $0x38] sm:$0xff]  }
  0x1c   : > { %2513 = vmatpush3.bf16.msra.mxu1 %v2833_v10  ;;  %2518 = vmatprep.mubr.bf16.mxu1 %v477_v34  ;;  %v1106_v44 = vpack.c.bf16 %v1100_v39, %v1099_v38  ;;  %v3098_v63 = vpack.c.bf16 %v474_v56, %v1100_v39  ;;  %v394_v1 = vmul.f32 %v3027_v12, %v379_v61  ;;  %v476_v2 = vmax.f32 %v468_v59, 0.0  ;;  %v2845_v10 = vld [vmem:[%s3450_s1 + $0x18] sm:$0xff]   ;;  %v381_v31 = vld [vmem:[%s3016_s10 + $0x20] sm:$0xff]  ;;  %v2851_v39 = vld [vmem:[%s3450_s1 + $0x30] sm:$0xff]  }
  0x1d   : > { %2609 = vmatpush3.bf16.msra.mxu0 %v2834_v11  ;;  %2514 = vmatprep.subr.bf16.mxu1 %v2835_v19  ;;  %v1104_v3 = vmax.f32 %v3094_v60, 0.0  ;;  %v395_v4 = vmul.f32 %v3027_v12, %v380_v62  ;;  %v1107_v7 = vpack.c.bf16 %v1102_v0, %v474_v56  ;;  %v1255_v9 = vmul.f32 %v2262_v5, %v3027_v12  ;;  %v2265_v34 = vld [vmem:[%s3016_s10 + $0x42] sm:$0xff]  ;;  %v386_v57 = vld [vmem:[%s3016_s10 + $0x70] sm:$0xff]  ;;  %v2854_v62 = vld [vmem:[%s3450_s1 + $0x178] sm:$0xff]  }
  0x1e   : > { %2610 = vmatprep.subr.bf16.mxu0 %v2836_v26  ;;  %2614 = vmatprep.mubr.bf16.mxu0 %v1105_v37  ;;  %v409_v8 = vadd.f32 %v3032_v13, %v394_v1  ;;  %v3111_v11 = vpack.c.bf16 %v476_v2, %v1102_v0  ;;  %v1257_v22 = vmul.f32 %v2264_v16, %v3027_v12  ;;  %v2267_v49 = vld [vmem:[%s3016_s10 + $0x62] sm:$0xff]  ;;  %v2365_v60 = vld [vmem:[%s3016_s10 + $0x92] sm:$0xff] }
  0x1f   : > { %v1108_v14 = vpack.c.bf16 %v1104_v3, %v476_v2  ;;  %v3116_v15 = vadd.f32 %v3032_v13, %v395_v4  ;;  %v3124_v20 = vadd.f32 %v3032_v13, %v1255_v9  ;;  %v396_v37 = vmul.f32 %v3027_v12, %v381_v31  ;;  %v385_v56 = vld [vmem:[%s3016_s10 + $0x60] sm:$0xff] }
  0x20   : > { %2515 = vmatpush3.bf16.msra.mxu1 %v2835_v19  ;;  %v417_v18 = vmax.f32 %v409_v8, 0.0  ;;  %v1256_v19 = vmul.f32 %v2263_v6, %v3027_v12  ;;  %v3140_v29 = vadd.f32 %v3032_v13, %v1257_v22  ;;  %v1260_v54 = vmul.f32 %v2267_v49, %v3027_v12  ;;  %v2269_v61 = vld [vmem:[%s3016_s10 + $0x82] sm:$0xff] }
  0x21   : > { %2611 = vmatpush3.bf16.msra.mxu0 %v2836_v26  ;;  %2516 = vmatprep.subr.bf16.mxu1 %v2837_v33  ;;  %v418_v21 = vmax.f32 %v3116_v15, 0.0  ;;  %v1271_v24 = vmax.f32 %v3124_v20, 0.0  ;;  %v3175_v51 = vadd.f32 %v3032_v13, %v396_v37  ;;  %v401_v8 = vmul.f32 %v3027_v12, %v386_v57  ;;  %v724_v9 = vld [vmem:[%s3016_s10 + $0x2] sm:$0xff]  ;;  %v2867_v57 = vld [vmem:[%s3450_s1 + $0xb0] sm:$0xff]  }
  0x22   : > { %2612 = vmatprep.subr.bf16.mxu0 %v2838_v36  ;;  %v1264_v23 = vadd.f32 %v3032_v13, %v1256_v19  ;;  %v1268_v2 = vadd.f32 %v3032_v13, %v1260_v54  ;;  %v2856_v19 = vld [vmem:[%s3450_s1 + $0x180] sm:$0xff]   ;;  %v2865_v20 = vld [vmem:[%s3450_s1 + $0xa8] sm:$0xff]  }
  0x23   : > { %v425_v26 = vpack.c.bf16 %v418_v21, %v417_v18  ;;  %v419_v5 = vmax.f32 %v3175_v51, 0.0  ;;  %v2881_v15 = vld [vmem:[%s3450_s1 + $0xe8] sm:$0xff]   ;;  %v2884_v51 = vld [vmem:[%s3450_s1 + $0x1f0] sm:$0xff]  }
  0x24   : > { %2517 = vmatpush3.bf16.msra.mxu1 %v2837_v33  ;;  %v1272_v28 = vmax.f32 %v1264_v23, 0.0  ;;  %v382_v33 = vld [vmem:[%s3016_s10 + $0x30] sm:$0xff] }
  0x25   : > { %2613 = vmatpush3.bf16.msra.mxu0 %v2838_v36  ;;  %2526 = vmatprep.subr.bf16.mxu1 %v2839_v41  ;;  %v1273_v36 = vmax.f32 %v3140_v29, 0.0  ;;  %v397_v38 = vmul.f32 %v3027_v12, %v382_v33  ;;  %v3223_v29 = vadd.f32 %v3032_v13, %v401_v8  ;;  %v2857_v33 = vld [vmem:[%s3450_s1 + $0x88] sm:$0xff]   ;;  %v2871_v8 = vld [vmem:[%s3450_s1 + $0xc0] sm:$0xff]  }
  0x26   : > { %2622 = vmatprep.subr.bf16.mxu0 %v2840_v42  ;;  %v1279_v32 = vpack.c.bf16 %v1272_v28, %v1271_v24 }
  0x27   : > { %2519 = vmatmul.mubr.bf16.vlgmr.msra.gmra.mrb[0].mxu1 %v3061_v40  ;;  %v3161_v43 = vpack.c.bf16 %v1273_v36, %v1272_v28  ;;  %v3178_v52 = vadd.f32 %v3032_v13, %v397_v38 }
  0x28   : > { %2527 = vmatpush3.bf16.msra.mxu1 %v2839_v41  ;;  %2615 = vmatmul.mubr.bf16.vlgmr.msra.gmra.mrb[0].mxu0 %v1106_v44  ;;  %v1258_v41 = vmul.f32 %v2265_v34, %v3027_v12  ;;  %v384_v44 = vld [vmem:[%s3016_s10 + $0x50] sm:$0xff]  ;;  %v2858_v34 = vld [vmem:[%s3450_s1 + $0x188] sm:$0xff]  }
  0x29   : > { %2623 = vmatpush3.bf16.msra.mxu0 %v2840_v42  ;;  %2528 = vmatprep.subr.bf16.mxu1 %v2841_v45  ;;  %v383_v42 = vld [vmem:[%s3016_s10 + $0x40] sm:$0xff]  ;;  %v399_v47 = vmul.f32 %v3027_v12, %v384_v44  ;;  %v420_v6 = vmax.f32 %v3178_v52, 0.0  ;;  %v2859_v44 = vld [vmem:[%s3450_s1 + $0x90] sm:$0xff]  }
  0x2a   : > { %2624 = vmatprep.subr.bf16.mxu0 %v2842_v48  ;;  %2522 = vmatprep.mubr.bf16.mxu1 %v3098_v63  ;;  %v1266_v55 = vadd.f32 %v3032_v13, %v1258_v41  ;;  %v424_v41 = vmax.f32 %v3223_v29, 0.0  ;;  %v2894_v29 = vld [vmem:[%s3450_s1 + $0x238] sm:$0xff]  }
  0x2b   : > { %2618 = vmatprep.mubr.bf16.mxu0 %v1107_v7  ;;  %v3194_v0 = vadd.f32 %v3032_v13, %v399_v47  ;;  %v400_v7 = vmul.f32 %v3027_v12, %v385_v56  ;;  %v2864_v56 = vld [vmem:[%s3450_s1 + $0x1a0] sm:$0xff]  }
  0x2c   : > { %2529 = vmatpush3.bf16.msra.mxu1 %v2841_v45  ;;  %v398_v45 = vmul.f32 %v3027_v12, %v383_v42 }
  0x2d   : > { %2625 = vmatpush3.bf16.msra.mxu0 %v2842_v48  ;;  %2530 = vmatprep.subr.bf16.mxu1 %v2843_v53  ;;  %v2266_v48 = vld [vmem:[%s3016_s10 + $0x52] sm:$0xff]  ;;  %v422_v22 = vmax.f32 %v3194_v0, 0.0  ;;  %v3220_v28 = vadd.f32 %v3032_v13, %v400_v7 }
  0x2e   : > { %2626 = vmatprep.subr.bf16.mxu0 %v2844_v58  ;;  %v3187_v59 = vadd.f32 %v3032_v13, %v398_v45  ;;  %v2890_v0 = vld [vmem:[%s3450_s1 + $0x218] sm:$0xff]  }
  0x2f   : > { %2523 = vmatmul.mubr.bf16.gmra.mrb[4].mxu1 %v3111_v11 }
  0x30   : > { %2531 = vmatpush3.bf16.msra.mxu1 %v2843_v53  ;;  %2619 = vmatmul.mubr.bf16.gmra.mrb[4].mxu0 %v1108_v14  ;;  %v1259_v53 = vmul.f32 %v2266_v48, %v3027_v12  ;;  %v1262_v14 = vmul.f32 %v2269_v61, %v3027_v12  ;;  %v421_v18 = vmax.f32 %v3187_v59, 0.0  ;;  %v2869_v61 = vld [vmem:[%s3450_s1 + $0xb8] sm:$0xff]  }
  0x31   : > { %2627 = vmatpush3.bf16.msra.mxu0 %v2844_v58  ;;  %2532 = vmatprep.subr.bf16.mxu1 %v2845_v10  ;;  %v2268_v58 = vld [vmem:[%s3016_s10 + $0x72] sm:$0xff] }
  0x32   : > { %2628 = vmatprep.subr.bf16.mxu0 %v2846_v17  ;;  %2542 = vmatprep.mubr.bf16.mxu1 %v425_v26  ;;  %v1267_v1 = vadd.f32 %v3032_v13, %v1259_v53  ;;  %v1261_v4 = vmul.f32 %v2268_v58, %v3027_v12  ;;  %v732_v26 = vmul.f32 %v3027_v12, %v724_v9  ;;  %v2862_v53 = vld [vmem:[%s3450_s1 + $0x198] sm:$0xff]   ;;  %v2868_v58 = vld [vmem:[%s3450_s1 + $0x1b0] sm:$0xff]   ;;  %v2872_v9 = vld [vmem:[%s3450_s1 + $0x1c0] sm:$0xff]  }
  0x33   : > { %2638 = vmatprep.mubr.bf16.mxu0 %v1279_v32  ;;  %v3226_v31 = vadd.f32 %v3032_v13, %v1262_v14 }
  0x34   : > { %2533 = vmatpush3.bf16.msra.mxu1 %v2845_v10  ;;  %v1274_v10 = vmax.f32 %v1266_v55, 0.0  ;;  %v1269_v16 = vadd.f32 %v3032_v13, %v1261_v4  ;;  %v1275_v23 = vmax.f32 %v1267_v1, 0.0  ;;  %v2863_v55 = vld [vmem:[%s3450_s1 + $0xa0] sm:$0xff]   ;;  %v2301_v1 = vld [vmem:[%s3016_s10 + $0x90] sm:$0xff] }
  0x35   : > { %2629 = vmatpush3.bf16.msra.mxu0 %v2846_v17  ;;  %2534 = vmatprep.subr.bf16.mxu1 %v2847_v25  ;;  %v2855_v17 = vld [vmem:[%s3450_s1 + $0x80] sm:$0xff]   ;;  %v1278_v45 = vmax.f32 %v3226_v31, 0.0  ;;  %v1437_v7 = vmul.f32 %v2301_v1, %v3027_v12 }
  0x36   : > { %2630 = vmatprep.subr.bf16.mxu0 %v2848_v27  ;;  %v1277_v32 = vmax.f32 %v1269_v16, 0.0  ;;  %v3245_v42 = vpack.c.bf16 %v1275_v23, %v1274_v10  ;;  %v2873_v16 = vld [vmem:[%s3450_s1 + $0xc8] sm:$0xff]  }
  0x37   : > { %v1445_v14 = vadd.f32 %v3032_v13, %v1437_v7  ;;  %v1946_v7 = vld [vmem:[%s361_s20 + $0x10] sm:$0xff] }
  0x38   : > { %2535 = vmatpush3.bf16.msra.mxu1 %v2847_v25  ;;  %v1276_v25 = vmax.f32 %v1268_v2, 0.0  ;;  %v1282_v49 = vpack.c.bf16 %v1278_v45, %v1277_v32  ;;  %v2870_v2 = vld [vmem:[%s3450_s1 + $0x1b8] sm:$0xff]  }
  0x39   : > { %2631 = vmatpush3.bf16.msra.mxu0 %v2848_v27  ;;  %2536 = vmatprep.subr.bf16.mxu1 %v2849_v30  ;;  %v426_v27 = vpack.c.bf16 %v420_v6, %v419_v5 }
  0x3a   : > { %2632 = vmatprep.subr.bf16.mxu0 %v2850_v35  ;;  %v3241_v37 = vpack.c.bf16 %v1277_v32, %v1276_v25  ;;  %v1281_v38 = vpack.c.bf16 %v1276_v25, %v1275_v23  ;;  %v1453_v23 = vmax.f32 %v1445_v14, 0.0  ;;  %v2875_v25 = vld [vmem:[%s3450_s1 + $0xd0] sm:$0xff]   ;;  %v2878_v32 = vld [vmem:[%s3450_s1 + $0x1d8] sm:$0xff]  }
  0x3c   : > { %2537 = vmatpush3.bf16.msra.mxu1 %v2849_v30  ;;  %v1280_v30 = vpack.c.bf16 %v1274_v10, %v1273_v36  ;;  %v740_v36 = vadd.f32 %v3032_v13, %v732_v26  ;;  %v2876_v26 = vld [vmem:[%s3450_s1 + $0x1d0] sm:$0xff]  }
  0x3d   : > { %2633 = vmatpush3.bf16.msra.mxu0 %v2850_v35  ;;  %2538 = vmatprep.subr.bf16.mxu1 %v2851_v39  ;;  %v3238_v35 = vpack.c.bf16 %v422_v22, %v421_v18 }
  0x3e   : > { %2634 = vmatprep.subr.bf16.mxu0 %v2852_v46  ;;  %v748_v47 = vmax.f32 %v740_v36, 0.0  ;;  %v2333_v36 = vld [vmem:[%s3016_s10 + $0x91] sm:$0xff] }
  0x40   : > { %2539 = vmatpush3.bf16.msra.mxu1 %v2851_v39  ;;  %v423_v39 = vmax.f32 %v3220_v28, 0.0  ;;  %v756_v54 = vpack.c.bf16 %v1271_v24, %v748_v47  ;;  %v2866_v24 = vld [vmem:[%s3450_s1 + $0x1a8] sm:$0xff]   ;;  %v932_v47 = vpack.c.bf16 %v421_v18, %v420_v6  ;;  %v2895_v6 = vld [vmem:[%s3451_s2] ss:$0 sm:$0xff] }
  0x41   : > { %2635 = vmatpush3.bf16.msra.mxu0 %v2852_v46  ;;  %2540 = vmatprep.subr.bf16.mxu1 %v2853_v50  ;;  %v2860_v46 = vld [vmem:[%s3450_s1 + $0x190] sm:$0xff]   ;;  %v1785_v18 = vmul.f32 %v2895_v6, %v2365_v60 }
  0x42   : > { %2636 = vmatprep.subr.bf16.mxu0 %v2854_v62  ;;  %v3259_v48 = vpack.c.bf16 %v424_v41, %v423_v39 }
  0x44   : > { %2541 = vmatpush3.bf16.msra.mxu1 %v2853_v50  ;;  %v2861_v50 = vld [vmem:[%s3450_s1 + $0x98] sm:$0xff]  }
  0x45   : > { %2637 = vmatpush3.bf16.msra.mxu0 %v2854_v62  ;;  %2550 = vmatprep.subr.bf16.mxu1 %v2855_v17  ;;  %v2300_v62 = vld [vmem:[%s3016_s10 + $0x80] sm:$0xff] }
  0x46   : > { %2646 = vmatprep.subr.bf16.mxu0 %v2856_v19  ;;  %v1436_v4 = vmul.f32 %v2300_v62, %v3027_v12 }
  0x47   : > { %2543 = vmatmul.mubr.bf16.vlgmr.msra.gmra.mrb[0].mxu1 %v426_v27 }
  0x48   : > { %2551 = vmatpush3.bf16.msra.mxu1 %v2855_v17  ;;  %2639 = vmatmul.mubr.bf16.vlgmr.msra.gmra.mrb[0].mxu0 %v1280_v30  ;;  %v3307_v10 = vadd.f32 %v3032_v13, %v1436_v4  ;;  %v2874_v17 = vld [vmem:[%s3450_s1 + $0x1c8] sm:$0xff]   ;;  %v2877_v30 = vld [vmem:[%s3450_s1 + $0xd8] sm:$0xff]   ;;  %v1950_v4 = vld [vmem:[%s361_s20 + $0x30] sm:$0xff] }
  0x49   : > { %2647 = vmatpush3.bf16.msra.mxu0 %v2856_v19  ;;  %2552 = vmatprep.subr.bf16.mxu1 %v2857_v33 }
  0x4a   : > { %2648 = vmatprep.subr.bf16.mxu0 %v2858_v34  ;;  %2546 = vmatprep.mubr.bf16.mxu1 %v3238_v35  ;;  %v1452_v19 = vmax.f32 %v3307_v10, 0.0  ;;  %v1951_v10 = vld [vmem:[%s361_s20 + $0x38] sm:$0xff] }
  0x4b   : > { %2642 = vmatprep.mubr.bf16.mxu0 %v1281_v38  ;;  %v2886_v38 = vld [vmem:[%s3450_s1 + $0x1f8] sm:$0xff]  }
  0x4c   : > { %2553 = vmatpush3.bf16.msra.mxu1 %v2857_v33  ;;  %v931_v33 = vpack.c.bf16 %v419_v5, %v418_v21  ;;  %v2882_v21 = vld [vmem:[%s3450_s1 + $0x1e8] sm:$0xff]   ;;  %v2885_v5 = vld [vmem:[%s3450_s1 + $0xf8] sm:$0xff]   ;;  %v934_v59 = vpack.c.bf16 %v1452_v19, %v424_v41 }
  0x4d   : > { %2649 = vmatpush3.bf16.msra.mxu0 %v2858_v34  ;;  %2554 = vmatprep.subr.bf16.mxu1 %v2859_v44  ;;  %v2879_v34 = vld [vmem:[%s3450_s1 + $0xe0] sm:$0xff]  }
  0x4e   : > { %2650 = vmatprep.subr.bf16.mxu0 %v2860_v46 }
  0x4f   : > { %2547 = vmatmul.mubr.bf16.gmra.mrb[4].mxu1 %v3259_v48 }
  0x50   : > { %2555 = vmatpush3.bf16.msra.mxu1 %v2859_v44  ;;  %2643 = vmatmul.mubr.bf16.gmra.mrb[4].mxu0 %v1282_v49  ;;  %v1611_v44 = vmul.f32 %v2333_v36, %v3027_v12  ;;  %v2888_v12 = vld [vmem:[%s3450_s1 + $0x208] sm:$0xff]   ;;  %v933_v49 = vpack.c.bf16 %v423_v39, %v422_v22  ;;  %v2896_v22 = vld [vmem:[%s3452_s3] ss:$0 sm:$0xff] }
  0x51   : > { %2651 = vmatpush3.bf16.msra.mxu0 %v2860_v46  ;;  %2556 = vmatprep.subr.bf16.mxu1 %v2861_v50  ;;  %v2887_v46 = vld [vmem:[%s3450_s1 + $0x200] sm:$0xff]   ;;  %v1793_v28 = vadd.f32 %v2896_v22, %v1785_v18 }
  0x52   : > { %2652 = vmatprep.subr.bf16.mxu0 %v2862_v53  ;;  %2566 = vmatprep.mubr.bf16.mxu1 %v756_v54 }
  0x53   : > { %2662 = vmatprep.mubr.bf16.mxu0 %v426_v27  ;;  %v1457_v27 = vpack.c.bf16 %v1453_v23, %v1452_v19 }
  0x54   : > { %2557 = vmatpush3.bf16.msra.mxu1 %v2861_v50 }
  0x55   : > { %2653 = vmatpush3.bf16.msra.mxu0 %v2862_v53  ;;  %2558 = vmatprep.subr.bf16.mxu1 %v2863_v55 }
  0x56   : > { %2654 = vmatprep.subr.bf16.mxu0 %v2864_v56 }
  0x58   : > { %2559 = vmatpush3.bf16.msra.mxu1 %v2863_v55 }
  0x59   : > { %2655 = vmatpush3.bf16.msra.mxu0 %v2864_v56  ;;  %2560 = vmatprep.subr.bf16.mxu1 %v2865_v20 }
  0x5a   : > { %2656 = vmatprep.subr.bf16.mxu0 %v2866_v24 }
  0x5c   : > { %2561 = vmatpush3.bf16.msra.mxu1 %v2865_v20 }
  0x5d   : > { %2657 = vmatpush3.bf16.msra.mxu0 %v2866_v24  ;;  %2562 = vmatprep.subr.bf16.mxu1 %v2867_v57 }
  0x5e   : > { %2658 = vmatprep.subr.bf16.mxu0 %v2868_v58 }
  0x60   : > { %2563 = vmatpush3.bf16.msra.mxu1 %v2867_v57 }
  0x61   : > { %2659 = vmatpush3.bf16.msra.mxu0 %v2868_v58  ;;  %2564 = vmatprep.subr.bf16.mxu1 %v2869_v61 }
  0x62   : > { %2660 = vmatprep.subr.bf16.mxu0 %v2870_v2 }
  0x64   : > { %2565 = vmatpush3.bf16.msra.mxu1 %v2869_v61 }
  0x65   : > { %2661 = vmatpush3.bf16.msra.mxu0 %v2870_v2  ;;  %2574 = vmatprep.subr.bf16.mxu1 %v2871_v8 }
  0x66   : > { %2670 = vmatprep.subr.bf16.mxu0 %v2872_v9 }
  0x67   : > { %2567 = vmatmul.mubr.bf16.vlgmr.msra.gmra.mrb[0].mxu1 %v3161_v43 }
  0x68   : > { %2575 = vmatpush3.bf16.msra.mxu1 %v2871_v8  ;;  %2663 = vmatmul.mubr.bf16.vlgmr.msra.gmra.mrb[0].mxu0 %v3238_v35  ;;  %v2880_v35 = vld [vmem:[%s3450_s1 + $0x1e0] sm:$0xff]  }
  0x69   : > { %2671 = vmatpush3.bf16.msra.mxu0 %v2872_v9  ;;  %2576 = vmatprep.subr.bf16.mxu1 %v2873_v16  ;;  %v1948_v8 = vld [vmem:[%s361_s20 + $0x20] sm:$0xff] }
  0x6a   : > { %2672 = vmatprep.subr.bf16.mxu0 %v2874_v17  ;;  %2570 = vmatprep.mubr.bf16.mxu1 %v3245_v42  ;;  %v1944_v9 = vld [vmem:[%s361_s20] sm:$0xff] }
  0x6b   : > { %2666 = vmatprep.mubr.bf16.mxu0 %v3259_v48  ;;  %v1619_v48 = vadd.f32 %v3032_v13, %v1611_v44  ;;  %v2889_v13 = vld [vmem:[%s3450_s1 + $0x210] sm:$0xff]  }
  0x6c   : > { %2577 = vmatpush3.bf16.msra.mxu1 %v2873_v16  ;;  %v1947_v16 = vld [vmem:[%s361_s20 + $0x18] sm:$0xff] }
  0x6d   : > { %2673 = vmatpush3.bf16.msra.mxu0 %v2874_v17  ;;  %2578 = vmatprep.subr.bf16.mxu1 %v2875_v25  ;;  %v1627_v52 = vmax.f32 %v1619_v48, 0.0  ;;  %v1949_v17 = vld [vmem:[%s361_s20 + $0x28] sm:$0xff] }
  0x6e   : > { %2674 = vmatprep.subr.bf16.mxu0 %v2876_v26 }
  0x6f   : > { %2571 = vmatmul.mubr.bf16.gmra.mrb[4].mxu1 %v3241_v37 }
  0x70   : > { %2579 = vmatpush3.bf16.msra.mxu1 %v2875_v25  ;;  %2667 = vmatmul.mubr.bf16.gmra.mrb[4].mxu0 %v1457_v27 }
  0x71   : > { %2675 = vmatpush3.bf16.msra.mxu0 %v2876_v26  ;;  %2580 = vmatprep.subr.bf16.mxu1 %v2877_v30  ;;  %v1945_v26 = vld [vmem:[%s361_s20 + $0x8] sm:$0xff] }
  0x72   : > { %2676 = vmatprep.subr.bf16.mxu0 %v2878_v32  ;;  %2590 = vmatprep.mubr.bf16.mxu1 %v931_v33 }
  0x73   : > { %2686 = vmatprep.mubr.bf16.mxu0 %v3061_v40  ;;  %v2883_v40 = vld [vmem:[%s3450_s1 + $0xf0] sm:$0xff]  }
  0x74   : > { %2581 = vmatpush3.bf16.msra.mxu1 %v2877_v30 }
  0x75   : > { %2677 = vmatpush3.bf16.msra.mxu0 %v2878_v32  ;;  %2582 = vmatprep.subr.bf16.mxu1 %v2879_v34 }
  0x76   : > { %2678 = vmatprep.subr.bf16.mxu0 %v2880_v35 }
  0x78   : > { %2583 = vmatpush3.bf16.msra.mxu1 %v2879_v34 }
  0x79   : > { %2679 = vmatpush3.bf16.msra.mxu0 %v2880_v35  ;;  %2584 = vmatprep.subr.bf16.mxu1 %v2881_v15 }
  0x7a   : > { %2680 = vmatprep.subr.bf16.mxu0 %v2882_v21 }
  0x7c   : > { %2585 = vmatpush3.bf16.msra.mxu1 %v2881_v15  ;;  %v2391_v15 = vld [vmem:[%s3455_s6] ss:$0 sm:$0xff] }
  0x7d   : > { %2681 = vmatpush3.bf16.msra.mxu0 %v2882_v21  ;;  %2586 = vmatprep.subr.bf16.mxu1 %v2883_v40 }
  0x7e   : > { %2682 = vmatprep.subr.bf16.mxu0 %v2884_v51 }
  0x80   : > { %2587 = vmatpush3.bf16.msra.mxu1 %v2883_v40 }
  0x81   : > { %2683 = vmatpush3.bf16.msra.mxu0 %v2884_v51  ;;  %2588 = vmatprep.subr.bf16.mxu1 %v2885_v5 }
  0x82   : > { %2684 = vmatprep.subr.bf16.mxu0 %v2886_v38 }
  0x84   : > { %2589 = vmatpush3.bf16.msra.mxu1 %v2885_v5 }
  0x85   : > { %2685 = vmatpush3.bf16.msra.mxu0 %v2886_v38  ;;  %2718 = vmatprep.subr.bf16.mxu1 %v2887_v46 }
  0x86   : > { %2694 = vmatprep.subr.bf16.mxu0 %v2887_v46 }
  0x87   : > { %2591 = vmatmul.mubr.bf16.vlgmr.msra.gmra.mrb[0].mxu1 %v932_v47 }
  0x88   : > { %2687 = vmatmul.mubr.bf16.vlgmr.msra.gmra.mrb[0].mxu0 %v3098_v63  ;;  %2726 = vmatpush3.bf16.msra.mxu1 %v2887_v46  ;;  %v1631_v63 = vpack.c.bf16 %v1627_v52, %v1104_v3  ;;  %v2892_v3 = vld [vmem:[%s3450_s1 + $0x228] sm:$0xff]  }
  0x89   : > { %2695 = vmatpush3.bf16.msra.mxu0 %v2887_v46  ;;  %2719 = vmatprep.subr.bf16.mxu1 %v2888_v12 }
  0x8a   : > { %2696 = vmatprep.subr.bf16.mxu0 %v2888_v12  ;;  %2594 = vmatprep.mubr.bf16.mxu1 %v933_v49 }
  0x8b   : > { %2690 = vmatprep.mubr.bf16.mxu0 %v3111_v11  ;;  %v2891_v11 = vld [vmem:[%s3450_s1 + $0x220] sm:$0xff]  }
  0x8c   : > { %2727 = vmatpush3.bf16.msra.mxu1 %v2888_v12 }
  0x8d   : > { %2697 = vmatpush3.bf16.msra.mxu0 %v2888_v12  ;;  %2720 = vmatprep.subr.bf16.mxu1 %v2889_v13 }
  0x8e   : > { %2698 = vmatprep.subr.bf16.mxu0 %v2889_v13 }
  0x8f   : > { %2595 = vmatmul.mubr.bf16.gmra.mrb[4].mxu1 %v934_v59 }
  0x90   : > { %2691 = vmatmul.mubr.bf16.gmra.mrb[4].mxu0 %v1631_v63  ;;  %2728 = vmatpush3.bf16.msra.mxu1 %v2889_v13 }
  0x91   : > { %2699 = vmatpush3.bf16.msra.mxu0 %v2889_v13  ;;  %2721 = vmatprep.subr.bf16.mxu1 %v2890_v0 }
  0x92   : > { %2700 = vmatprep.subr.bf16.mxu0 %v2890_v0  ;;  %2710 = vmatprep.mubr.bf16.mxu0 %v3161_v43  ;;  %v2893_v43 = vld [vmem:[%s3450_s1 + $0x230] sm:$0xff]  }
  0x93   : > { %2714 = vmatprep.mubr.bf16.mxu1 %v3241_v37  ;;  %v1801_v37 = vmax.f32 %v1793_v28, 0.0 }
  0x94   : > { %2729 = vmatpush3.bf16.msra.mxu1 %v2890_v0 }
  0x95   : > { %2701 = vmatpush3.bf16.msra.mxu0 %v2890_v0  ;;  %2722 = vmatprep.subr.bf16.mxu1 %v2891_v11  ;;  %v1805_v39 = vpack.c.bf16 %v1801_v37, %v1278_v45 }
  0x96   : > { %2702 = vmatprep.subr.bf16.mxu0 %v2891_v11 }
  0x98   : > { %2730 = vmatpush3.bf16.msra.mxu1 %v2891_v11 }
  0x99   : > { %2703 = vmatpush3.bf16.msra.mxu0 %v2891_v11  ;;  %2723 = vmatprep.subr.bf16.mxu1 %v2892_v3 }
  0x9a   : > { %2704 = vmatprep.subr.bf16.mxu0 %v2892_v3 }
  0x9c   : > { %2731 = vmatpush3.bf16.msra.mxu1 %v2892_v3 }
  0x9d   : > { %2705 = vmatpush3.bf16.msra.mxu0 %v2892_v3  ;;  %2724 = vmatprep.subr.bf16.mxu1 %v2893_v43 }
  0x9e   : > { %2706 = vmatprep.subr.bf16.mxu0 %v2893_v43 }
  0xa0   : > { %2732 = vmatpush3.bf16.msra.mxu1 %v2893_v43 }
  0xa1   : > { %2707 = vmatpush3.bf16.msra.mxu0 %v2893_v43  ;;  %2725 = vmatprep.subr.bf16.mxu1 %v2894_v29 }
  0xa2   : > { %2708 = vmatprep.subr.bf16.mxu0 %v2894_v29 }
  0xa4   : > { %2733 = vmatpush3.bf16.msra.mxu1 %v2894_v29 }
  0xa5   : > { %2709 = vmatpush3.bf16.msra.mxu0 %v2894_v29 }
  0xa7   : > { %2715 = vmatmul.mubr.bf16.vlgmr.msra.gmra.mrb[8].mxu1 %v1805_v39 }
  0xa8   : > { %2711 = vmatmul.mubr.bf16.vlgmr.msra.gmra.mrb[0].mxu0 %v3245_v42  ;;  %v2390_v42 = vld [vmem:[%s3454_s5] ss:$0 sm:$0xff] }
  0xa9   : > { %v1965_v14 = vmul.f32 %v2390_v42, %v1950_v4  ;;  %v1961_v19 = vmul.f32 %v2390_v42, %v1946_v7  ;;  %v1963_v25 = vmul.f32 %v2390_v42, %v1948_v8  ;;  %v1959_v32 = vmul.f32 %v2390_v42, %v1944_v9 }
  0xaa   : > { %v1966_v34 = vmul.f32 %v2390_v42, %v1951_v10  ;;  %v1962_v51 = vmul.f32 %v2390_v42, %v1947_v16  ;;  %v1964_v36 = vmul.f32 %v2390_v42, %v1949_v17  ;;  %v1960_v48 = vmul.f32 %v2390_v42, %v1945_v26 }
 0x15a   : > { %v2592_v41 = vpop.f32.mrb[0].mxu1 }
 0x15b   : > { %v1034_v50 = vpop.f32.mrb[1].mxu1 }
 0x15c   : > { %v2593_v53 = vpop.f32.mrb[2].mxu1 }
 0x15d   : > { %v1037_v54 = vpop.f32.mrb[3].mxu1 }
 0x162   : > { %v2596_v55 = vpop.f32.mrb[4].mxu1 }
 0x163   : > { %v2692_v56 = vpop.f32.mrb[4].mxu0  ;;  %v1050_v20 = vpop.f32.mrb[5].mxu1 }
 0x164   : > { %v2738_v24 = vadd.f32 %v2692_v56, %v2596_v55  ;;  %v1747_v57 = vpop.f32.mrb[5].mxu0  ;;  %v2597_v58 = vpop.f32.mrb[6].mxu1 }
 0x165   : > { %v2740_v61 = vadd.f32 %v1747_v57, %v1050_v20  ;;  %v2693_v62 = vpop.f32.mrb[6].mxu0  ;;  %v1053_v31 = vpop.f32.mrb[7].mxu1 }
 0x166   : > { %v2742_v45 = vadd.f32 %v2693_v62, %v2597_v58  ;;  %v1750_v1 = vpop.f32.mrb[7].mxu0 }
 0x167   : > { %v2744_v2 = vadd.f32 %v1750_v1, %v1053_v31 }
 0x17a   : > { %v2716_v23 = vpop.f32.mrb[8].mxu1 }
 0x17b   : > { %v2712_v27 = vpop.f32.mrb[0].mxu0  ;;  %v2739_v30 = vadd.f32 %v2738_v24, %v2716_v23  ;;  %v1921_v33 = vpop.f32.mrb[9].mxu1 }
 0x17c   : > { %v2734_v35 = vadd.f32 %v2712_v27, %v2592_v41  ;;  %v1905_v21 = vpop.f32.mrb[1].mxu0  ;;  %v2741_v40 = vadd.f32 %v2740_v61, %v1921_v33  ;;  %v2717_v5 = vpop.f32.mrb[10].mxu1 }
 0x17d   : > { %v1973_v38 = vadd.f32 %v2739_v30, %v1965_v14  ;;  %v2735_v44 = vadd.f32 %v1905_v21, %v1034_v50  ;;  %v2713_v46 = vpop.f32.mrb[2].mxu0  ;;  %v2743_v47 = vadd.f32 %v2742_v45, %v2717_v5  ;;  %v1924_v12 = vpop.f32.mrb[11].mxu1 }
 0x17e   : > { %v1969_v49 = vadd.f32 %v2734_v35, %v1961_v19  ;;  %v1971_v52 = vadd.f32 %v2741_v40, %v1963_v25  ;;  %v2736_v13 = vadd.f32 %v2713_v46, %v2593_v53  ;;  %v1908_v59 = vpop.f32.mrb[3].mxu0  ;;  %v2745_v63 = vadd.f32 %v2744_v2, %v1924_v12 }
 0x17f   : > { %v1988_v0 = vadd.f32 %v2391_v15, %v1973_v38  ;;  %v1967_v11 = vadd.f32 %v2735_v44, %v1959_v32  ;;  %v1974_v60 = vadd.f32 %v2743_v47, %v1966_v34  ;;  %v2737_v3 = vadd.f32 %v1908_v59, %v1037_v54 }
 0x180   : > { %v1984_v6 = vadd.f32 %v2391_v15, %v1969_v49  ;;  %v1986_v18 = vadd.f32 %v2391_v15, %v1971_v52  ;;  %v1970_v43 = vadd.f32 %v2736_v13, %v1962_v51  ;;  %v1972_v22 = vadd.f32 %v2745_v63, %v1964_v36 }
 0x181   : > { %1996 = vst [vmem:[%s376_s30 + $0x30] sm:$0xff] %v1988_v0  ;;  %v1982_v28 = vadd.f32 %v2391_v15, %v1967_v11  ;;  %v1989_v29 = vadd.f32 %v2391_v15, %v1974_v60  ;;  %v1968_v37 = vadd.f32 %v2737_v3, %v1960_v48 }
 0x182   : > { %1992 = vst [vmem:[%s376_s30 + $0x10] sm:$0xff] %v1984_v6  ;;  %1994 = vst [vmem:[%s376_s30 + $0x20] sm:$0xff] %v1986_v18  ;;  %v1985_v39 = vadd.f32 %v2391_v15, %v1970_v43  ;;  %v1987_v41 = vadd.f32 %v2391_v15, %v1972_v22 }
 0x183   : > { %1990 = vst [vmem:[%s376_s30] sm:$0xff] %v1982_v28  ;;  %1997 = vst [vmem:[%s376_s30 + $0x38] sm:$0xff] %v1989_v29  ;;  %v1983_v50 = vadd.f32 %v2391_v15, %v1968_v37 }
 0x184   : > { %1993 = vst [vmem:[%s376_s30 + $0x18] sm:$0xff] %v1985_v39  ;;  %1995 = vst [vmem:[%s376_s30 + $0x28] sm:$0xff] %v1987_v41 }
 0x185   : > { %1991 = vst [vmem:[%s376_s30 + $0x8] sm:$0xff] %v1983_v50 }
 0x186 PF: > { %s17_s26 = sadd.s32 1, %s2919_s26   ;;  %s3457_s24 = smov %s2915_s25 }
 0x187   : > { %p14_p6 = scmp.ge.s32.totalorder %s17_s26, 4   ;;  %s3458_s25 = smov %s3460_s27 }
 0x189   :  { %16 = sbr.rel (!%p14_p6) target bundleno = 2 (0x2), region = 100 }

</bundles_post_ra>
